<compile_context>
chip_gen: v7x
topology: tpu7x:2x2x1
jax: 0.10.0
libtpu: 0.0.40
codegen_flags: <defaults>
</compile_context>

<pallas_src>
import math
import functools

import jax
import jax.numpy as jnp
from jax.experimental import pallas as pl
from jax.experimental.pallas import tpu as pltpu


def _user_encoder_kernel(x_ref, wqkv_ref, bqkv_ref, wa_ref, ba_ref, qv_ref,
                         out_ref, *, num_heads, pack):
    """One grid step == Bt batch elements.

    x_ref   : (Bt, L, D)   clicked-news sequences (MXU dtype)
    wqkv    : (D, 3D), bqkv: (1, 3D)   fused Q/K/V projection (scale folded in Wq/bq)
    wa      : (D, Qd), ba : (1, Qd)    additive attention projection
    qv      : (1, Qd)                  additive attention query (row vector, f32)
    out_ref : (Bt//pack, pack*D)       lane-dense packed user representations
    """
    Bt, L, D = x_ref.shape
    H = num_heads
    dk = D // H
    mxu_dtype = x_ref.dtype

    # --- fused Q/K/V projection over all Bt*L rows (single MXU pass) --------
    x2 = x_ref[...].reshape(Bt * L, D)                      # leading-dim reshape: free
    qkv = jnp.dot(x2, wqkv_ref[...],
                  preferred_element_type=jnp.float32) + bqkv_ref[...]   # (Bt*L, 3D) f32
    qkv_m = qkv.astype(mxu_dtype)                           # bf16 operands for attention

    # --- per-head scaled-dot-product attention, batched over Bt -------------
    # (1/sqrt(dk) already folded into Wq / bq by the wrapper)
    ctxs = []
    for h in range(H):                                      # static unroll, H is small
        lo = h * dk
        qh = qkv_m[:, lo:lo + dk].reshape(Bt, L, dk)
        kh = qkv_m[:, D + lo:D + lo + dk].reshape(Bt, L, dk)
        vh = qkv_m[:, 2 * D + lo:2 * D + lo + dk].reshape(Bt, L, dk)

        s = jnp.einsum('bld,bmd->blm', qh, kh,
                       preferred_element_type=jnp.float32)              # (Bt, L, L) f32
        s = s - jnp.max(s, axis=-1, keepdims=True)
        e = jnp.exp(s)
        a = e * pl.reciprocal(jnp.sum(e, axis=-1, keepdims=True), approx=True)
        ctxs.append(jnp.einsum('blm,bmd->bld', a.astype(mxu_dtype), vh,
                               preferred_element_type=jnp.float32))     # (Bt, L, dk) f32

    # One lane-concat of the per-head contexts; no VMEM scratch round-trip and
    # no masked per-head stores.
    news_rep = jnp.concatenate(ctxs, axis=-1)               # (Bt, L, D) f32
    # dropout(news_rep) -> identity (eval mode)

    # --- Additive_Attention --------------------------------------------------
    newsf = news_rep.reshape(Bt * L, D)
    proj = jnp.tanh(
        jnp.dot(newsf.astype(mxu_dtype), wa_ref[...],
                preferred_element_type=jnp.float32) + ba_ref[...])      # (Bt*L, Qd) f32
    proj3 = proj.reshape(Bt, L, -1)                         # leading-dim split: free
    # Query dot on the VPU (mul + lane reduce) instead of a 1-lane MXU pass.
    scores = jnp.sum(proj3 * qv_ref[...], axis=-1)          # (Bt, L) f32
    # 2-D softmax over L (L on lanes).
    scores = scores - jnp.max(scores, axis=-1, keepdims=True)
    e2 = jnp.exp(scores)
    w = e2 * pl.reciprocal(jnp.sum(e2, axis=-1, keepdims=True), approx=True)  # (Bt, L)
    user = jnp.sum(w[:, :, None] * news_rep, axis=1)        # (Bt, D) f32
    user = jnp.tanh(user)                                   # final dropout -> identity

    # --- lane-dense packed store ---------------------------------------------
    # Pack `pack` user rows per 128-lane output row: contiguous sublane halves
    # concatenated along lanes -> one full-width (unmasked) store.  The wrapper
    # undoes the resulting row permutation with a tiny XLA transpose.
    if pack > 1:
        rows = Bt // pack
        out_ref[...] = jnp.concatenate(
            [user[p * rows:(p + 1) * rows, :] for p in range(pack)], axis=-1)
    else:
        out_ref[...] = user


def user_encoder_forward(x, params, *, num_heads, mxu_dtype=jnp.bfloat16,
                         target_rows=2048):
    """x: (B, L, D) f32 -> (B, D) f32."""
    B, L, D = x.shape
    assert D % num_heads == 0
    dk = D // num_heads
    Qd = params["wa"].shape[1]

    # Fold the 1/sqrt(dk) score scale into the query projection (before the
    # bf16 cast) and fuse the three projection matmuls into one (D, 3D) weight.
    scale = 1.0 / math.sqrt(dk)
    wqkv = jnp.concatenate(
        [params["wq"] * scale, params["wk"], params["wv"]], axis=1)     # (D, 3D)
    bqkv = jnp.concatenate(
        [params["bq"] * scale, params["bk"], params["bv"]], axis=1)     # (1, 3D)

    wqkv = wqkv.astype(mxu_dtype)
    wa = params["wa"].astype(mxu_dtype)
    bqkv = bqkv.astype(jnp.float32)
    ba = params["ba"].astype(jnp.float32)
    qv = params["qv"].reshape(1, Qd).astype(jnp.float32)

    # --- batch-tile selection -------------------------------------------------
    # pack user rows so the output's last dim is a full 128 lanes when possible.
    pack = 128 // D if (D < 128 and 128 % D == 0) else 1
    unit = 8 * pack                       # Bt granularity: keeps packed tiles (8k, 128)
    Bt = max(1, target_rows // max(L, 1))                   # ~2048 rows per grid step
    Bt = max(unit, (Bt // unit) * unit)
    if B >= 2 * unit:
        # v7x megacore: keep >= 2 grid steps so the parallel axis can shard
        # across the 2 TensorCores (no-op on single-TC v5e / v6e).
        half = pl.cdiv(pl.cdiv(B, 2), unit) * unit
        Bt = min(Bt, half)
    Bt = min(Bt, pl.cdiv(B, unit) * unit)                   # never pad more than one tile
    n_blocks = pl.cdiv(B, Bt)
    B_pad = n_blocks * Bt

    xb = x.astype(mxu_dtype)
    if B_pad != B:
        xb = jnp.pad(xb, ((0, B_pad - B), (0, 0), (0, 0)))

    rows = Bt // pack
    out_cols = pack * D                                     # 128 when D == 64

    kernel = functools.partial(_user_encoder_kernel, num_heads=num_heads, pack=pack)

    def rep(shape):                                         # replicated (weight) block
        nd = len(shape)
        return pl.BlockSpec(shape, lambda i: (0,) * nd)

    out = pl.pallas_call(
        kernel,
        out_shape=jax.ShapeDtypeStruct((B_pad // pack, out_cols), jnp.float32),
        grid=(n_blocks,),
        in_specs=[
            pl.BlockSpec((Bt, L, D), lambda i: (i, 0, 0)),  # x tile
            rep((D, 3 * D)), rep((1, 3 * D)),               # fused Wqkv, bqkv
            rep((D, Qd)), rep((1, Qd)),                     # Wa, ba
            rep((1, Qd)),                                   # query row vector
        ],
        out_specs=pl.BlockSpec((rows, out_cols), lambda i: (i, 0)),
        compiler_params=pltpu.CompilerParams(
            dimension_semantics=("parallel",)),
    )(xb, wqkv, bqkv, wa, ba, qv)

    # Undo the in-kernel lane packing: within each tile, packed row r holds
    # user rows [r, r + rows, r + 2*rows, ...] across its `pack` lane groups.
    user_rep = out.reshape(n_blocks, rows, pack, D)
    user_rep = user_rep.transpose(0, 2, 1, 3).reshape(B_pad, D)
    return user_rep[:B]


def user_encoder_reference(x, params, *, num_heads):
    """Pure-JAX reference for correctness checking (f32 throughout)."""
    B, L, D = x.shape
    dk = D // num_heads
    q = x @ params["wq"] + params["bq"]
    k = x @ params["wk"] + params["bk"]
    v = x @ params["wv"] + params["bv"]

    def split(t):  # (B, L, D) -> (B, H, L, dk)
        return t.reshape(B, L, num_heads, dk).transpose(0, 2, 1, 3)

    qh, kh, vh = split(q), split(k), split(v)
    s = jnp.einsum("bhld,bhmd->bhlm", qh, kh) / math.sqrt(dk)
    a = jax.nn.softmax(s, axis=-1)
    ctx = jnp.einsum("bhlm,bhmd->bhld", a, vh)
    news_rep = ctx.transpose(0, 2, 1, 3).reshape(B, L, D)

    proj = jnp.tanh(news_rep @ params["wa"] + params["ba"])             # (B, L, Qd)
    scores = jnp.einsum("blq,q->bl", proj, params["qv"][0])             # (B, L)
    w = jax.nn.softmax(scores, axis=-1)
    user = jnp.einsum("bl,bld->bd", w, news_rep)
    return jnp.tanh(user)


if __name__ == "__main__":
    # Small shapes consistent with the module:
    #   attention_dim=16, attention_heads=4 -> multi_dim D = 64
    #   query_vector_dim = 32, clicked-seq length L = 8, batch B = 2
    B, L = 2, 8
    attention_dim, attention_heads = 16, 4
    D = attention_dim * attention_heads
    Qd = 32

    key = jax.random.PRNGKey(0)
    ks = jax.random.split(key, 11)

    def init(k, shape, scale=0.1):
        return (scale * jax.random.normal(k, shape)).astype(jnp.float32)

    x = jax.random.normal(ks[0], (B, L, D), dtype=jnp.float32)
    params = {
        "wq": init(ks[1], (D, D)), "bq": init(ks[2], (1, D)),
        "wk": init(ks[3], (D, D)), "bk": init(ks[4], (1, D)),
        "wv": init(ks[5], (D, D)), "bv": init(ks[6], (1, D)),
        "wa": init(ks[7], (D, Qd)), "ba": init(ks[8], (1, Qd)),
        "qv": init(ks[9], (1, Qd)),
    }

    ref = user_encoder_reference(x, params, num_heads=attention_heads)

    # f32 MXU operands: tight check (tolerance allows approx-EUP reciprocal).
    out_f32 = user_encoder_forward(x, params, num_heads=attention_heads,
                                   mxu_dtype=jnp.float32)
    out_f32 = jax.block_until_ready(out_f32)
    assert out_f32.shape == (B, D)
    assert jnp.allclose(out_f32, ref, atol=6e-3, rtol=6e-3), "f32 mismatch vs reference"

    # bf16 MXU operands with f32 accumulation (v5e/v6e/v7x recommendation).
    out_bf16 = user_encoder_forward(x, params, num_heads=attention_heads,
                                    mxu_dtype=jnp.bfloat16)
    out_bf16 = jax.block_until_ready(out_bf16)
    assert out_bf16.shape == (B, D)
    assert jnp.allclose(out_bf16, ref, atol=6e-2, rtol=6e-2), "bf16 mismatch vs reference"

    print("KERNEL_OK")
</pallas_src>

<mosaic_0001>
module attributes {stable_mosaic.version = 11 : i64} {
  func.func @_user_encoder_kernel(%arg0: i32, %arg1: memref<16x8x64xf32, #tpu.memory_space<vmem>>, %arg2: memref<64x192xf32, #tpu.memory_space<vmem>>, %arg3: memref<1x192xf32, #tpu.memory_space<vmem>>, %arg4: memref<64x32xf32, #tpu.memory_space<vmem>>, %arg5: memref<1x32xf32, #tpu.memory_space<vmem>>, %arg6: memref<1x32xf32, #tpu.memory_space<vmem>>, %arg7: memref<8x128xf32, #tpu.memory_space<vmem>>) attributes {dimension_semantics = [#tpu.dimension_semantics<parallel>], iteration_bounds = array<i64: 1>, scalar_prefetch = 0 : i64, scratch_operands = 0 : i64, tpu.core_type = #tpu.core_type<tc>, window_params = [{transform_indices = @transform_0, window_bounds = array<i64: 16, 8, 64>}, {pipeline_mode = #tpu.pipeline_mode<synchronous>, transform_indices = @transform_1, window_bounds = array<i64: 64, 192>}, {pipeline_mode = #tpu.pipeline_mode<synchronous>, transform_indices = @transform_2, window_bounds = array<i64: 1, 192>}, {pipeline_mode = #tpu.pipeline_mode<synchronous>, transform_indices = @transform_3, window_bounds = array<i64: 64, 32>}, {pipeline_mode = #tpu.pipeline_mode<synchronous>, transform_indices = @transform_4, window_bounds = array<i64: 1, 32>}, {pipeline_mode = #tpu.pipeline_mode<synchronous>, transform_indices = @transform_5, window_bounds = array<i64: 1, 32>}, {transform_indices = @transform_6, window_bounds = array<i64: 8, 128>}]} {
    %c0 = arith.constant 0 : index
    %c0_0 = arith.constant 0 : index
    %c0_1 = arith.constant 0 : index
    %0 = vector.load %arg1[%c0, %c0_0, %c0_1] : memref<16x8x64xf32, #tpu.memory_space<vmem>>, vector<16x8x64xf32>
    %1 = vector.shape_cast %0 : vector<16x8x64xf32> to vector<128x64xf32>
    %c0_2 = arith.constant 0 : index
    %c0_3 = arith.constant 0 : index
    %2 = vector.load %arg2[%c0_2, %c0_3] : memref<64x192xf32, #tpu.memory_space<vmem>>, vector<64x192xf32>
    %cst = arith.constant dense<0.000000e+00> : vector<128x192xf32>
    %3 = tpu.matmul %1, %2, %cst {dimension_numbers = #tpu.dot_dimension_numbers<[1], [0], [0], [1], [0, 0, 1, 1], [], []>} : vector<128x64xf32>, vector<64x192xf32>, vector<128x192xf32> -> vector<128x192xf32>
    %c0_4 = arith.constant 0 : index
    %c0_5 = arith.constant 0 : index
    %4 = vector.load %arg3[%c0_4, %c0_5] : memref<1x192xf32, #tpu.memory_space<vmem>>, vector<1x192xf32>
    %5 = vector.broadcast %4 : vector<1x192xf32> to vector<128x192xf32>
    %6 = arith.addf %3, %5 : vector<128x192xf32>
    %7 = vector.extract_strided_slice %6 {offsets = [0, 0], sizes = [128, 16], strides = [1, 1]} : vector<128x192xf32> to vector<128x16xf32>
    %8 = vector.shape_cast %7 : vector<128x16xf32> to vector<16x8x16xf32>
    %9 = vector.extract_strided_slice %6 {offsets = [0, 64], sizes = [128, 16], strides = [1, 1]} : vector<128x192xf32> to vector<128x16xf32>
    %10 = vector.shape_cast %9 : vector<128x16xf32> to vector<16x8x16xf32>
    %11 = vector.extract_strided_slice %6 {offsets = [0, 128], sizes = [128, 16], strides = [1, 1]} : vector<128x192xf32> to vector<128x16xf32>
    %12 = vector.shape_cast %11 : vector<128x16xf32> to vector<16x8x16xf32>
    "tpu.trace_start"() <{level = 10 : i32, message = "bld,bmd->blm"}> : () -> ()
    %cst_6 = arith.constant dense<0.000000e+00> : vector<16x8x8xf32>
    %13 = tpu.matmul %8, %10, %cst_6 {dimension_numbers = #tpu.dot_dimension_numbers<[2], [2], [1], [1], [0, 0, 0, 1, 1, 1], [0], [0]>} : vector<16x8x16xf32>, vector<16x8x16xf32>, vector<16x8x8xf32> -> vector<16x8x8xf32>
    "tpu.trace_stop"() : () -> ()
    %cst_7 = arith.constant dense<0xFF800000> : vector<16x8xf32>
    %14 = vector.multi_reduction <maximumf>, %13, %cst_7 [2] : vector<16x8x8xf32> to vector<16x8xf32>
    %15 = vector.shape_cast %14 : vector<16x8xf32> to vector<16x8x1xf32>
    %16 = vector.broadcast %15 : vector<16x8x1xf32> to vector<16x8x8xf32>
    %17 = arith.subf %13, %16 : vector<16x8x8xf32>
    %18 = math.exp %17 : vector<16x8x8xf32>
    %cst_8 = arith.constant dense<0.000000e+00> : vector<16x8xf32>
    %19 = vector.multi_reduction <add>, %18, %cst_8 [2] : vector<16x8x8xf32> to vector<16x8xf32>
    %20 = vector.shape_cast %19 : vector<16x8xf32> to vector<16x8x1xf32>
    %21 = tpu.reciprocal %20 {approx = true} : vector<16x8x1xf32> -> vector<16x8x1xf32>
    %22 = vector.broadcast %21 : vector<16x8x1xf32> to vector<16x8x8xf32>
    %23 = arith.mulf %18, %22 : vector<16x8x8xf32>
    "tpu.trace_start"() <{level = 10 : i32, message = "blm,bmd->bld"}> : () -> ()
    %cst_9 = arith.constant dense<0.000000e+00> : vector<16x8x16xf32>
    %24 = tpu.matmul %23, %12, %cst_9 {dimension_numbers = #tpu.dot_dimension_numbers<[2], [1], [1], [2], [0, 0, 0, 1, 1, 2], [0], [0]>} : vector<16x8x8xf32>, vector<16x8x16xf32>, vector<16x8x16xf32> -> vector<16x8x16xf32>
    "tpu.trace_stop"() : () -> ()
    %25 = vector.extract_strided_slice %6 {offsets = [0, 16], sizes = [128, 16], strides = [1, 1]} : vector<128x192xf32> to vector<128x16xf32>
    %26 = vector.shape_cast %25 : vector<128x16xf32> to vector<16x8x16xf32>
    %27 = vector.extract_strided_slice %6 {offsets = [0, 80], sizes = [128, 16], strides = [1, 1]} : vector<128x192xf32> to vector<128x16xf32>
    %28 = vector.shape_cast %27 : vector<128x16xf32> to vector<16x8x16xf32>
    %29 = vector.extract_strided_slice %6 {offsets = [0, 144], sizes = [128, 16], strides = [1, 1]} : vector<128x192xf32> to vector<128x16xf32>
    %30 = vector.shape_cast %29 : vector<128x16xf32> to vector<16x8x16xf32>
    "tpu.trace_start"() <{level = 10 : i32, message = "bld,bmd->blm"}> : () -> ()
    %cst_10 = arith.constant dense<0.000000e+00> : vector<16x8x8xf32>
    %31 = tpu.matmul %26, %28, %cst_10 {dimension_numbers = #tpu.dot_dimension_numbers<[2], [2], [1], [1], [0, 0, 0, 1, 1, 1], [0], [0]>} : vector<16x8x16xf32>, vector<16x8x16xf32>, vector<16x8x8xf32> -> vector<16x8x8xf32>
    "tpu.trace_stop"() : () -> ()
    %cst_11 = arith.constant dense<0xFF800000> : vector<16x8xf32>
    %32 = vector.multi_reduction <maximumf>, %31, %cst_11 [2] : vector<16x8x8xf32> to vector<16x8xf32>
    %33 = vector.shape_cast %32 : vector<16x8xf32> to vector<16x8x1xf32>
    %34 = vector.broadcast %33 : vector<16x8x1xf32> to vector<16x8x8xf32>
    %35 = arith.subf %31, %34 : vector<16x8x8xf32>
    %36 = math.exp %35 : vector<16x8x8xf32>
    %cst_12 = arith.constant dense<0.000000e+00> : vector<16x8xf32>
    %37 = vector.multi_reduction <add>, %36, %cst_12 [2] : vector<16x8x8xf32> to vector<16x8xf32>
    %38 = vector.shape_cast %37 : vector<16x8xf32> to vector<16x8x1xf32>
    %39 = tpu.reciprocal %38 {approx = true} : vector<16x8x1xf32> -> vector<16x8x1xf32>
    %40 = vector.broadcast %39 : vector<16x8x1xf32> to vector<16x8x8xf32>
    %41 = arith.mulf %36, %40 : vector<16x8x8xf32>
    "tpu.trace_start"() <{level = 10 : i32, message = "blm,bmd->bld"}> : () -> ()
    %cst_13 = arith.constant dense<0.000000e+00> : vector<16x8x16xf32>
    %42 = tpu.matmul %41, %30, %cst_13 {dimension_numbers = #tpu.dot_dimension_numbers<[2], [1], [1], [2], [0, 0, 0, 1, 1, 2], [0], [0]>} : vector<16x8x8xf32>, vector<16x8x16xf32>, vector<16x8x16xf32> -> vector<16x8x16xf32>
    "tpu.trace_stop"() : () -> ()
    %43 = vector.extract_strided_slice %6 {offsets = [0, 32], sizes = [128, 16], strides = [1, 1]} : vector<128x192xf32> to vector<128x16xf32>
    %44 = vector.shape_cast %43 : vector<128x16xf32> to vector<16x8x16xf32>
    %45 = vector.extract_strided_slice %6 {offsets = [0, 96], sizes = [128, 16], strides = [1, 1]} : vector<128x192xf32> to vector<128x16xf32>
    %46 = vector.shape_cast %45 : vector<128x16xf32> to vector<16x8x16xf32>
    %47 = vector.extract_strided_slice %6 {offsets = [0, 160], sizes = [128, 16], strides = [1, 1]} : vector<128x192xf32> to vector<128x16xf32>
    %48 = vector.shape_cast %47 : vector<128x16xf32> to vector<16x8x16xf32>
    "tpu.trace_start"() <{level = 10 : i32, message = "bld,bmd->blm"}> : () -> ()
    %cst_14 = arith.constant dense<0.000000e+00> : vector<16x8x8xf32>
    %49 = tpu.matmul %44, %46, %cst_14 {dimension_numbers = #tpu.dot_dimension_numbers<[2], [2], [1], [1], [0, 0, 0, 1, 1, 1], [0], [0]>} : vector<16x8x16xf32>, vector<16x8x16xf32>, vector<16x8x8xf32> -> vector<16x8x8xf32>
    "tpu.trace_stop"() : () -> ()
    %cst_15 = arith.constant dense<0xFF800000> : vector<16x8xf32>
    %50 = vector.multi_reduction <maximumf>, %49, %cst_15 [2] : vector<16x8x8xf32> to vector<16x8xf32>
    %51 = vector.shape_cast %50 : vector<16x8xf32> to vector<16x8x1xf32>
    %52 = vector.broadcast %51 : vector<16x8x1xf32> to vector<16x8x8xf32>
    %53 = arith.subf %49, %52 : vector<16x8x8xf32>
    %54 = math.exp %53 : vector<16x8x8xf32>
    %cst_16 = arith.constant dense<0.000000e+00> : vector<16x8xf32>
    %55 = vector.multi_reduction <add>, %54, %cst_16 [2] : vector<16x8x8xf32> to vector<16x8xf32>
    %56 = vector.shape_cast %55 : vector<16x8xf32> to vector<16x8x1xf32>
    %57 = tpu.reciprocal %56 {approx = true} : vector<16x8x1xf32> -> vector<16x8x1xf32>
    %58 = vector.broadcast %57 : vector<16x8x1xf32> to vector<16x8x8xf32>
    %59 = arith.mulf %54, %58 : vector<16x8x8xf32>
    "tpu.trace_start"() <{level = 10 : i32, message = "blm,bmd->bld"}> : () -> ()
    %cst_17 = arith.constant dense<0.000000e+00> : vector<16x8x16xf32>
    %60 = tpu.matmul %59, %48, %cst_17 {dimension_numbers = #tpu.dot_dimension_numbers<[2], [1], [1], [2], [0, 0, 0, 1, 1, 2], [0], [0]>} : vector<16x8x8xf32>, vector<16x8x16xf32>, vector<16x8x16xf32> -> vector<16x8x16xf32>
    "tpu.trace_stop"() : () -> ()
    %61 = vector.extract_strided_slice %6 {offsets = [0, 48], sizes = [128, 16], strides = [1, 1]} : vector<128x192xf32> to vector<128x16xf32>
    %62 = vector.shape_cast %61 : vector<128x16xf32> to vector<16x8x16xf32>
    %63 = vector.extract_strided_slice %6 {offsets = [0, 112], sizes = [128, 16], strides = [1, 1]} : vector<128x192xf32> to vector<128x16xf32>
    %64 = vector.shape_cast %63 : vector<128x16xf32> to vector<16x8x16xf32>
    %65 = vector.extract_strided_slice %6 {offsets = [0, 176], sizes = [128, 16], strides = [1, 1]} : vector<128x192xf32> to vector<128x16xf32>
    %66 = vector.shape_cast %65 : vector<128x16xf32> to vector<16x8x16xf32>
    "tpu.trace_start"() <{level = 10 : i32, message = "bld,bmd->blm"}> : () -> ()
    %cst_18 = arith.constant dense<0.000000e+00> : vector<16x8x8xf32>
    %67 = tpu.matmul %62, %64, %cst_18 {dimension_numbers = #tpu.dot_dimension_numbers<[2], [2], [1], [1], [0, 0, 0, 1, 1, 1], [0], [0]>} : vector<16x8x16xf32>, vector<16x8x16xf32>, vector<16x8x8xf32> -> vector<16x8x8xf32>
    "tpu.trace_stop"() : () -> ()
    %cst_19 = arith.constant dense<0xFF800000> : vector<16x8xf32>
    %68 = vector.multi_reduction <maximumf>, %67, %cst_19 [2] : vector<16x8x8xf32> to vector<16x8xf32>
    %69 = vector.shape_cast %68 : vector<16x8xf32> to vector<16x8x1xf32>
    %70 = vector.broadcast %69 : vector<16x8x1xf32> to vector<16x8x8xf32>
    %71 = arith.subf %67, %70 : vector<16x8x8xf32>
    %72 = math.exp %71 : vector<16x8x8xf32>
    %cst_20 = arith.constant dense<0.000000e+00> : vector<16x8xf32>
    %73 = vector.multi_reduction <add>, %72, %cst_20 [2] : vector<16x8x8xf32> to vector<16x8xf32>
    %74 = vector.shape_cast %73 : vector<16x8xf32> to vector<16x8x1xf32>
    %75 = tpu.reciprocal %74 {approx = true} : vector<16x8x1xf32> -> vector<16x8x1xf32>
    %76 = vector.broadcast %75 : vector<16x8x1xf32> to vector<16x8x8xf32>
    %77 = arith.mulf %72, %76 : vector<16x8x8xf32>
    "tpu.trace_start"() <{level = 10 : i32, message = "blm,bmd->bld"}> : () -> ()
    %cst_21 = arith.constant dense<0.000000e+00> : vector<16x8x16xf32>
    %78 = tpu.matmul %77, %66, %cst_21 {dimension_numbers = #tpu.dot_dimension_numbers<[2], [1], [1], [2], [0, 0, 0, 1, 1, 2], [0], [0]>} : vector<16x8x8xf32>, vector<16x8x16xf32>, vector<16x8x16xf32> -> vector<16x8x16xf32>
    "tpu.trace_stop"() : () -> ()
    %79 = tpu.concatenate %24, %42, %60, %78 in 2 : vector<16x8x16xf32>, vector<16x8x16xf32>, vector<16x8x16xf32>, vector<16x8x16xf32> -> vector<16x8x64xf32>
    %80 = vector.shape_cast %79 : vector<16x8x64xf32> to vector<128x64xf32>
    %c0_22 = arith.constant 0 : index
    %c0_23 = arith.constant 0 : index
    %81 = vector.load %arg4[%c0_22, %c0_23] : memref<64x32xf32, #tpu.memory_space<vmem>>, vector<64x32xf32>
    %cst_24 = arith.constant dense<0.000000e+00> : vector<128x32xf32>
    %82 = tpu.matmul %80, %81, %cst_24 {dimension_numbers = #tpu.dot_dimension_numbers<[1], [0], [0], [1], [0, 0, 1, 1], [], []>} : vector<128x64xf32>, vector<64x32xf32>, vector<128x32xf32> -> vector<128x32xf32>
    %c0_25 = arith.constant 0 : index
    %c0_26 = arith.constant 0 : index
    %83 = vector.load %arg5[%c0_25, %c0_26] : memref<1x32xf32, #tpu.memory_space<vmem>>, vector<1x32xf32>
    %84 = vector.broadcast %83 : vector<1x32xf32> to vector<128x32xf32>
    %85 = arith.addf %82, %84 : vector<128x32xf32>
    %86 = math.tanh %85 : vector<128x32xf32>
    %87 = vector.shape_cast %86 : vector<128x32xf32> to vector<16x8x32xf32>
    %c0_27 = arith.constant 0 : index
    %c0_28 = arith.constant 0 : index
    %88 = vector.load %arg6[%c0_27, %c0_28] : memref<1x32xf32, #tpu.memory_space<vmem>>, vector<1x32xf32>
    %89 = vector.shape_cast %88 : vector<1x32xf32> to vector<1x1x32xf32>
    %90 = vector.broadcast %89 : vector<1x1x32xf32> to vector<16x8x32xf32>
    %91 = arith.mulf %87, %90 : vector<16x8x32xf32>
    %cst_29 = arith.constant dense<0.000000e+00> : vector<16x8xf32>
    %92 = vector.multi_reduction <add>, %91, %cst_29 [2] : vector<16x8x32xf32> to vector<16x8xf32>
    %cst_30 = arith.constant dense<0xFF800000> : vector<16xf32>
    %93 = vector.multi_reduction <maximumf>, %92, %cst_30 [1] : vector<16x8xf32> to vector<16xf32>
    %94 = vector.shape_cast %93 : vector<16xf32> to vector<16x1xf32>
    %95 = vector.broadcast %94 : vector<16x1xf32> to vector<16x8xf32>
    %96 = arith.subf %92, %95 : vector<16x8xf32>
    %97 = math.exp %96 : vector<16x8xf32>
    %cst_31 = arith.constant dense<0.000000e+00> : vector<16xf32>
    %98 = vector.multi_reduction <add>, %97, %cst_31 [1] : vector<16x8xf32> to vector<16xf32>
    %99 = vector.shape_cast %98 : vector<16xf32> to vector<16x1xf32>
    %100 = tpu.reciprocal %99 {approx = true} : vector<16x1xf32> -> vector<16x1xf32>
    %101 = vector.broadcast %100 : vector<16x1xf32> to vector<16x8xf32>
    %102 = arith.mulf %97, %101 : vector<16x8xf32>
    %103 = vector.shape_cast %102 : vector<16x8xf32> to vector<16x8x1xf32>
    %104 = vector.broadcast %103 : vector<16x8x1xf32> to vector<16x8x64xf32>
    %105 = arith.mulf %104, %79 : vector<16x8x64xf32>
    %cst_32 = arith.constant dense<0.000000e+00> : vector<16x64xf32>
    %106 = vector.multi_reduction <add>, %105, %cst_32 [1] : vector<16x8x64xf32> to vector<16x64xf32>
    %107 = math.tanh %106 : vector<16x64xf32>
    %108 = vector.extract_strided_slice %107 {offsets = [0, 0], sizes = [8, 64], strides = [1, 1]} : vector<16x64xf32> to vector<8x64xf32>
    %109 = vector.extract_strided_slice %107 {offsets = [8, 0], sizes = [8, 64], strides = [1, 1]} : vector<16x64xf32> to vector<8x64xf32>
    %110 = tpu.concatenate %108, %109 in 1 : vector<8x64xf32>, vector<8x64xf32> -> vector<8x128xf32>
    %c0_33 = arith.constant 0 : index
    %c0_34 = arith.constant 0 : index
    %111 = vector.load %arg7[%c0_33, %c0_34] : memref<8x128xf32, #tpu.memory_space<vmem>>, vector<8x128xf32>
    tpu.vector_store %arg7[%c0_33, %c0_34], %110 {strides = array<i32>} : memref<8x128xf32, #tpu.memory_space<vmem>>, vector<8x128xf32>,
    return
  }
  func.func @transform_0(%arg0: i32) -> (i32, i32, i32) {
    %c0_i32 = arith.constant 0 : i32
    %c0_i32_0 = arith.constant 0 : i32
    %c0_i32_1 = arith.constant 0 : i32
    return %arg0, %c0_i32, %c0_i32_0 : i32, i32, i32
  }
  func.func @transform_1(%arg0: i32) -> (i32, i32) {
    %c0_i32 = arith.constant 0 : i32
    %c0_i32_0 = arith.constant 0 : i32
    %c0_i32_1 = arith.constant 0 : i32
    return %c0_i32, %c0_i32_0 : i32, i32
  }
  func.func @transform_2(%arg0: i32) -> (i32, i32) {
    %c0_i32 = arith.constant 0 : i32
    %c0_i32_0 = arith.constant 0 : i32
    %c0_i32_1 = arith.constant 0 : i32
    return %c0_i32, %c0_i32_0 : i32, i32
  }
  func.func @transform_3(%arg0: i32) -> (i32, i32) {
    %c0_i32 = arith.constant 0 : i32
    %c0_i32_0 = arith.constant 0 : i32
    %c0_i32_1 = arith.constant 0 : i32
    return %c0_i32, %c0_i32_0 : i32, i32
  }
  func.func @transform_4(%arg0: i32) -> (i32, i32) {
    %c0_i32 = arith.constant 0 : i32
    %c0_i32_0 = arith.constant 0 : i32
    %c0_i32_1 = arith.constant 0 : i32
    return %c0_i32, %c0_i32_0 : i32, i32
  }
  func.func @transform_5(%arg0: i32) -> (i32, i32) {
    %c0_i32 = arith.constant 0 : i32
    %c0_i32_0 = arith.constant 0 : i32
    %c0_i32_1 = arith.constant 0 : i32
    return %c0_i32, %c0_i32_0 : i32, i32
  }
  func.func @transform_6(%arg0: i32) -> (i32, i32) {
    %c0_i32 = arith.constant 0 : i32
    %c0_i32_0 = arith.constant 0 : i32
    return %arg0, %c0_i32 : i32, i32
  }
}

</mosaic_0001>

<bundles_post_ra>
// kernel: tpu_custom_call.1
= control target key start
LH: loop header
LB: loop body
LE: loop exit
PB: predicated region body
PF: predicated region fallthrough
CT: control target
= control target key end

     0   :  { %11 = vsyncpa [#allocation3], 0  ;;  %s16526_s0 = inlined_call_operand.hbm [shape: f32[16,8,64], index: 0, kind: input, shape index: {}]   ;;  %s16527_s1 = inlined_call_operand.hbm [shape: f32[64,192], index: 1, kind: input, shape index: {}]   ;;  %s16528_s2 = inlined_call_operand.vmem [shape: f32[1,192], index: 2, kind: input, shape index: {}]   ;;  %s16529_s3 = inlined_call_operand.vmem [shape: f32[64,32], index: 3, kind: input, shape index: {}]   ;;  %s16530_s4 = inlined_call_operand.vmem [shape: f32[1,32], index: 4, kind: input, shape index: {}]   ;;  %s16531_s5 = inlined_call_operand.vmem [shape: f32[1,32], index: 5, kind: input, shape index: {}]   ;;  %s16532_s6 = inlined_call_operand.hbm [shape: f32[8,128], index: 6, kind: output, shape index: {}]  }
   0x1   :  { %12 = vsyncpa [#allocation6], 0 }
   0x2   :  { %13 = vsyncpa [#allocation4], 0  ;;  %s13796_s21 = smov [#allocation2]   ;;  %s13724_s25 = scalar_lea.hbm %s16526_s0, 2048 }
   0x3   :  { %s19_s22 = sshll.u32 %s13796_s21, 4  ;;  %p13725_p0 = scmp.ne.s32.totalorder %s16526_s0, %s13724_s25  ;;  %s20_s22 = int_to_ptr.vmem [resolvable:$true] %s19_s22 }
   0x4   :  { %p13728_p1 = scmp.lt.u32.totalorder %s13724_s25, %s16526_s0 }
   0x6   :  { %p13730_p2 = pnand %p13728_p1, %p13725_p0 }
   0x8   :  { %13733 = shalt.err (!%p13730_p2)
}
   0x9   :  { %s13734_s30 = scalar_lea.vmem %s20_s22, 2048  ;;  %p13739_p4 = scmp.lt.s32.totalorder %s20_s22, %s20_s22 }
   0xa   :  { %p13735_p3 = scmp.ne.s32.totalorder %s20_s22, %s13734_s30  ;;  %p13740_p5 = scmp.lt.s32.totalorder %s13734_s30, %s13734_s30 }
   0xc   :  { %p13741_p6 = por %p13740_p5, %p13739_p4 }
   0xe   :  { %p13742_p7 = pnand %p13741_p6, %p13735_p3 }
  0x10   :  { %13745 = shalt.err (!%p13742_p7)
}
  0x11   :  { %s13797_s7 = smov 128   ;;  %s13798_s8 = smov 8  }
  0x12   :  { %25 = dma.hbm_to_vmem [thread:$0]  %s16526_s0, 2048, %s20_s22, [#allocation3], %s13797_s7, %s13797_s7, %s13798_s8  }
  0x13   :  { %s13799_s11 = smov [#allocation5]   ;;  %s13746_s15 = scalar_lea.hbm %s16527_s1, 2048 }
  0x14   :  { %s31_s12 = sshll.u32 %s13799_s11, 4  ;;  %p13747_p8 = scmp.ne.s32.totalorder %s16527_s1, %s13746_s15  ;;  %s32_s12 = int_to_ptr.vmem [resolvable:$true] %s31_s12 }
  0x15   :  { %p13750_p9 = scmp.lt.u32.totalorder %s13746_s15, %s16527_s1 }
  0x17   :  { %p13752_p10 = pnand %p13750_p9, %p13747_p8 }
  0x19   :  { %13755 = shalt.err (!%p13752_p10)
}
  0x1a   :  { %s13756_s20 = scalar_lea.vmem %s32_s12, 2048  ;;  %p13761_p12 = scmp.lt.s32.totalorder %s32_s12, %s32_s12 }
  0x1b   :  { %p13757_p11 = scmp.ne.s32.totalorder %s32_s12, %s13756_s20  ;;  %p13762_p13 = scmp.lt.s32.totalorder %s13756_s20, %s13756_s20 }
  0x1d   :  { %p13763_p0 = por %p13762_p13, %p13761_p12 }
  0x1f   :  { %p13764_p1 = pnand %p13763_p0, %p13757_p11 }
  0x21   :  { %13767 = shalt.err (!%p13764_p1)
}
  0x22   :  { %s13800_s0 = smov 256   ;;  %s13801_s21 = smov 16  }
  0x23   :  { %37 = dma.hbm_to_vmem [thread:$0]  %s16527_s1, 2048, %s32_s12, [#allocation6], %s13800_s0, %s13800_s0, %s13801_s21  }
  0x24   :  { %13790 = dma.done.wait [#allocation3], 2048  }
  0x25   :  { %13791 = vsyncadd [#allocation3], 4294965248 }
  0x26   :  { %13792 = dma.done.wait [#allocation6], 2048  }
  0x27   :  { %13793 = vsyncadd [#allocation6], 4294965248  ;;  %v16534_v0 = vmov 0.0   ;;  %v69_v1 = vld [vmem:[#allocation5 + $0x8] sm:$0xff]  ;;  %v71_v2 = vld [vmem:[#allocation5 + $0x18] sm:$0xff]  ;;  %vm96_vm0 = vcmask 523264   ;;  %v16533_v41 = vlaneseq }
  0x28   :  { %209 = vmatprep.mubr.f32.mxu0 %v16534_v0  ;;  %12630 = vmatprep.subr.mxu1 %v16534_v0  ;;  %v68_v3 = vld [vmem:[#allocation5] sm:$0xff]  ;;  %v13310_v4 = vpack.c.bf16 %v71_v2, %v69_v1  ;;  %v70_v5 = vld [vmem:[#allocation5 + $0x10] sm:$0xff]  ;;  %v73_v6 = vld [vmem:[#allocation5 + $0x28] sm:$0xff]  ;;  %vm13803_vm1 = vmmov 0   ;;  %s13804_s25 = smov 64   ;;  %s13806_s26 = smov 112  }
  0x29   :  { %v75_v7 = vld [vmem:[#allocation5 + $0x38] sm:$0xff]  ;;  %v13312_v8 = vpack.c.bf16 %v70_v5, %v68_v3  ;;  %v72_v10 = vld [vmem:[#allocation5 + $0x20] sm:$0xff]  ;;  %v74_v11 = vld [vmem:[#allocation5 + $0x30] sm:$0xff]  ;;  %v13907_v42 = vshrl.u32 %v16533_v41, 7  ;;  %12632 = vmatprep.mubr.msk.f32.mxu1 %vm13803_vm1, %v16534_v0  ;;  %vm309_vm2 = vcmask 130048   ;;  %vm1539_vm3 = vcmask 64512  }
  0x2a   :  { %v13314_v9 = vpack.c.bf16 %v75_v7, %v73_v6  ;;  %v77_v12 = vld [vmem:[#allocation5 + $0x48] sm:$0xff]  ;;  %13311 = vmatprep.subr.bf16.mxu0 %v13310_v4  ;;  %v79_v13 = vld [vmem:[#allocation5 + $0x58] sm:$0xff]  ;;  %v13316_v14 = vpack.c.bf16 %v74_v11, %v72_v10  ;;  %v76_v16 = vld [vmem:[#allocation5 + $0x40] sm:$0xff]  ;;  %s13807_s27 = smov 32   ;;  %s13808_s28 = smov 96   ;;  %vm11045_vm4 = vcmask 392192  }
  0x2b   :  { %13313 = vmatpush1.bf16.msra.mxu0 %v13312_v8  ;;  %v13318_v15 = vpack.c.bf16 %v79_v13, %v77_v12  ;;  %v78_v17 = vld [vmem:[#allocation5 + $0x50] sm:$0xff]  ;;  %v81_v18 = vld [vmem:[#allocation5 + $0x68] sm:$0xff]  ;;  %v83_v19 = vld [vmem:[#allocation5 + $0x78] sm:$0xff]  ;;  %16558 = vst [vmem:[#allocation11_spill] sm:$0xff] %v13907_v42  ;;  %v13914_v43 = vsub.s32 0, %v13907_v42  ;;  %v13920_v45 = vsub.s32 1, %v13907_v42 }
  0x2c   :  { %13315 = vmatprep.subr.bf16.mxu0 %v13314_v9  ;;  %v13320_v20 = vpack.c.bf16 %v78_v17, %v76_v16  ;;  %v13322_v21 = vpack.c.bf16 %v83_v19, %v81_v18  ;;  %v80_v22 = vld [vmem:[#allocation5 + $0x60] sm:$0xff]  ;;  %v82_v23 = vld [vmem:[#allocation5 + $0x70] sm:$0xff]  ;;  %v53_v26 = vld [vmem:[#allocation2 + $0x8] sm:$0xff]  ;;  %s13809_s29 = smov 80   ;;  %vm11028_vm5 = vcmask 261120   ;;  %vm11439_vm6 = vcmask 1041409  }
  0x2d   :  { %v13324_v24 = vpack.c.bf16 %v82_v23, %v80_v22  ;;  %v52_v25 = vld [vmem:[#allocation2] sm:$0xff]  ;;  %v54_v27 = vld [vmem:[#allocation2 + $0x10] sm:$0xff]  ;;  %v55_v28 = vld [vmem:[#allocation2 + $0x18] sm:$0xff]  ;;  %16559 = vst [vmem:[#allocation12_spill] sm:$0xff] %v13914_v43  ;;  %vm11441_vm7 = vcmask 1042434   ;;  %vm11443_vm8 = vcmask 1043459  }
  0x2e   :  { %v56_v29 = vld [vmem:[#allocation2 + $0x20] sm:$0xff]  ;;  %v57_v30 = vld [vmem:[#allocation2 + $0x28] sm:$0xff]  ;;  %v58_v31 = vld [vmem:[#allocation2 + $0x30] sm:$0xff]  ;;  %16560 = vst [vmem:[#allocation13_spill] sm:$0xff] %v13920_v45  ;;  %vm11445_vm9 = vcmask 1044484   ;;  %vm11447_vm10 = vcmask 1045509  }
  0x2f   :  { %13317 = vmatpush1.bf16.msra.mxu0 %v13316_v14  ;;  %v59_v32 = vld [vmem:[#allocation2 + $0x38] sm:$0xff]  ;;  %v60_v33 = vld [vmem:[#allocation2 + $0x40] sm:$0xff]  ;;  %v61_v34 = vld [vmem:[#allocation2 + $0x48] sm:$0xff]  ;;  %vm11449_vm11 = vcmask 1046534   ;;  %vm11451_vm12 = vcmask 1047559  }
  0x30   :  { %13319 = vmatprep.subr.bf16.mxu0 %v13318_v15  ;;  %v62_v35 = vld [vmem:[#allocation2 + $0x50] sm:$0xff]  ;;  %v63_v36 = vld [vmem:[#allocation2 + $0x58] sm:$0xff]  ;;  %v64_v37 = vld [vmem:[#allocation2 + $0x60] sm:$0xff] }
  0x31   :  { %v65_v38 = vld [vmem:[#allocation2 + $0x68] sm:$0xff]  ;;  %v66_v39 = vld [vmem:[#allocation2 + $0x70] sm:$0xff]  ;;  %v67_v40 = vld [vmem:[#allocation2 + $0x78] sm:$0xff] }
  0x32   :  { %v84_v44 = vld [vmem:[%s16528_s2] sm:$0x3]  ;;  %s13805_s2 = smov 48  }
  0x33   :  { %13321 = vmatpush1.bf16.msra.mxu0 %v13320_v20  ;;  %v13923_v46 = vrot.slane %v84_v44, %v13914_v43  ;;  %v13926_v47 = vrot.slane %v84_v44, %v13920_v45 }
  0x34   :  { %13323 = vmatprep.subr.bf16.mxu0 %v13322_v21 }
  0x37   :  { %13325 = vmatpush1.bf16.msra.mxu0 %v13324_v24 }
  0x38   :  { %12725 = vmatprep.subr.mxu0 %v16534_v0 }
  0x3a   :  { %12124 = vmatmul.mubr.msk.f32.vlgmr.msra.gmra.mrb[0].mxu0 %vm96_vm0, %v52_v25 }
  0x3b   :  { %215 = vmatprep.mubr.f32.mxu0 %v16534_v0 }
  0x3e   :  { %12125 = vmatmul.mubr.msk.f32.gmra.mrb[2].mxu0 %vm96_vm0, %v53_v26 }
  0x3f   :  { %221 = vmatprep.mubr.f32.mxu0 %v16534_v0 }
  0x42   :  { %12126 = vmatmul.mubr.msk.f32.gmra.mrb[4].mxu0 %vm96_vm0, %v54_v27 }
  0x43   :  { %227 = vmatprep.mubr.f32.mxu0 %v16534_v0 }
  0x46   :  { %12127 = vmatmul.mubr.msk.f32.gmra.mrb[6].mxu0 %vm96_vm0, %v55_v28 }
  0x47   :  { %233 = vmatprep.mubr.f32.mxu0 %v16534_v0 }
  0x4a   :  { %12128 = vmatmul.mubr.msk.f32.gmra.mrb[8].mxu0 %vm96_vm0, %v56_v29 }
  0x4b   :  { %239 = vmatprep.mubr.f32.mxu0 %v16534_v0 }
  0x4e   :  { %12129 = vmatmul.mubr.msk.f32.gmra.mrb[10].mxu0 %vm96_vm0, %v57_v30 }
  0x4f   :  { %245 = vmatprep.mubr.f32.mxu0 %v16534_v0 }
  0x52   :  { %12130 = vmatmul.mubr.msk.f32.gmra.mrb[12].mxu0 %vm96_vm0, %v58_v31 }
  0x53   :  { %251 = vmatprep.mubr.f32.mxu0 %v16534_v0 }
  0x56   :  { %12131 = vmatmul.mubr.msk.f32.gmra.mrb[14].mxu0 %vm96_vm0, %v59_v32 }
  0x57   :  { %257 = vmatprep.mubr.f32.mxu0 %v16534_v0 }
  0x5a   :  { %12132 = vmatmul.mubr.msk.f32.gmra.mrb[16].mxu0 %vm96_vm0, %v60_v33 }
  0x5b   :  { %263 = vmatprep.mubr.f32.mxu0 %v16534_v0 }
  0x5e   :  { %12133 = vmatmul.mubr.msk.f32.gmra.mrb[18].mxu0 %vm96_vm0, %v61_v34 }
  0x5f   :  { %269 = vmatprep.mubr.f32.mxu0 %v16534_v0 }
  0x62   :  { %12134 = vmatmul.mubr.msk.f32.gmra.mrb[20].mxu0 %vm96_vm0, %v62_v35 }
  0x63   :  { %275 = vmatprep.mubr.f32.mxu0 %v16534_v0 }
  0x66   :  { %12135 = vmatmul.mubr.msk.f32.gmra.mrb[22].mxu0 %vm96_vm0, %v63_v36 }
  0x67   :  { %281 = vmatprep.mubr.f32.mxu0 %v16534_v0 }
  0x6a   :  { %12136 = vmatmul.mubr.msk.f32.gmra.mrb[24].mxu0 %vm96_vm0, %v64_v37 }
  0x6b   :  { %287 = vmatprep.mubr.f32.mxu0 %v16534_v0 }
  0x6e   :  { %12137 = vmatmul.mubr.msk.f32.gmra.mrb[26].mxu0 %vm96_vm0, %v65_v38 }
  0x6f   :  { %293 = vmatprep.mubr.f32.mxu0 %v16534_v0 }
  0x72   :  { %12138 = vmatmul.mubr.msk.f32.gmra.mrb[28].mxu0 %vm96_vm0, %v66_v39 }
  0x73   :  { %299 = vmatprep.mubr.f32.mxu0 %v16534_v0 }
  0x76   :  { %12139 = vmatmul.mubr.msk.f32.gmra.mrb[30].mxu0 %vm96_vm0, %v67_v40 }
  0x77   :  { %12727 = vmatprep.mubr.msk.f32.mxu0 %vm13803_vm1, %v16534_v0 }
 0x10d   :  { %v211_v48 = vpop.f32.mrb[0].mxu0 }
 0x10e   :  { %v13929_v49 = vadd.f32 %v211_v48, %v13923_v46  ;;  %v213_v50 = vpop.f32.mrb[1].mxu0 }
 0x10f   :  { %v13932_v51 = vadd.f32 %v213_v50, %v13926_v47 }
 0x110   :  { %307 = vrot.lane.b32.xlu0 %v13929_v49, %s13804_s25 }
 0x111   :  { %v217_v52 = vpop.f32.mrb[2].mxu0 }
 0x112   :  { %v13937_v53 = vadd.f32 %v217_v52, %v13923_v46  ;;  %v219_v54 = vpop.f32.mrb[3].mxu0 }
 0x113   :  { %v13940_v55 = vadd.f32 %v219_v54, %v13926_v47 }
 0x114   :  { %385 = vrot.lane.b32.xlu0 %v13937_v53, %s13804_s25 }
 0x115   :  { %v223_v56 = vpop.f32.mrb[4].mxu0 }
 0x116   :  { %v13945_v57 = vadd.f32 %v223_v56, %v13923_v46  ;;  %v225_v58 = vpop.f32.mrb[5].mxu0 }
 0x117   :  { %v13948_v59 = vadd.f32 %v225_v58, %v13926_v47 }
 0x118   :  { %16561 = vst [vmem:[#allocation14_spill] sm:$0xff] %v13945_v57  ;;  %462 = vrot.lane.b32.xlu1 %v13945_v57, %s13804_s25 }
 0x119   :  { %v229_v60 = vpop.f32.mrb[6].mxu0 }
 0x11a   :  { %v13953_v61 = vadd.f32 %v229_v60, %v13923_v46  ;;  %v231_v62 = vpop.f32.mrb[7].mxu0 }
 0x11b   :  { %v13956_v63 = vadd.f32 %v231_v62, %v13926_v47 }
 0x11c   :  { %16562 = vst [vmem:[#allocation15_spill] sm:$0xff] %v13953_v61  ;;  %539 = vrot.lane.b32.xlu1 %v13953_v61, %s13804_s25 }
 0x11d   :  { %v235_v1 = vpop.f32.mrb[8].mxu0  ;;  %12726 = vmatpush3.msra.mxu0 %v13956_v63 }
 0x11e   :  { %v13962_v2 = vadd.f32 %v235_v1, %v13923_v46  ;;  %v237_v3 = vpop.f32.mrb[9].mxu0  ;;  %12735 = vmatprep.subr.mxu0 %v16534_v0 }
 0x11f   :  { %v13966_v4 = vadd.f32 %v237_v3, %v13926_v47 }
 0x120   :  { %16563 = vst [vmem:[#allocation16_spill] sm:$0xff] %v13962_v2  ;;  %616 = vrot.lane.b32.xlu0 %v13962_v2, %s13804_s25 }
 0x121   :  { %v241_v5 = vpop.f32.mrb[10].mxu0 }
 0x122   :  { %v13971_v6 = vadd.f32 %v241_v5, %v13923_v46  ;;  %v243_v7 = vpop.f32.mrb[11].mxu0 }
 0x123   :  { %v13974_v8 = vadd.f32 %v243_v7, %v13926_v47 }
 0x124   :  { %16564 = vst [vmem:[#allocation17_spill] sm:$0xff] %v13971_v6  ;;  %693 = vrot.lane.b32.xlu1 %v13971_v6, %s13804_s25 }
 0x125   :  { %v247_v9 = vpop.f32.mrb[12].mxu0 }
 0x126   :  { %v13979_v10 = vadd.f32 %v247_v9, %v13923_v46  ;;  %v249_v11 = vpop.f32.mrb[13].mxu0 }
 0x127   :  { %v13982_v12 = vadd.f32 %v249_v11, %v13926_v47 }
 0x128   :  { %770 = vrot.lane.b32.xlu0 %v13979_v10, %s13804_s25 }
 0x129   :  { %v253_v13 = vpop.f32.mrb[14].mxu0 }
 0x12a   :  { %v13987_v14 = vadd.f32 %v253_v13, %v13923_v46  ;;  %v255_v15 = vpop.f32.mrb[15].mxu0 }
 0x12b   :  { %v13990_v16 = vadd.f32 %v255_v15, %v13926_v47 }
 0x12c   :  { %847 = vrot.lane.b32.xlu1 %v13987_v14, %s13804_s25 }
 0x12d   :  { %v259_v17 = vpop.f32.mrb[16].mxu0 }
 0x12e   :  { %v13995_v18 = vadd.f32 %v259_v17, %v13923_v46  ;;  %v261_v19 = vpop.f32.mrb[17].mxu0 }
 0x12f   :  { %v13998_v20 = vadd.f32 %v261_v19, %v13926_v47 }
 0x130   :  { %924 = vrot.lane.b32.xlu0 %v13995_v18, %s13804_s25 }
 0x131   :  { %v265_v21 = vpop.f32.mrb[18].mxu0 }
 0x132   :  { %v14003_v22 = vadd.f32 %v265_v21, %v13923_v46  ;;  %v267_v23 = vpop.f32.mrb[19].mxu0 }
 0x133   :  { %v14006_v24 = vadd.f32 %v267_v23, %v13926_v47 }
 0x134   :  { %1001 = vrot.lane.b32.xlu1 %v14003_v22, %s13804_s25 }
 0x135   :  { %v271_v25 = vpop.f32.mrb[20].mxu0 }
 0x136   :  { %v14011_v26 = vadd.f32 %v271_v25, %v13923_v46  ;;  %v273_v27 = vpop.f32.mrb[21].mxu0 }
 0x137   :  { %v14014_v28 = vadd.f32 %v273_v27, %v13926_v47 }
 0x138   :  { %1078 = vrot.lane.b32.xlu0 %v14011_v26, %s13804_s25 }
 0x139   :  { %16565 = vst [vmem:[#allocation18_spill] sm:$0xff] %v14014_v28  ;;  %v277_v29 = vpop.f32.mrb[22].mxu0 }
 0x13a   :  { %v14019_v30 = vadd.f32 %v277_v29, %v13923_v46  ;;  %v279_v31 = vpop.f32.mrb[23].mxu0 }
 0x13b   :  { %v14022_v32 = vadd.f32 %v279_v31, %v13926_v47 }
 0x13c   :  { %1155 = vrot.lane.b32.xlu1 %v14019_v30, %s13804_s25 }
 0x13d   :  { %16566 = vst [vmem:[#allocation19_spill] sm:$0xff] %v14022_v32  ;;  %v283_v33 = vpop.f32.mrb[24].mxu0 }
 0x13e   :  { %v14027_v34 = vadd.f32 %v283_v33, %v13923_v46  ;;  %v285_v35 = vpop.f32.mrb[25].mxu0 }
 0x13f   :  { %v14030_v36 = vadd.f32 %v285_v35, %v13926_v47 }
 0x140   :  { %1232 = vrot.lane.b32.xlu0 %v14027_v34, %s13804_s25 }
 0x141   :  { %16567 = vst [vmem:[#allocation20_spill] sm:$0xff] %v14030_v36  ;;  %v289_v37 = vpop.f32.mrb[26].mxu0 }
 0x142   :  { %v14035_v38 = vadd.f32 %v289_v37, %v13923_v46  ;;  %v291_v39 = vpop.f32.mrb[27].mxu0 }
 0x143   :  { %v14038_v40 = vadd.f32 %v291_v39, %v13926_v47 }
 0x144   :  { %1309 = vrot.lane.b32.xlu1 %v14035_v38, %s13804_s25 }
 0x145   :  { %16568 = vst [vmem:[#allocation21_spill] sm:$0xff] %v14038_v40  ;;  %v295_v44 = vpop.f32.mrb[28].mxu0 }
 0x146   :  { %v14043_v48 = vadd.f32 %v295_v44, %v13923_v46  ;;  %v297_v50 = vpop.f32.mrb[29].mxu0 }
 0x147   :  { %v14046_v52 = vadd.f32 %v297_v50, %v13926_v47 }
 0x148   :  { %1386 = vrot.lane.b32.xlu0 %v14043_v48, %s13804_s25 }
 0x149   :  { %16569 = vst [vmem:[#allocation22_spill] sm:$0xff] %v14046_v52  ;;  %v301_v54 = vpop.f32.mrb[30].mxu0 }
 0x14a   :  { %v14051_v56 = vadd.f32 %v301_v54, %v13923_v46  ;;  %v303_v58 = vpop.f32.mrb[31].mxu0 }
 0x14b   :  { %v14054_v60 = vadd.f32 %v303_v58, %v13926_v47 }
 0x14c   :  { %1463 = vrot.lane.b32.xlu1 %v14051_v56, %s13804_s25  ;;  %2964 = vrot.lane.b32.xlu0 %v13937_v53, %s13805_s2 }
 0x14d   :  { %16570 = vst [vmem:[#allocation23_spill] sm:$0xff] %v14054_v60 }
 0x150   :  { %2886 = vrot.lane.b32.xlu1 %v13929_v49, %s13805_s2  ;;  %3042 = vrot.lane.b32.xlu0 %v13945_v57, %s13805_s2 }
 0x154   :  { %2884 = vrot.lane.b32.xlu1 %v13929_v49, %s13806_s26  ;;  %3040 = vrot.lane.b32.xlu0 %v13945_v57, %s13806_s26 }
 0x158   :  { %2962 = vrot.lane.b32.xlu1 %v13937_v53, %s13806_s26 }
 0x15c   :  { %3120 = vrot.lane.b32.xlu1 %v13953_v61, %s13805_s2 }
 0x160   :  { %3118 = vrot.lane.b32.xlu1 %v13953_v61, %s13806_s26 }
 0x182   :  { %v308_v46 = vpop.permute.xlu0 %307 }
 0x183   :  { %12631 = vmatpush3.xpose.msk.msra.mxu1 %vm309_vm2, %v308_v46 }
 0x184   :  { %12635 = vmatprep.subr.mxu1 %v16534_v0 }
 0x186   :  { %12633 = vmatmul.mubr.msk.f32.vlgmr.msra.gmra.mrb[0].mxu1 %vm309_vm2, %v13929_v49  ;;  %v386_v47 = vpop.permute.xlu0 %385 }
 0x187   :  { %12636 = vmatpush3.xpose.msk.msra.mxu1 %vm309_vm2, %v386_v47  ;;  %12637 = vmatprep.mubr.msk.f32.mxu1 %vm13803_vm1, %v16534_v0 }
 0x188   :  { %12640 = vmatprep.subr.mxu1 %v16534_v0 }
 0x18a   :  { %v463_v62 = vpop.permute.xlu1 %462  ;;  %12638 = vmatmul.mubr.msk.f32.vlgmr.msra.gmra.mrb[2].mxu1 %vm309_vm2, %v13937_v53 }
 0x18b   :  { %12641 = vmatpush3.xpose.msk.msra.mxu1 %vm309_vm2, %v463_v62  ;;  %12642 = vmatprep.mubr.msk.f32.mxu1 %vm13803_vm1, %v16534_v0 }
 0x18c   :  { %12645 = vmatprep.subr.mxu1 %v16534_v0 }
 0x18e   :  { %v540_v1 = vpop.permute.xlu1 %539  ;;  %12643 = vmatmul.mubr.msk.f32.vlgmr.msra.gmra.mrb[4].mxu1 %vm309_vm2, %v13945_v57 }
 0x18f   :  { %12646 = vmatpush3.xpose.msk.msra.mxu1 %vm309_vm2, %v540_v1  ;;  %12647 = vmatprep.mubr.msk.f32.mxu1 %vm13803_vm1, %v16534_v0 }
 0x190   :  { %12650 = vmatprep.subr.mxu1 %v16534_v0 }
 0x192   :  { %12648 = vmatmul.mubr.msk.f32.vlgmr.msra.gmra.mrb[6].mxu1 %vm309_vm2, %v13953_v61  ;;  %v617_v3 = vpop.permute.xlu0 %616 }
 0x193   :  { %12651 = vmatpush3.xpose.msk.msra.mxu1 %vm309_vm2, %v617_v3  ;;  %12652 = vmatprep.mubr.msk.f32.mxu1 %vm13803_vm1, %v16534_v0 }
 0x194   :  { %12655 = vmatprep.subr.mxu1 %v16534_v0 }
 0x196   :  { %v694_v5 = vpop.permute.xlu1 %693  ;;  %12653 = vmatmul.mubr.msk.f32.vlgmr.msra.gmra.mrb[8].mxu1 %vm309_vm2, %v13962_v2 }
 0x197   :  { %12656 = vmatpush3.xpose.msk.msra.mxu1 %vm309_vm2, %v694_v5  ;;  %12657 = vmatprep.mubr.msk.f32.mxu1 %vm13803_vm1, %v16534_v0 }
 0x198   :  { %12660 = vmatprep.subr.mxu1 %v16534_v0 }
 0x19a   :  { %12658 = vmatmul.mubr.msk.f32.vlgmr.msra.gmra.mrb[10].mxu1 %vm309_vm2, %v13971_v6  ;;  %v771_v7 = vpop.permute.xlu0 %770 }
 0x19b   :  { %12661 = vmatpush3.xpose.msk.msra.mxu1 %vm309_vm2, %v771_v7  ;;  %12662 = vmatprep.mubr.msk.f32.mxu1 %vm13803_vm1, %v16534_v0 }
 0x19c   :  { %12665 = vmatprep.subr.mxu1 %v16534_v0 }
 0x19e   :  { %v848_v9 = vpop.permute.xlu1 %847  ;;  %12663 = vmatmul.mubr.msk.f32.vlgmr.msra.gmra.mrb[12].mxu1 %vm309_vm2, %v13979_v10 }
 0x19f   :  { %12666 = vmatpush3.xpose.msk.msra.mxu1 %vm309_vm2, %v848_v9  ;;  %12667 = vmatprep.mubr.msk.f32.mxu1 %vm13803_vm1, %v16534_v0 }
 0x1a0   :  { %12670 = vmatprep.subr.mxu1 %v16534_v0 }
 0x1a2   :  { %12668 = vmatmul.mubr.msk.f32.vlgmr.msra.gmra.mrb[14].mxu1 %vm309_vm2, %v13987_v14  ;;  %v925_v11 = vpop.permute.xlu0 %924 }
 0x1a3   :  { %12671 = vmatpush3.xpose.msk.msra.mxu1 %vm309_vm2, %v925_v11  ;;  %12672 = vmatprep.mubr.msk.f32.mxu1 %vm13803_vm1, %v16534_v0 }
 0x1a4   :  { %12675 = vmatprep.subr.mxu1 %v16534_v0 }
 0x1a6   :  { %v1002_v13 = vpop.permute.xlu1 %1001  ;;  %12673 = vmatmul.mubr.msk.f32.vlgmr.msra.gmra.mrb[16].mxu1 %vm309_vm2, %v13995_v18 }
 0x1a7   :  { %12676 = vmatpush3.xpose.msk.msra.mxu1 %vm309_vm2, %v1002_v13  ;;  %12677 = vmatprep.mubr.msk.f32.mxu1 %vm13803_vm1, %v16534_v0 }
 0x1a8   :  { %12680 = vmatprep.subr.mxu1 %v16534_v0 }
 0x1aa   :  { %12678 = vmatmul.mubr.msk.f32.vlgmr.msra.gmra.mrb[18].mxu1 %vm309_vm2, %v14003_v22  ;;  %v1079_v15 = vpop.permute.xlu0 %1078 }
 0x1ab   :  { %12681 = vmatpush3.xpose.msk.msra.mxu1 %vm309_vm2, %v1079_v15  ;;  %12682 = vmatprep.mubr.msk.f32.mxu1 %vm13803_vm1, %v16534_v0 }
 0x1ac   :  { %12685 = vmatprep.subr.mxu1 %v16534_v0 }
 0x1ae   :  { %v1156_v17 = vpop.permute.xlu1 %1155  ;;  %12683 = vmatmul.mubr.msk.f32.vlgmr.msra.gmra.mrb[20].mxu1 %vm309_vm2, %v14011_v26 }
 0x1af   :  { %12686 = vmatpush3.xpose.msk.msra.mxu1 %vm309_vm2, %v1156_v17  ;;  %12687 = vmatprep.mubr.msk.f32.mxu1 %vm13803_vm1, %v16534_v0 }
 0x1b0   :  { %12690 = vmatprep.subr.mxu1 %v16534_v0 }
 0x1b2   :  { %12688 = vmatmul.mubr.msk.f32.vlgmr.msra.gmra.mrb[22].mxu1 %vm309_vm2, %v14019_v30  ;;  %v1233_v19 = vpop.permute.xlu0 %1232 }
 0x1b3   :  { %12691 = vmatpush3.xpose.msk.msra.mxu1 %vm309_vm2, %v1233_v19  ;;  %12692 = vmatprep.mubr.msk.f32.mxu1 %vm13803_vm1, %v16534_v0 }
 0x1b4   :  { %12695 = vmatprep.subr.mxu1 %v16534_v0 }
 0x1b6   :  { %v1310_v21 = vpop.permute.xlu1 %1309  ;;  %12693 = vmatmul.mubr.msk.f32.vlgmr.msra.gmra.mrb[24].mxu1 %vm309_vm2, %v14027_v34 }
 0x1b7   :  { %12696 = vmatpush3.xpose.msk.msra.mxu1 %vm309_vm2, %v1310_v21  ;;  %12697 = vmatprep.mubr.msk.f32.mxu1 %vm13803_vm1, %v16534_v0 }
 0x1b8   :  { %12700 = vmatprep.subr.mxu1 %v16534_v0 }
 0x1ba   :  { %12698 = vmatmul.mubr.msk.f32.vlgmr.msra.gmra.mrb[26].mxu1 %vm309_vm2, %v14035_v38  ;;  %v1387_v23 = vpop.permute.xlu0 %1386 }
 0x1bb   :  { %12701 = vmatpush3.xpose.msk.msra.mxu1 %vm309_vm2, %v1387_v23  ;;  %12702 = vmatprep.mubr.msk.f32.mxu1 %vm13803_vm1, %v16534_v0 }
 0x1bc   :  { %12705 = vmatprep.subr.mxu1 %v16534_v0 }
 0x1be   :  { %v1464_v25 = vpop.permute.xlu1 %1463  ;;  %12703 = vmatmul.mubr.msk.f32.vlgmr.msra.gmra.mrb[28].mxu1 %vm309_vm2, %v14043_v48 }
 0x1bf   :  { %12706 = vmatpush3.xpose.msk.msra.mxu1 %vm309_vm2, %v1464_v25  ;;  %12707 = vmatprep.mubr.msk.f32.mxu1 %vm13803_vm1, %v16534_v0 }
 0x1c0   :  { %12710 = vmatprep.subr.mxu1 %v16534_v0 }
 0x1c2   :  { %12708 = vmatmul.mubr.msk.f32.vlgmr.msra.gmra.mrb[30].mxu1 %vm309_vm2, %v14051_v56 }
 0x1c3   :  { %12711 = vmatpush3.msra.mxu1 %v13932_v51  ;;  %12712 = vmatprep.mubr.msk.f32.mxu1 %vm13803_vm1, %v16534_v0 }
 0x1c4   :  { %12715 = vmatprep.subr.mxu1 %v16534_v0 }
 0x259   :  { %v14172_v27 = vpop.f32.mrb[0].mxu1 }
 0x25a   :  { %v12634_v29 = vpop.f32.mrb[1].mxu1  ;;  %v1540_v31 = vsel %vm1539_vm3, %v14172_v27, -inf }
 0x25b   :  { %1541 = vmax.xlane.f32.xlu0 %v1540_v31 }
 0x25d   :  { %v14176_v33 = vpop.f32.mrb[2].mxu1 }
 0x25e   :  { %v12639_v35 = vpop.f32.mrb[3].mxu1  ;;  %v1543_v37 = vsel %vm1539_vm3, %v14176_v33, -inf }
 0x25f   :  { %1544 = vmax.xlane.f32.xlu1 %v1543_v37 }
 0x261   :  { %v14180_v39 = vpop.f32.mrb[4].mxu1 }
 0x262   :  { %v12644_v44 = vpop.f32.mrb[5].mxu1  ;;  %v1546_v50 = vsel %vm1539_vm3, %v14180_v39, -inf }
 0x263   :  { %1547 = vmax.xlane.f32.xlu0 %v1546_v50 }
 0x265   :  { %v14184_v54 = vpop.f32.mrb[6].mxu1 }
 0x266   :  { %v12649_v58 = vpop.f32.mrb[7].mxu1  ;;  %v1549_v46 = vsel %vm1539_vm3, %v14184_v54, -inf }
 0x267   :  { %1550 = vmax.xlane.f32.xlu0 %v1549_v46 }
 0x269   :  { %v14188_v47 = vpop.f32.mrb[8].mxu1 }
 0x26a   :  { %v12654_v62 = vpop.f32.mrb[9].mxu1  ;;  %v1552_v1 = vsel %vm1539_vm3, %v14188_v47, -inf }
 0x26b   :  { %1553 = vmax.xlane.f32.xlu1 %v1552_v1 }
 0x26d   :  { %v14192_v3 = vpop.f32.mrb[10].mxu1 }
 0x26e   :  { %v12659_v5 = vpop.f32.mrb[11].mxu1  ;;  %v1555_v7 = vsel %vm1539_vm3, %v14192_v3, -inf }
 0x26f   :  { %1556 = vmax.xlane.f32.xlu0 %v1555_v7 }
 0x271   :  { %v14196_v9 = vpop.f32.mrb[12].mxu1 }
 0x272   :  { %v12664_v11 = vpop.f32.mrb[13].mxu1  ;;  %v1558_v13 = vsel %vm1539_vm3, %v14196_v9, -inf }
 0x273   :  { %1559 = vmax.xlane.f32.xlu1 %v1558_v13 }
 0x275   :  { %v14200_v15 = vpop.f32.mrb[14].mxu1 }
 0x276   :  { %v12669_v17 = vpop.f32.mrb[15].mxu1  ;;  %v1561_v19 = vsel %vm1539_vm3, %v14200_v15, -inf }
 0x277   :  { %1562 = vmax.xlane.f32.xlu0 %v1561_v19 }
 0x279   :  { %v14204_v21 = vpop.f32.mrb[16].mxu1 }
 0x27a   :  { %v12674_v23 = vpop.f32.mrb[17].mxu1  ;;  %v1564_v25 = vsel %vm1539_vm3, %v14204_v21, -inf }
 0x27b   :  { %1565 = vmax.xlane.f32.xlu1 %v1564_v25 }
 0x27d   :  { %v14208_v29 = vpop.f32.mrb[18].mxu1 }
 0x27e   :  { %v12679_v31 = vpop.f32.mrb[19].mxu1  ;;  %v1567_v35 = vsel %vm1539_vm3, %v14208_v29, -inf }
 0x27f   :  { %1568 = vmax.xlane.f32.xlu0 %v1567_v35 }
 0x281   :  { %v14212_v37 = vpop.f32.mrb[20].mxu1 }
 0x282   :  { %v12684_v44 = vpop.f32.mrb[21].mxu1  ;;  %v1570_v50 = vsel %vm1539_vm3, %v14212_v37, -inf }
 0x283   :  { %1571 = vmax.xlane.f32.xlu1 %v1570_v50  ;;  %v14240_v50 = vpop.permute.xlu1 %2886 }
 0x285   :  { %v14216_v58 = vpop.f32.mrb[22].mxu1 }
 0x286   :  { %v12689_v46 = vpop.f32.mrb[23].mxu1  ;;  %v1573_v62 = vsel %vm1539_vm3, %v14216_v58, -inf }
 0x287   :  { %1574 = vmax.xlane.f32.xlu0 %v1573_v62  ;;  %v14246_v46 = vpop.permute.xlu1 %2884  ;;  %v14248_v62 = vpop.permute.xlu0 %2964 }
 0x289   :  { %v14220_v1 = vpop.f32.mrb[24].mxu1 }
 0x28a   :  { %v12694_v5 = vpop.f32.mrb[25].mxu1  ;;  %v1576_v7 = vsel %vm1539_vm3, %v14220_v1, -inf }
 0x28b   :  { %1577 = vmax.xlane.f32.xlu1 %v1576_v7  ;;  %v14252_v5 = vpop.permute.xlu1 %2962  ;;  %v14254_v7 = vpop.permute.xlu0 %3042 }
 0x28c   :  { %16571 = vst [vmem:[#allocation24_spill] sm:$0xff] %v14252_v5 }
 0x28d   :  { %v14224_v11 = vpop.f32.mrb[26].mxu1 }
 0x28e   :  { %v12699_v13 = vpop.f32.mrb[27].mxu1  ;;  %v1579_v17 = vsel %vm1539_vm3, %v14224_v11, -inf }
 0x28f   :  { %1580 = vmax.xlane.f32.xlu0 %v1579_v17  ;;  %v14258_v13 = vpop.permute.xlu1 %3120  ;;  %v14260_v17 = vpop.permute.xlu0 %3040 }
 0x290   :  { %16572 = vst [vmem:[#allocation25_spill] sm:$0xff] %v14258_v13  ;;  %16573 = vst [vmem:[#allocation26_spill] sm:$0xff] %v14260_v17 }
 0x291   :  { %v14228_v19 = vpop.f32.mrb[28].mxu1 }
 0x292   :  { %v12704_v23 = vpop.f32.mrb[29].mxu1  ;;  %v1582_v35 = vsel %vm1539_vm3, %v14228_v19, -inf }
 0x293   :  { %v14262_v23 = vpop.permute.xlu1 %3118 }
 0x294   :  { %16574 = vst [vmem:[#allocation27_spill] sm:$0xff] %v14262_v23 }
 0x295   :  { %v14230_v25 = vpop.f32.mrb[30].mxu1 }
 0x296   :  { %v12709_v31 = vpop.f32.mrb[31].mxu1  ;;  %v1585_v44 = vsel %vm1539_vm3, %v14230_v25, -inf }
 0x29c   :  { %3276 = vrot.lane.b32.xlu1 %v13971_v6, %s13805_s2 }
 0x2a5   :  { %3198 = vrot.lane.b32.xlu0 %v13962_v2, %s13805_s2 }
 0x2c0   :  { %1583 = vmax.xlane.f32.xlu1 %v1582_v35 }
 0x2c4   :  { %1586 = vmax.xlane.f32.xlu0 %v1585_v44 }
 0x2d1   :  { %3274 = vrot.lane.b32.xlu1 %v13971_v6, %s13806_s26 }
 0x2d5   :  { %3432 = vrot.lane.b32.xlu1 %v13987_v14, %s13805_s2 }
 0x2da   :  { %3196 = vrot.lane.b32.xlu0 %v13962_v2, %s13806_s26 }
 0x2de   :  { %3354 = vrot.lane.b32.xlu0 %v13979_v10, %s13805_s2 }
 0x2e8   :  { %v1542_v31 = vpop.xlane.xlu0 %1541 }
 0x2e9   :  { %v1588_v35 = vsub.f32 %v14172_v27, %v1542_v31 }
 0x2eb   :  { %v1604_v44 = vmul.f32 1.442695, %v1588_v35 }
 0x2ec   :  { %v1545_v41 = vpop.xlane.xlu1 %1544 }
 0x2ed   :  { %13368 = vpow2.f32 %v1604_v44  ;;  %v1589_v0 = vsub.f32 %v14176_v33, %v1545_v41 }
 0x2ef   :  { %v1606_v45 = vmul.f32 1.442695, %v1589_v0 }
 0x2f0   :  { %v1548_v43 = vpop.xlane.xlu0 %1547 }
 0x2f1   :  { %13370 = vpow2.f32 %v1606_v45  ;;  %v1590_v42 = vsub.f32 %v14180_v39, %v1548_v43 }
 0x2f3   :  { %v1608_v2 = vmul.f32 1.442695, %v1590_v42 }
 0x2f4   :  { %v1551_v6 = vpop.xlane.xlu0 %1550 }
 0x2f5   :  { %13372 = vpow2.f32 %v1608_v2  ;;  %v1591_v13 = vsub.f32 %v14184_v54, %v1551_v6 }
 0x2f7   :  { %v14268_v17 = vpop.eup %13368  ;;  %v1610_v23 = vmul.f32 1.442695, %v1591_v13 }
 0x2f8   :  { %v1554_v5 = vpop.xlane.xlu1 %1553  ;;  %v1636_v27 = vsel %vm1539_vm3, %v14268_v17, 0.0 }
 0x2f9   :  { %13374 = vpow2.f32 %v1610_v23  ;;  %v1592_v41 = vsub.f32 %v14188_v47, %v1554_v5  ;;  %1637 = vadd.xlane.f32.xlu1 %v1636_v27 }
 0x2fb   :  { %v14273_v0 = vpop.eup %13370  ;;  %v1612_v45 = vmul.f32 1.442695, %v1592_v41 }
 0x2fc   :  { %v1557_v43 = vpop.xlane.xlu0 %1556  ;;  %v1639_v42 = vsel %vm1539_vm3, %v14273_v0, 0.0 }
 0x2fd   :  { %13376 = vpow2.f32 %v1612_v45  ;;  %v1593_v2 = vsub.f32 %v14192_v3, %v1557_v43  ;;  %1640 = vadd.xlane.f32.xlu0 %v1639_v42 }
 0x2ff   :  { %v14278_v6 = vpop.eup %13372  ;;  %v1614_v33 = vmul.f32 1.442695, %v1593_v2 }
 0x300   :  { %v1560_v39 = vpop.xlane.xlu1 %1559  ;;  %v1642_v54 = vsel %vm1539_vm3, %v14278_v6, 0.0 }
 0x301   :  { %13378 = vpow2.f32 %v1614_v33  ;;  %v1594_v47 = vsub.f32 %v14196_v9, %v1560_v39  ;;  %1643 = vadd.xlane.f32.xlu1 %v1642_v54 }
 0x303   :  { %v14283_v5 = vpop.eup %13374  ;;  %v1616_v13 = vmul.f32 1.442695, %v1594_v47 }
 0x304   :  { %v1563_v23 = vpop.xlane.xlu0 %1562  ;;  %v1645_v31 = vsel %vm1539_vm3, %v14283_v5, 0.0 }
 0x305   :  { %13380 = vpow2.f32 %v1616_v13  ;;  %v1595_v3 = vsub.f32 %v14200_v15, %v1563_v23  ;;  %1646 = vadd.xlane.f32.xlu0 %v1645_v31 }
 0x307   :  { %v14288_v35 = vpop.eup %13376  ;;  %v1618_v44 = vmul.f32 1.442695, %v1595_v3 }
 0x308   :  { %v1566_v27 = vpop.xlane.xlu1 %1565  ;;  %v1648_v41 = vsel %vm1539_vm3, %v14288_v35, 0.0 }
 0x309   :  { %13382 = vpow2.f32 %v1618_v44  ;;  %v1596_v9 = vsub.f32 %v14204_v21, %v1566_v27  ;;  %1649 = vadd.xlane.f32.xlu1 %v1648_v41 }
 0x30b   :  { %v14293_v45 = vpop.eup %13378  ;;  %v1620_v43 = vmul.f32 1.442695, %v1596_v9 }
 0x30c   :  { %v1569_v42 = vpop.xlane.xlu0 %1568  ;;  %v1651_v2 = vsel %vm1539_vm3, %v14293_v45, 0.0 }
 0x30d   :  { %13384 = vpow2.f32 %v1620_v43  ;;  %v1597_v15 = vsub.f32 %v14208_v29, %v1569_v42  ;;  %1652 = vadd.xlane.f32.xlu0 %v1651_v2 }
 0x30f   :  { %v14298_v33 = vpop.eup %13380  ;;  %v1622_v39 = vmul.f32 1.442695, %v1597_v15 }
 0x310   :  { %v1572_v54 = vpop.xlane.xlu1 %1571  ;;  %v1654_v47 = vsel %vm1539_vm3, %v14298_v33, 0.0 }
 0x311   :  { %13386 = vpow2.f32 %v1622_v39  ;;  %v1598_v21 = vsub.f32 %v14212_v37, %v1572_v54  ;;  %1655 = vadd.xlane.f32.xlu1 %v1654_v47 }
 0x313   :  { %v14303_v13 = vpop.eup %13382  ;;  %v1624_v23 = vmul.f32 1.442695, %v1598_v21 }
 0x314   :  { %v1575_v31 = vpop.xlane.xlu0 %1574  ;;  %v1657_v3 = vsel %vm1539_vm3, %v14303_v13, 0.0 }
 0x315   :  { %13388 = vpow2.f32 %v1624_v23  ;;  %v1599_v29 = vsub.f32 %v14216_v58, %v1575_v31  ;;  %1658 = vadd.xlane.f32.xlu0 %v1657_v3 }
 0x317   :  { %v14308_v44 = vpop.eup %13384  ;;  %v1626_v27 = vmul.f32 1.442695, %v1599_v29 }
 0x318   :  { %v1578_v41 = vpop.xlane.xlu1 %1577  ;;  %v1660_v9 = vsel %vm1539_vm3, %v14308_v44, 0.0 }
 0x319   :  { %13390 = vpow2.f32 %v1626_v27  ;;  %v1600_v37 = vsub.f32 %v14220_v1, %v1578_v41  ;;  %1661 = vadd.xlane.f32.xlu1 %v1660_v9 }
 0x31b   :  { %v14313_v43 = vpop.eup %13386  ;;  %v1628_v42 = vmul.f32 1.442695, %v1600_v37 }
 0x31c   :  { %v1581_v2 = vpop.xlane.xlu0 %1580  ;;  %v1663_v15 = vsel %vm1539_vm3, %v14313_v43, 0.0  ;;  %v14334_v29 = vpop.permute.xlu1 %3276 }
 0x31d   :  { %13392 = vpow2.f32 %v1628_v42  ;;  %v1601_v58 = vsub.f32 %v14224_v11, %v1581_v2  ;;  %1664 = vadd.xlane.f32.xlu0 %v1663_v15 }
 0x31f   :  { %v14318_v39 = vpop.eup %13388  ;;  %v1630_v54 = vmul.f32 1.442695, %v1601_v58 }
 0x320   :  { %v1666_v47 = vsel %vm1539_vm3, %v14318_v39, 0.0  ;;  %v14336_v27 = vpop.permute.xlu0 %3198 }
 0x321   :  { %13394 = vpow2.f32 %v1630_v54  ;;  %1667 = vadd.xlane.f32.xlu1 %v1666_v47 }
 0x323   :  { %v14322_v1 = vpop.eup %13390 }
 0x324   :  { %v1669_v21 = vsel %vm1539_vm3, %v14322_v1, 0.0 }
 0x325   :  { %1670 = vadd.xlane.f32.xlu0 %v1669_v21 }
 0x327   :  { %v14326_v23 = vpop.eup %13392 }
 0x328   :  { %v1672_v11 = vsel %vm1539_vm3, %v14326_v23, 0.0 }
 0x329   :  { %1673 = vadd.xlane.f32.xlu1 %v1672_v11 }
 0x32b   :  { %v14330_v31 = vpop.eup %13394 }
 0x32c   :  { %v1675_v3 = vsel %vm1539_vm3, %v14330_v31, 0.0 }
 0x32d   :  { %1676 = vadd.xlane.f32.xlu0 %v1675_v3 }
 0x34d   :  { %v1584_v41 = vpop.xlane.xlu1 %1583 }
 0x34e   :  { %v1602_v9 = vsub.f32 %v14228_v19, %v1584_v41 }
 0x350   :  { %v1632_v37 = vmul.f32 1.442695, %v1602_v9 }
 0x351   :  { %v1587_v42 = vpop.xlane.xlu0 %1586  ;;  %v14358_v19 = vpop.permute.xlu1 %3274 }
 0x352   :  { %13396 = vpow2.f32 %v1632_v37  ;;  %v1603_v2 = vsub.f32 %v14230_v25, %v1587_v42 }
 0x354   :  { %v1634_v15 = vmul.f32 1.442695, %v1603_v2 }
 0x355   :  { %v14364_v25 = vpop.permute.xlu0 %3196  ;;  %v14368_v11 = vpop.permute.xlu1 %3432 }
 0x356   :  { %13398 = vpow2.f32 %v1634_v15 }
 0x359   :  { %v14374_v3 = vpop.permute.xlu0 %3354 }
 0x35c   :  { %v14340_v58 = vpop.eup %13396 }
 0x35d   :  { %v1678_v54 = vsel %vm1539_vm3, %v14340_v58, 0.0 }
 0x35e   :  { %1679 = vadd.xlane.f32.xlu1 %v1678_v54 }
 0x360   :  { %v14344_v47 = vpop.eup %13398 }
 0x361   :  { %v1681_v21 = vsel %vm1539_vm3, %v14344_v47, 0.0 }
 0x362   :  { %1682 = vadd.xlane.f32.xlu0 %v1681_v21  ;;  %v16575_v21 = vmov 0.0  }
 0x36f   :  { %3430 = vrot.lane.b32.xlu1 %v13987_v14, %s13806_s26 }
 0x373   :  { %3588 = vrot.lane.b32.xlu1 %v14003_v22, %s13805_s2 }
 0x377   :  { %3586 = vrot.lane.b32.xlu1 %v14003_v22, %s13806_s26 }
 0x378   :  { %3352 = vrot.lane.b32.xlu0 %v13979_v10, %s13806_s26 }
 0x37b   :  { %3744 = vrot.lane.b32.xlu1 %v14019_v30, %s13805_s2 }
 0x37c   :  { %3510 = vrot.lane.b32.xlu0 %v13995_v18, %s13805_s2 }
 0x37f   :  { %3742 = vrot.lane.b32.xlu1 %v14019_v30, %s13806_s26 }
 0x380   :  { %3508 = vrot.lane.b32.xlu0 %v13995_v18, %s13806_s26 }
 0x383   :  { %3900 = vrot.lane.b32.xlu1 %v14035_v38, %s13805_s2 }
 0x384   :  { %3666 = vrot.lane.b32.xlu0 %v14011_v26, %s13805_s2 }
 0x386   :  { %v1638_v41 = vpop.xlane.xlu1 %1637 }
 0x387   :  { %13400 = vrcp.f32 %v1638_v41  ;;  %3898 = vrot.lane.b32.xlu1 %v14035_v38, %s13806_s26 }
 0x388   :  { %3664 = vrot.lane.b32.xlu0 %v14011_v26, %s13806_s26 }
 0x38a   :  { %v1641_v9 = vpop.xlane.xlu0 %1640 }
 0x38b   :  { %13402 = vrcp.f32 %v1641_v9  ;;  %4056 = vrot.lane.b32.xlu1 %v14051_v56, %s13805_s2 }
 0x38c   :  { %3822 = vrot.lane.b32.xlu0 %v14027_v34, %s13805_s2 }
 0x38e   :  { %v1644_v37 = vpop.xlane.xlu1 %1643 }
 0x38f   :  { %13404 = vrcp.f32 %v1644_v37  ;;  %4054 = vrot.lane.b32.xlu1 %v14051_v56, %s13806_s26 }
 0x390   :  { %3820 = vrot.lane.b32.xlu0 %v14027_v34, %s13806_s26 }
 0x391   :  { %v13401_v42 = vpop.eup %13400 }
 0x392   :  { %v1647_v2 = vpop.xlane.xlu0 %1646  ;;  %v1700_v15 = vmul.f32 %v13401_v42, %v14268_v17 }
 0x393   :  { %13406 = vrcp.f32 %v1647_v2  ;;  %4309 = vrot.lane.b32.xlu1 %v13932_v51, %s13806_s26 }
 0x394   :  { %12713 = vmatmul.mubr.msk.f32.vlgmr.msra.gmra.mrb[32].mxu1 %vm1539_vm3, %v1700_v15  ;;  %3978 = vrot.lane.b32.xlu0 %v14043_v48, %s13805_s2 }
 0x395   :  { %v13403_v54 = vpop.eup %13402  ;;  %12716 = vmatpush3.msra.mxu1 %v13940_v55  ;;  %12717 = vmatprep.mubr.msk.f32.mxu1 %vm13803_vm1, %v16575_v21 }
 0x396   :  { %v1650_v41 = vpop.xlane.xlu1 %1649  ;;  %12720 = vmatprep.subr.mxu1 %v16575_v21  ;;  %v1701_v17 = vmul.f32 %v13403_v54, %v14273_v0 }
 0x397   :  { %13408 = vrcp.f32 %v1650_v41  ;;  %4540 = vrot.lane.b32.xlu1 %v13956_v63, %s13806_s26 }
 0x398   :  { %3976 = vrot.lane.b32.xlu0 %v14043_v48, %s13806_s26  ;;  %12718 = vmatmul.mubr.msk.f32.vlgmr.msra.gmra.mrb[34].mxu1 %vm1539_vm3, %v1701_v17 }
 0x399   :  { %v13405_v9 = vpop.eup %13404  ;;  %12721 = vmatpush3.msra.mxu1 %v13948_v59  ;;  %12722 = vmatprep.mubr.msk.f32.mxu1 %vm13803_vm1, %v16575_v21 }
 0x39a   :  { %v1653_v37 = vpop.xlane.xlu0 %1652  ;;  %12730 = vmatprep.subr.mxu1 %v16575_v21  ;;  %v1702_v0 = vmul.f32 %v13405_v9, %v14278_v6 }
 0x39b   :  { %13410 = vrcp.f32 %v1653_v37  ;;  %4694 = vrot.lane.b32.xlu1 %v13974_v8, %s13806_s26 }
 0x39c   :  { %4386 = vrot.lane.b32.xlu0 %v13940_v55, %s13806_s26  ;;  %12723 = vmatmul.mubr.msk.f32.vlgmr.msra.gmra.mrb[36].mxu1 %vm1539_vm3, %v1702_v0 }
 0x39d   :  { %v13407_v42 = vpop.eup %13406  ;;  %12731 = vmatpush3.msra.mxu1 %v13966_v4  ;;  %12732 = vmatprep.mubr.msk.f32.mxu1 %vm13803_vm1, %v16575_v21 }
 0x39e   :  { %v1703_v2 = vmul.f32 %v13407_v42, %v14283_v5  ;;  %v1656_v15 = vpop.xlane.xlu1 %1655  ;;  %12740 = vmatprep.subr.mxu1 %v16575_v21 }
 0x39f   :  { %13412 = vrcp.f32 %v1656_v15  ;;  %4771 = vrot.lane.b32.xlu1 %v13982_v12, %s13806_s26 }
 0x3a0   :  { %4463 = vrot.lane.b32.xlu0 %v13948_v59, %s13806_s26  ;;  %12728 = vmatmul.mubr.msk.f32.vlgmr.msra.gmra.mrb[32].mxu0 %vm1539_vm3, %v1703_v2 }
 0x3a1   :  { %v13409_v6 = vpop.eup %13408  ;;  %12736 = vmatpush3.msra.mxu0 %v13974_v8  ;;  %12737 = vmatprep.mubr.msk.f32.mxu0 %vm13803_vm1, %v16575_v21 }
 0x3a2   :  { %v1659_v54 = vpop.xlane.xlu0 %1658  ;;  %v1704_v5 = vmul.f32 %v13409_v6, %v14288_v35  ;;  %12745 = vmatprep.subr.mxu0 %v16575_v21 }
 0x3a3   :  { %13414 = vrcp.f32 %v1659_v54  ;;  %4848 = vrot.lane.b32.xlu1 %v13990_v16, %s13806_s26 }
 0x3a4   :  { %4617 = vrot.lane.b32.xlu0 %v13966_v4, %s13806_s26  ;;  %12733 = vmatmul.mubr.msk.f32.vlgmr.msra.gmra.mrb[38].mxu1 %vm1539_vm3, %v1704_v5 }
 0x3a5   :  { %v13411_v41 = vpop.eup %13410  ;;  %12741 = vmatpush3.msra.mxu1 %v13982_v12  ;;  %12742 = vmatprep.mubr.msk.f32.mxu1 %vm13803_vm1, %v16575_v21 }
 0x3a6   :  { %v1662_v17 = vpop.xlane.xlu1 %1661  ;;  %v1705_v35 = vmul.f32 %v13411_v41, %v14293_v45  ;;  %12750 = vmatprep.subr.mxu1 %v16575_v21 }
 0x3a7   :  { %13416 = vrcp.f32 %v1662_v17  ;;  %5002 = vrot.lane.b32.xlu1 %v14006_v24, %s13806_s26 }
 0x3a8   :  { %4925 = vrot.lane.b32.xlu0 %v13998_v20, %s13806_s26  ;;  %12738 = vmatmul.mubr.msk.f32.vlgmr.msra.gmra.mrb[34].mxu0 %vm1539_vm3, %v1705_v35 }
 0x3a9   :  { %v13413_v9 = vpop.eup %13412  ;;  %12746 = vmatpush3.msra.mxu0 %v13990_v16  ;;  %12747 = vmatprep.mubr.msk.f32.mxu0 %vm13803_vm1, %v16575_v21 }
 0x3aa   :  { %v1665_v37 = vpop.xlane.xlu0 %1664  ;;  %v1706_v45 = vmul.f32 %v13413_v9, %v14298_v33  ;;  %12755 = vmatprep.subr.mxu0 %v16575_v21 }
 0x3ab   :  { %13418 = vrcp.f32 %v1665_v37  ;;  %5156 = vrot.lane.b32.xlu1 %v14022_v32, %s13806_s26 }
 0x3ac   :  { %5079 = vrot.lane.b32.xlu0 %v14014_v28, %s13806_s26  ;;  %12743 = vmatmul.mubr.msk.f32.vlgmr.msra.gmra.mrb[40].mxu1 %vm1539_vm3, %v1706_v45 }
 0x3ad   :  { %v13415_v0 = vpop.eup %13414  ;;  %12751 = vmatpush3.msra.mxu1 %v13998_v20  ;;  %12752 = vmatprep.mubr.msk.f32.mxu1 %vm13803_vm1, %v16575_v21 }
 0x3ae   :  { %v1668_v42 = vpop.xlane.xlu1 %1667  ;;  %v1707_v33 = vmul.f32 %v13415_v0, %v14303_v13  ;;  %12760 = vmatprep.subr.mxu1 %v16575_v21 }
 0x3af   :  { %13420 = vrcp.f32 %v1668_v42  ;;  %5310 = vrot.lane.b32.xlu1 %v14038_v40, %s13806_s26 }
 0x3b0   :  { %5233 = vrot.lane.b32.xlu0 %v14030_v36, %s13806_s26  ;;  %12748 = vmatmul.mubr.msk.f32.vlgmr.msra.gmra.mrb[36].mxu0 %vm1539_vm3, %v1707_v33 }
 0x3b1   :  { %v13417_v2 = vpop.eup %13416  ;;  %12756 = vmatpush3.msra.mxu0 %v14006_v24  ;;  %12757 = vmatprep.mubr.msk.f32.mxu0 %vm13803_vm1, %v16575_v21 }
 0x3b2   :  { %v1671_v15 = vpop.xlane.xlu0 %1670  ;;  %v1708_v13 = vmul.f32 %v13417_v2, %v14308_v44  ;;  %12765 = vmatprep.subr.mxu0 %v16575_v21 }
 0x3b3   :  { %13422 = vrcp.f32 %v1671_v15  ;;  %5464 = vrot.lane.b32.xlu1 %v14054_v60, %s13806_s26 }
 0x3b4   :  { %5387 = vrot.lane.b32.xlu0 %v14046_v52, %s13806_s26  ;;  %12753 = vmatmul.mubr.msk.f32.vlgmr.msra.gmra.mrb[42].mxu1 %vm1539_vm3, %v1708_v13 }
 0x3b5   :  { %v13419_v6 = vpop.eup %13418  ;;  %12761 = vmatpush3.msra.mxu1 %v14014_v28  ;;  %12762 = vmatprep.mubr.msk.f32.mxu1 %vm13803_vm1, %v16575_v21 }
 0x3b6   :  { %v1674_v54 = vpop.xlane.xlu1 %1673  ;;  %v1709_v44 = vmul.f32 %v13419_v6, %v14313_v43  ;;  %12770 = vmatprep.subr.mxu1 %v16575_v21 }
 0x3b7   :  { %13424 = vrcp.f32 %v1674_v54  ;;  %5620 = vrot.lane.b32.xlu1 %v13937_v53, %s13807_s27 }
 0x3b8   :  { %5542 = vrot.lane.b32.xlu0 %v13929_v49, %s13807_s27  ;;  %12758 = vmatmul.mubr.msk.f32.vlgmr.msra.gmra.mrb[38].mxu0 %vm1539_vm3, %v1709_v44 }
 0x3b9   :  { %v13421_v5 = vpop.eup %13420  ;;  %12766 = vmatpush3.msra.mxu0 %v14022_v32  ;;  %12767 = vmatprep.mubr.msk.f32.mxu0 %vm13803_vm1, %v16575_v21 }
 0x3ba   :  { %v1677_v41 = vpop.xlane.xlu0 %1676  ;;  %v1710_v43 = vmul.f32 %v13421_v5, %v14318_v39  ;;  %12775 = vmatprep.subr.mxu0 %v16575_v21 }
 0x3bb   :  { %13426 = vrcp.f32 %v1677_v41  ;;  %5618 = vrot.lane.b32.xlu1 %v13937_v53, %s13808_s28 }
 0x3bc   :  { %5540 = vrot.lane.b32.xlu0 %v13929_v49, %s13808_s28  ;;  %12763 = vmatmul.mubr.msk.f32.vlgmr.msra.gmra.mrb[44].mxu1 %vm1539_vm3, %v1710_v43  ;;  %v16579_v43 = vld [vmem:[#allocation27_spill] sm:$0xff] }
 0x3bd   :  { %v13423_v17 = vpop.eup %13422  ;;  %12771 = vmatpush3.msra.mxu1 %v14030_v36  ;;  %12772 = vmatprep.mubr.msk.f32.mxu1 %vm13803_vm1, %v16575_v21 }
 0x3be   :  { %v1711_v39 = vmul.f32 %v13423_v17, %v14322_v1  ;;  %12780 = vmatprep.subr.mxu1 %v16575_v21 }
 0x3bf   :  { %5776 = vrot.lane.b32.xlu1 %v13953_v61, %s13807_s27 }
 0x3c0   :  { %5698 = vrot.lane.b32.xlu0 %v13945_v57, %s13807_s27  ;;  %12768 = vmatmul.mubr.msk.f32.vlgmr.msra.gmra.mrb[40].mxu0 %vm1539_vm3, %v1711_v39 }
 0x3c1   :  { %v13425_v35 = vpop.eup %13424  ;;  %12776 = vmatpush3.msra.mxu0 %v14038_v40  ;;  %12777 = vmatprep.mubr.msk.f32.mxu0 %vm13803_vm1, %v16575_v21 }
 0x3c2   :  { %v1712_v9 = vmul.f32 %v13425_v35, %v14326_v23  ;;  %12785 = vmatprep.subr.mxu0 %v16575_v21 }
 0x3c3   :  { %5774 = vrot.lane.b32.xlu1 %v13953_v61, %s13808_s28 }
 0x3c4   :  { %5696 = vrot.lane.b32.xlu0 %v13945_v57, %s13808_s28  ;;  %12773 = vmatmul.mubr.msk.f32.vlgmr.msra.gmra.mrb[46].mxu1 %vm1539_vm3, %v1712_v9 }
 0x3c5   :  { %v13427_v1 = vpop.eup %13426  ;;  %12781 = vmatpush3.msra.mxu1 %v14046_v52  ;;  %12782 = vmatprep.mubr.msk.f32.mxu1 %vm13803_vm1, %v16575_v21 }
 0x3c6   :  { %v1713_v37 = vmul.f32 %v13427_v1, %v14330_v31  ;;  %12790 = vmatprep.subr.mxu1 %v16575_v21 }
 0x3c8   :  { %12778 = vmatmul.mubr.msk.f32.vlgmr.msra.gmra.mrb[42].mxu0 %vm1539_vm3, %v1713_v37 }
 0x3c9   :  { %12786 = vmatpush3.msra.mxu0 %v14054_v60  ;;  %12787 = vmatprep.mubr.msk.f32.mxu0 %vm13803_vm1, %v16575_v21 }
 0x3ca   :  { %12795 = vmatprep.subr.mxu0 %v16575_v21 }
 0x3eb   :  { %v1680_v23 = vpop.xlane.xlu1 %1679 }
 0x3ec   :  { %13428 = vrcp.f32 %v1680_v23 }
 0x3ef   :  { %v3431_v45 = vpop.permute.xlu1 %3430  ;;  %v1683_v0 = vpop.xlane.xlu0 %1682 }
 0x3f0   :  { %13430 = vrcp.f32 %v1683_v0 }
 0x3f3   :  { %v3589_v42 = vpop.permute.xlu1 %3588  ;;  %v3353_v33 = vpop.permute.xlu0 %3352 }
 0x3f6   :  { %v13429_v2 = vpop.eup %13428 }
 0x3f7   :  { %v3587_v31 = vpop.permute.xlu1 %3586  ;;  %v3511_v15 = vpop.permute.xlu0 %3510  ;;  %v1714_v13 = vmul.f32 %v13429_v2, %v14340_v58 }
 0x3f9   :  { %12783 = vmatmul.mubr.msk.f32.vlgmr.msra.gmra.mrb[48].mxu1 %vm1539_vm3, %v1714_v13 }
 0x3fa   :  { %v13431_v6 = vpop.eup %13430  ;;  %12791 = vmatpush3.xpose.msk.msra.mxu1 %vm309_vm2, %v14240_v50  ;;  %12792 = vmatprep.mubr.msk.f32.mxu1 %vm13803_vm1, %v16575_v21 }
 0x3fb   :  { %v3745_v54 = vpop.permute.xlu1 %3744  ;;  %v3509_v44 = vpop.permute.xlu0 %3508  ;;  %12800 = vmatprep.subr.mxu1 %v16575_v21  ;;  %v1715_v5 = vmul.f32 %v13431_v6, %v14344_v47  ;;  %v16576_v47 = vld [vmem:[#allocation24_spill] sm:$0xff] }
 0x3fd   :  { %12788 = vmatmul.mubr.msk.f32.vlgmr.msra.gmra.mrb[44].mxu0 %vm1539_vm3, %v1715_v5  ;;  %12793 = vmatmul.mubr.msk.f32.vlgmr.msra.gmra.mrb[50].mxu1 %vm309_vm2, %v14246_v46  ;;  %v16577_v46 = vld [vmem:[#allocation26_spill] sm:$0xff] }
 0x3fe   :  { %12796 = vmatpush3.xpose.msk.msra.mxu0 %vm309_vm2, %v14248_v62  ;;  %12801 = vmatpush3.xpose.msk.msra.mxu1 %vm309_vm2, %v14254_v7  ;;  %v16578_v62 = vld [vmem:[#allocation25_spill] sm:$0xff] }
 0x3ff   :  { %v3743_v50 = vpop.permute.xlu1 %3742  ;;  %v3667_v58 = vpop.permute.xlu0 %3666  ;;  %12797 = vmatprep.mubr.msk.f32.mxu0 %vm13803_vm1, %v16575_v21  ;;  %12802 = vmatprep.mubr.msk.f32.mxu1 %vm13803_vm1, %v16575_v21 }
 0x400   :  { %12805 = vmatprep.subr.mxu0 %v16575_v21  ;;  %12810 = vmatprep.subr.mxu1 %v16575_v21 }
 0x401   :  { %12798 = vmatmul.mubr.msk.f32.vlgmr.msra.gmra.mrb[46].mxu0 %vm309_vm2, %v16576_v47  ;;  %12803 = vmatmul.mubr.msk.f32.vlgmr.msra.gmra.mrb[52].mxu1 %vm309_vm2, %v16577_v46 }
 0x402   :  { %12806 = vmatpush3.xpose.msk.msra.mxu0 %vm309_vm2, %v16578_v62  ;;  %12811 = vmatpush3.xpose.msk.msra.mxu1 %vm309_vm2, %v14336_v27 }
 0x403   :  { %v3901_v7 = vpop.permute.xlu1 %3900  ;;  %v3665_v41 = vpop.permute.xlu0 %3664  ;;  %12807 = vmatprep.mubr.msk.f32.mxu0 %vm13803_vm1, %v16575_v21  ;;  %12812 = vmatprep.mubr.msk.f32.mxu1 %vm13803_vm1, %v16575_v21 }
 0x404   :  { %12815 = vmatprep.subr.mxu0 %v16575_v21  ;;  %12820 = vmatprep.subr.mxu1 %v16575_v21 }
 0x405   :  { %12808 = vmatmul.mubr.msk.f32.vlgmr.msra.gmra.mrb[48].mxu0 %vm309_vm2, %v16579_v43  ;;  %12813 = vmatmul.mubr.msk.f32.vlgmr.msra.gmra.mrb[54].mxu1 %vm309_vm2, %v14364_v25 }
 0x406   :  { %12816 = vmatpush3.xpose.msk.msra.mxu0 %vm309_vm2, %v14334_v29  ;;  %12821 = vmatpush3.xpose.msk.msra.mxu1 %vm309_vm2, %v14374_v3 }
 0x407   :  { %v3899_v27 = vpop.permute.xlu1 %3898  ;;  %v3823_v17 = vpop.permute.xlu0 %3822  ;;  %12817 = vmatprep.mubr.msk.f32.mxu0 %vm13803_vm1, %v16575_v21  ;;  %12822 = vmatprep.mubr.msk.f32.mxu1 %vm13803_vm1, %v16575_v21 }
 0x408   :  { %12825 = vmatprep.subr.mxu0 %v16575_v21  ;;  %12830 = vmatprep.subr.mxu1 %v16575_v21 }
 0x409   :  { %12818 = vmatmul.mubr.msk.f32.vlgmr.msra.gmra.mrb[50].mxu0 %vm309_vm2, %v14358_v19  ;;  %12823 = vmatmul.mubr.msk.f32.vlgmr.msra.gmra.mrb[56].mxu1 %vm309_vm2, %v3353_v33 }
 0x40a   :  { %12826 = vmatpush3.xpose.msk.msra.mxu0 %vm309_vm2, %v14368_v11  ;;  %12831 = vmatpush3.xpose.msk.msra.mxu1 %vm309_vm2, %v3511_v15 }
 0x40b   :  { %v3821_v29 = vpop.permute.xlu0 %3820  ;;  %12827 = vmatprep.mubr.msk.f32.mxu0 %vm13803_vm1, %v16575_v21  ;;  %12832 = vmatprep.mubr.msk.f32.mxu1 %vm13803_vm1, %v16575_v21  ;;  %v4057_v25 = vpop.permute.xlu1 %4056 }
 0x40c   :  { %12835 = vmatprep.subr.mxu0 %v16575_v21  ;;  %12840 = vmatprep.subr.mxu1 %v16575_v21 }
 0x40d   :  { %12828 = vmatmul.mubr.msk.f32.vlgmr.msra.gmra.mrb[52].mxu0 %vm309_vm2, %v3431_v45  ;;  %12833 = vmatmul.mubr.msk.f32.vlgmr.msra.gmra.mrb[58].mxu1 %vm309_vm2, %v3509_v44 }
 0x40e   :  { %12836 = vmatpush3.xpose.msk.msra.mxu0 %vm309_vm2, %v3589_v42  ;;  %12841 = vmatpush3.xpose.msk.msra.mxu1 %vm309_vm2, %v3667_v58 }
 0x40f   :  { %12837 = vmatprep.mubr.msk.f32.mxu0 %vm13803_vm1, %v16575_v21  ;;  %12842 = vmatprep.mubr.msk.f32.mxu1 %vm13803_vm1, %v16575_v21  ;;  %v3979_v19 = vpop.permute.xlu0 %3978  ;;  %v4055_v11 = vpop.permute.xlu1 %4054 }
 0x410   :  { %12845 = vmatprep.subr.mxu0 %v16575_v21  ;;  %12850 = vmatprep.subr.mxu1 %v16575_v21 }
 0x411   :  { %12838 = vmatmul.mubr.msk.f32.vlgmr.msra.gmra.mrb[54].mxu0 %vm309_vm2, %v3587_v31  ;;  %12843 = vmatmul.mubr.msk.f32.vlgmr.msra.gmra.mrb[60].mxu1 %vm309_vm2, %v3665_v41 }
 0x412   :  { %12846 = vmatpush3.xpose.msk.msra.mxu0 %vm309_vm2, %v3745_v54  ;;  %12851 = vmatpush3.xpose.msk.msra.mxu1 %vm309_vm2, %v3823_v17 }
 0x413   :  { %12847 = vmatprep.mubr.msk.f32.mxu0 %vm13803_vm1, %v16575_v21  ;;  %12852 = vmatprep.mubr.msk.f32.mxu1 %vm13803_vm1, %v16575_v21  ;;  %v3977_v3 = vpop.permute.xlu0 %3976  ;;  %v4310_v39 = vpop.permute.xlu1 %4309 }
 0x414   :  { %12855 = vmatprep.subr.mxu0 %v16575_v21  ;;  %12860 = vmatprep.subr.mxu1 %v16575_v21 }
 0x415   :  { %12848 = vmatmul.mubr.msk.f32.vlgmr.msra.gmra.mrb[56].mxu0 %vm309_vm2, %v3743_v50  ;;  %12853 = vmatmul.mubr.msk.f32.vlgmr.msra.gmra.mrb[62].mxu1 %vm309_vm2, %v3821_v29 }
 0x416   :  { %12856 = vmatpush3.xpose.msk.msra.mxu0 %vm309_vm2, %v3901_v7  ;;  %12861 = vmatpush3.xpose.msk.msra.mxu1 %vm309_vm2, %v3979_v19 }
 0x417   :  { %12857 = vmatprep.mubr.msk.f32.mxu0 %vm13803_vm1, %v16575_v21  ;;  %12862 = vmatprep.mubr.msk.f32.mxu1 %vm13803_vm1, %v16575_v21  ;;  %v4387_v35 = vpop.permute.xlu0 %4386 }
 0x418   :  { %12865 = vmatprep.subr.mxu0 %v16575_v21  ;;  %12870 = vmatprep.subr.mxu1 %v16575_v21 }
 0x419   :  { %12858 = vmatmul.mubr.msk.f32.vlgmr.msra.gmra.mrb[58].mxu0 %vm309_vm2, %v3899_v27  ;;  %12863 = vmatmul.mubr.msk.f32.vlgmr.msra.gmra.mrb[64].mxu1 %vm309_vm2, %v3977_v3 }
 0x41a   :  { %12866 = vmatpush3.xpose.msk.msra.mxu0 %vm309_vm2, %v4057_v25  ;;  %12871 = vmatpush3.msra.mxu1 %v4310_v39 }
 0x41b   :  { %12867 = vmatprep.mubr.msk.f32.mxu0 %vm13803_vm1, %v16575_v21  ;;  %12875 = vmatprep.subr.mxu0 %v16575_v21 }
 0x41c   :  { %12872 = vmatprep.mubr.msk.f32.mxu1 %vm13803_vm1, %v16575_v21  ;;  %12880 = vmatprep.subr.mxu1 %v16575_v21 }
 0x41d   :  { %12868 = vmatmul.mubr.msk.f32.vlgmr.msra.gmra.mrb[60].mxu0 %vm309_vm2, %v4055_v11 }
 0x41e   :  { %12876 = vmatpush3.msra.mxu0 %v4387_v35  ;;  %12877 = vmatprep.mubr.msk.f32.mxu0 %vm13803_vm1, %v16575_v21 }
 0x41f   :  { %12885 = vmatprep.subr.mxu0 %v16575_v21 }
 0x467   :  { %v14628_v9 = vpop.f32.mrb[32].mxu1 }
 0x468   :  { %16580 = vst [vmem:[#allocation24_spill] sm:$0xff] %v14628_v9  ;;  %v12714_v1 = vpop.f32.mrb[33].mxu1  ;;  %v16596_v9 = vld [vmem:[#allocation17_spill] sm:$0xff] }
 0x46b   :  { %v14630_v37 = vpop.f32.mrb[34].mxu1 }
 0x46c   :  { %16581 = vst [vmem:[#allocation26_spill] sm:$0xff] %v14630_v37  ;;  %v12719_v23 = vpop.f32.mrb[35].mxu1 }
 0x46f   :  { %v14632_v45 = vpop.f32.mrb[36].mxu1 }
 0x470   :  { %16582 = vst [vmem:[#allocation25_spill] sm:$0xff] %v14632_v45  ;;  %v12724_v0 = vpop.f32.mrb[37].mxu1 }
 0x473   :  { %v14634_v42 = vpop.f32.mrb[32].mxu0 }
 0x474   :  { %16583 = vst [vmem:[#allocation27_spill] sm:$0xff] %v14634_v42  ;;  %v12729_v33 = vpop.f32.mrb[33].mxu0 }
 0x477   :  { %v14636_v2 = vpop.f32.mrb[38].mxu1 }
 0x478   :  { %16584 = vst [vmem:[#allocation28_spill] sm:$0xff] %v14636_v2  ;;  %v12734_v31 = vpop.f32.mrb[39].mxu1 }
 0x47b   :  { %v14638_v15 = vpop.f32.mrb[34].mxu0 }
 0x47c   :  { %16585 = vst [vmem:[#allocation29_spill] sm:$0xff] %v14638_v15  ;;  %v12739_v13 = vpop.f32.mrb[35].mxu0 }
 0x47f   :  { %v14640_v6 = vpop.f32.mrb[40].mxu1 }
 0x480   :  { %16586 = vst [vmem:[#allocation30_spill] sm:$0xff] %v14640_v6  ;;  %v12744_v54 = vpop.f32.mrb[41].mxu1 }
 0x483   :  { %v14642_v44 = vpop.f32.mrb[36].mxu0 }
 0x484   :  { %16587 = vst [vmem:[#allocation31_spill] sm:$0xff] %v14642_v44  ;;  %v12749_v5 = vpop.f32.mrb[37].mxu0 }
 0x487   :  { %v14644_v50 = vpop.f32.mrb[42].mxu1 }
 0x488   :  { %16588 = vst [vmem:[#allocation32_spill] sm:$0xff] %v14644_v50  ;;  %v12754_v58 = vpop.f32.mrb[43].mxu1 }
 0x48b   :  { %v14646_v47 = vpop.f32.mrb[38].mxu0 }
 0x48c   :  { %16589 = vst [vmem:[#allocation33_spill] sm:$0xff] %v14646_v47  ;;  %v12759_v46 = vpop.f32.mrb[39].mxu0 }
 0x48f   :  { %v14648_v62 = vpop.f32.mrb[44].mxu1 }
 0x490   :  { %16590 = vst [vmem:[#allocation34_spill] sm:$0xff] %v14648_v62  ;;  %v12764_v7 = vpop.f32.mrb[45].mxu1 }
 0x493   :  { %v14650_v41 = vpop.f32.mrb[40].mxu0 }
 0x494   :  { %16591 = vst [vmem:[#allocation35_spill] sm:$0xff] %v14650_v41  ;;  %v12769_v43 = vpop.f32.mrb[41].mxu0 }
 0x497   :  { %v14652_v27 = vpop.f32.mrb[46].mxu1 }
 0x498   :  { %16592 = vst [vmem:[#allocation36_spill] sm:$0xff] %v14652_v27  ;;  %v12774_v17 = vpop.f32.mrb[47].mxu1 }
 0x49b   :  { %v14654_v29 = vpop.f32.mrb[42].mxu0 }
 0x49c   :  { %16593 = vst [vmem:[#allocation37_spill] sm:$0xff] %v14654_v29  ;;  %v12779_v25 = vpop.f32.mrb[43].mxu0 }
 0x4cc   :  { %v14656_v19 = vpop.f32.mrb[48].mxu1 }
 0x4cd   :  { %16594 = vst [vmem:[#allocation38_spill] sm:$0xff] %v14656_v19  ;;  %v12784_v11 = vpop.f32.mrb[49].mxu1 }
 0x4d0   :  { %v14658_v3 = vpop.f32.mrb[44].mxu0  ;;  %v14660_v39 = vpop.f32.mrb[50].mxu1 }
 0x4d1   :  { %16595 = vst [vmem:[#allocation39_spill] sm:$0xff] %v14658_v3  ;;  %v12789_v35 = vpop.f32.mrb[45].mxu0  ;;  %v12794_v1 = vpop.f32.mrb[51].mxu1  ;;  %v4132_v23 = vsel %vm1539_vm3, %v14660_v39, -inf  ;;  %v16597_v3 = vld [vmem:[#allocation16_spill] sm:$0xff] }
 0x4d2   :  { %4133 = vmax.xlane.f32.xlu0 %v4132_v23 }
 0x4d4   :  { %v14664_v0 = vpop.f32.mrb[46].mxu0  ;;  %v14666_v33 = vpop.f32.mrb[52].mxu1 }
 0x4d5   :  { %v12799_v31 = vpop.f32.mrb[47].mxu0  ;;  %v12804_v13 = vpop.f32.mrb[53].mxu1  ;;  %v4138_v54 = vsel %vm1539_vm3, %v14666_v33, -inf  ;;  %v4135_v5 = vsel %vm1539_vm3, %v14664_v0, -inf }
 0x4d6   :  { %4139 = vmax.xlane.f32.xlu0 %v4138_v54  ;;  %4136 = vmax.xlane.f32.xlu1 %v4135_v5 }
 0x4d8   :  { %v14672_v58 = vpop.f32.mrb[48].mxu0  ;;  %v14674_v46 = vpop.f32.mrb[54].mxu1 }
 0x4d9   :  { %v12809_v7 = vpop.f32.mrb[49].mxu0  ;;  %v12814_v43 = vpop.f32.mrb[55].mxu1  ;;  %v4144_v17 = vsel %vm1539_vm3, %v14674_v46, -inf  ;;  %v4141_v25 = vsel %vm1539_vm3, %v14672_v58, -inf }
 0x4da   :  { %4145 = vmax.xlane.f32.xlu1 %v4144_v17  ;;  %4142 = vmax.xlane.f32.xlu0 %v4141_v25 }
 0x4dc   :  { %v14680_v11 = vpop.f32.mrb[50].mxu0  ;;  %v14682_v35 = vpop.f32.mrb[56].mxu1 }
 0x4dd   :  { %v12819_v1 = vpop.f32.mrb[51].mxu0  ;;  %v12824_v23 = vpop.f32.mrb[57].mxu1  ;;  %v4147_v31 = vsel %vm1539_vm3, %v14680_v11, -inf  ;;  %v4150_v13 = vsel %vm1539_vm3, %v14682_v35, -inf }
 0x4de   :  { %4148 = vmax.xlane.f32.xlu0 %v4147_v31  ;;  %4151 = vmax.xlane.f32.xlu1 %v4150_v13 }
 0x4e0   :  { %v14688_v54 = vpop.f32.mrb[52].mxu0  ;;  %v14690_v5 = vpop.f32.mrb[58].mxu1 }
 0x4e1   :  { %v12829_v7 = vpop.f32.mrb[53].mxu0  ;;  %v12834_v43 = vpop.f32.mrb[59].mxu1  ;;  %v4153_v17 = vsel %vm1539_vm3, %v14688_v54, -inf  ;;  %v4156_v25 = vsel %vm1539_vm3, %v14690_v5, -inf }
 0x4e2   :  { %4154 = vmax.xlane.f32.xlu0 %v4153_v17  ;;  %4157 = vmax.xlane.f32.xlu1 %v4156_v25 }
 0x4e4   :  { %v14696_v1 = vpop.f32.mrb[54].mxu0  ;;  %v14698_v23 = vpop.f32.mrb[60].mxu1 }
 0x4e5   :  { %v12839_v31 = vpop.f32.mrb[55].mxu0  ;;  %v12844_v13 = vpop.f32.mrb[61].mxu1  ;;  %v4159_v15 = vsel %vm1539_vm3, %v14696_v1, -inf  ;;  %v4162_v7 = vsel %vm1539_vm3, %v14698_v23, -inf }
 0x4e6   :  { %4160 = vmax.xlane.f32.xlu0 %v4159_v15  ;;  %4163 = vmax.xlane.f32.xlu1 %v4162_v7 }
 0x4e8   :  { %v14704_v43 = vpop.f32.mrb[56].mxu0  ;;  %v14706_v2 = vpop.f32.mrb[62].mxu1 }
 0x4e9   :  { %v12849_v17 = vpop.f32.mrb[57].mxu0  ;;  %v12854_v25 = vpop.f32.mrb[63].mxu1  ;;  %v4165_v42 = vsel %vm1539_vm3, %v14704_v43, -inf  ;;  %v4168_v31 = vsel %vm1539_vm3, %v14706_v2, -inf }
 0x4ea   :  { %4166 = vmax.xlane.f32.xlu0 %v4165_v42  ;;  %4169 = vmax.xlane.f32.xlu1 %v4168_v31  ;;  %v14724_v42 = vpop.permute.xlu1 %4540 }
 0x4ec   :  { %v14712_v13 = vpop.f32.mrb[58].mxu0  ;;  %v14714_v45 = vpop.f32.mrb[64].mxu1 }
 0x4ed   :  { %v12859_v15 = vpop.f32.mrb[59].mxu0  ;;  %v12864_v7 = vpop.f32.mrb[65].mxu1  ;;  %v4171_v37 = vsel %vm1539_vm3, %v14712_v13, -inf  ;;  %v4174_v31 = vsel %vm1539_vm3, %v14714_v45, -inf }
 0x4ee   :  { %4172 = vmax.xlane.f32.xlu0 %v4171_v37  ;;  %v14730_v7 = vpop.permute.xlu1 %4694  ;;  %v14732_v37 = vpop.permute.xlu0 %4463 }
 0x4f0   :  { %v14718_v17 = vpop.f32.mrb[60].mxu0 }
 0x4f1   :  { %v12869_v25 = vpop.f32.mrb[61].mxu0  ;;  %v4177_v15 = vsel %vm1539_vm3, %v14718_v17, -inf }
 0x4f2   :  { %v14734_v25 = vpop.permute.xlu1 %4771  ;;  %v14736_v29 = vpop.permute.xlu0 %4617 }
 0x4f6   :  { %v14738_v19 = vpop.permute.xlu1 %4848  ;;  %v14742_v41 = vpop.permute.xlu0 %4925 }
 0x4f7   :  { %16598 = vst [vmem:[#allocation40_spill] sm:$0xff] %v14738_v19  ;;  %16599 = vst [vmem:[#allocation41_spill] sm:$0xff] %v14742_v41 }
 0x4fa   :  { %v14748_v27 = vpop.permute.xlu0 %5079 }
 0x4fb   :  { %5932 = vrot.lane.b32.xlu1 %v16596_v9, %s13807_s27  ;;  %16601 = vst [vmem:[#allocation43_spill] sm:$0xff] %v14748_v27 }
 0x4fe   :  { %v14754_v47 = vpop.permute.xlu0 %5233 }
 0x4ff   :  { %16603 = vst [vmem:[#allocation45_spill] sm:$0xff] %v14754_v47 }
 0x502   :  { %v14760_v44 = vpop.permute.xlu0 %5387 }
 0x503   :  { %16605 = vst [vmem:[#allocation47_spill] sm:$0xff] %v14760_v44 }
 0x504   :  { %5854 = vrot.lane.b32.xlu0 %v16597_v3, %s13807_s27 }
 0x506   :  { %v14764_v6 = vpop.permute.xlu0 %5542 }
 0x507   :  { %16607 = vst [vmem:[#allocation49_spill] sm:$0xff] %v14764_v6 }
 0x50a   :  { %v14768_v57 = vpop.permute.xlu0 %5540 }
 0x50b   :  { %16609 = vst [vmem:[#allocation51_spill] sm:$0xff] %v14768_v57 }
 0x51f   :  { %4175 = vmax.xlane.f32.xlu1 %v4174_v31  ;;  %v14746_v31 = vpop.permute.xlu1 %5002 }
 0x520   :  { %16600 = vst [vmem:[#allocation42_spill] sm:$0xff] %v14746_v31 }
 0x523   :  { %4178 = vmax.xlane.f32.xlu0 %v4177_v15  ;;  %v14752_v15 = vpop.permute.xlu1 %5156 }
 0x524   :  { %16602 = vst [vmem:[#allocation44_spill] sm:$0xff] %v14752_v15  ;;  %v14772_v15 = vpop.permute.xlu0 %5698 }
 0x525   :  { %16611 = vst [vmem:[#allocation53_spill] sm:$0xff] %v14772_v15 }
 0x527   :  { %v14758_v62 = vpop.permute.xlu1 %5310 }
 0x528   :  { %16604 = vst [vmem:[#allocation46_spill] sm:$0xff] %v14758_v62  ;;  %v14776_v61 = vpop.permute.xlu0 %5696 }
 0x529   :  { %16613 = vst [vmem:[#allocation55_spill] sm:$0xff] %v14776_v61 }
 0x52b   :  { %v14762_v50 = vpop.permute.xlu1 %5464 }
 0x52c   :  { %16606 = vst [vmem:[#allocation48_spill] sm:$0xff] %v14762_v50 }
 0x530   :  { %5930 = vrot.lane.b32.xlu1 %v16596_v9, %s13808_s28  ;;  %v14766_v9 = vpop.permute.xlu1 %5620 }
 0x531   :  { %16608 = vst [vmem:[#allocation50_spill] sm:$0xff] %v14766_v9 }
 0x534   :  { %6088 = vrot.lane.b32.xlu1 %v13987_v14, %s13807_s27 }
 0x539   :  { %5852 = vrot.lane.b32.xlu0 %v16597_v3, %s13808_s28  ;;  %v14770_v3 = vpop.permute.xlu1 %5618 }
 0x53a   :  { %16610 = vst [vmem:[#allocation52_spill] sm:$0xff] %v14770_v3 }
 0x53d   :  { %6010 = vrot.lane.b32.xlu0 %v13979_v10, %s13807_s27  ;;  %v14774_v47 = vpop.permute.xlu1 %5776 }
 0x53e   :  { %16612 = vst [vmem:[#allocation54_spill] sm:$0xff] %v14774_v47 }
 0x541   :  { %v14778_v31 = vpop.permute.xlu1 %5774 }
 0x542   :  { %16614 = vst [vmem:[#allocation56_spill] sm:$0xff] %v14778_v31 }
 0x55f   :  { %v4134_v62 = vpop.xlane.xlu0 %4133 }
 0x560   :  { %v4180_v44 = vsub.f32 %v14660_v39, %v4134_v62 }
 0x562   :  { %v4196_v50 = vmul.f32 1.442695, %v4180_v44 }
 0x563   :  { %v4137_v27 = vpop.xlane.xlu1 %4136  ;;  %v4140_v6 = vpop.xlane.xlu0 %4139 }
 0x564   :  { %13432 = vpow2.f32 %v4196_v50  ;;  %v4181_v9 = vsub.f32 %v14664_v0, %v4137_v27  ;;  %v4182_v57 = vsub.f32 %v14666_v33, %v4140_v6 }
 0x566   :  { %v4198_v3 = vmul.f32 1.442695, %v4181_v9  ;;  %v4200_v19 = vmul.f32 1.442695, %v4182_v57 }
 0x567   :  { %v4146_v15 = vpop.xlane.xlu1 %4145  ;;  %v4143_v41 = vpop.xlane.xlu0 %4142 }
 0x568   :  { %13434 = vpow2.f32 %v4198_v3  ;;  %v4184_v47 = vsub.f32 %v14674_v46, %v4146_v15  ;;  %v4183_v31 = vsub.f32 %v14672_v58, %v4143_v41 }
 0x569   :  { %13436 = vpow2.f32 %v4200_v19 }
 0x56a   :  { %v4204_v61 = vmul.f32 1.442695, %v4184_v47  ;;  %v4202_v62 = vmul.f32 1.442695, %v4183_v31 }
 0x56b   :  { %v4152_v44 = vpop.xlane.xlu1 %4151  ;;  %v4149_v39 = vpop.xlane.xlu0 %4148 }
 0x56c   :  { %13438 = vpow2.f32 %v4204_v61  ;;  %v4186_v50 = vsub.f32 %v14682_v35, %v4152_v44  ;;  %v4185_v27 = vsub.f32 %v14680_v11, %v4149_v39 }
 0x56d   :  { %13440 = vpow2.f32 %v4202_v62 }
 0x56e   :  { %v14787_v9 = vpop.eup %13432  ;;  %v4208_v57 = vmul.f32 1.442695, %v4186_v50  ;;  %v4206_v6 = vmul.f32 1.442695, %v4185_v27 }
 0x56f   :  { %v4158_v3 = vpop.xlane.xlu1 %4157  ;;  %v4155_v0 = vpop.xlane.xlu0 %4154  ;;  %v4228_v41 = vsel %vm1539_vm3, %v14787_v9, 0.0 }
 0x570   :  { %13442 = vpow2.f32 %v4208_v57  ;;  %v4188_v47 = vsub.f32 %v14690_v5, %v4158_v3  ;;  %v4187_v19 = vsub.f32 %v14688_v54, %v4155_v0  ;;  %4229 = vadd.xlane.f32.xlu1 %v4228_v41 }
 0x571   :  { %13444 = vpow2.f32 %v4206_v6 }
 0x572   :  { %v14793_v61 = vpop.eup %13434  ;;  %v4212_v33 = vmul.f32 1.442695, %v4188_v47  ;;  %v4210_v58 = vmul.f32 1.442695, %v4187_v19 }
 0x573   :  { %v14795_v46 = vpop.eup %13436  ;;  %v4164_v11 = vpop.xlane.xlu1 %4163  ;;  %v4231_v31 = vsel %vm1539_vm3, %v14793_v61, 0.0 }
 0x574   :  { %v4161_v35 = vpop.xlane.xlu0 %4160  ;;  %13446 = vpow2.f32 %v4212_v33  ;;  %v4190_v15 = vsub.f32 %v14698_v23, %v4164_v11  ;;  %4232 = vadd.xlane.f32.xlu0 %v4231_v31  ;;  %v4234_v54 = vsel %vm1539_vm3, %v14795_v46, 0.0 }
 0x575   :  { %v4189_v5 = vsub.f32 %v14696_v1, %v4161_v35  ;;  %13448 = vpow2.f32 %v4210_v58  ;;  %4235 = vadd.xlane.f32.xlu1 %v4234_v54 }
 0x576   :  { %v14803_v62 = vpop.eup %13438  ;;  %v4216_v44 = vmul.f32 1.442695, %v4190_v15 }
 0x577   :  { %v4214_v39 = vmul.f32 1.442695, %v4189_v5  ;;  %v14805_v50 = vpop.eup %13440  ;;  %v4170_v27 = vpop.xlane.xlu1 %4169  ;;  %v4240_v6 = vsel %vm1539_vm3, %v14803_v62, 0.0 }
 0x578   :  { %v4167_v57 = vpop.xlane.xlu0 %4166  ;;  %13450 = vpow2.f32 %v4216_v44  ;;  %v4192_v1 = vsub.f32 %v14706_v2, %v4170_v27  ;;  %v4237_v3 = vsel %vm1539_vm3, %v14805_v50, 0.0 }
 0x579   :  { %v4191_v23 = vsub.f32 %v14704_v43, %v4167_v57  ;;  %13452 = vpow2.f32 %v4214_v39  ;;  %4241 = vadd.xlane.f32.xlu1 %v4240_v6  ;;  %4238 = vadd.xlane.f32.xlu0 %v4237_v3 }
 0x57a   :  { %v14813_v0 = vpop.eup %13442  ;;  %v4220_v41 = vmul.f32 1.442695, %v4192_v1 }
 0x57b   :  { %v4218_v47 = vmul.f32 1.442695, %v4191_v23  ;;  %v14815_v19 = vpop.eup %13444  ;;  %v4246_v58 = vsel %vm1539_vm3, %v14813_v0, 0.0 }
 0x57c   :  { %v4173_v33 = vpop.xlane.xlu0 %4172  ;;  %13454 = vpow2.f32 %v4220_v41  ;;  %v4243_v43 = vsel %vm1539_vm3, %v14815_v19, 0.0  ;;  %v14850_v41 = vpop.permute.xlu1 %5932 }
 0x57d   :  { %v4193_v2 = vsub.f32 %v14712_v13, %v4173_v33  ;;  %13456 = vpow2.f32 %v4218_v47  ;;  %4247 = vadd.xlane.f32.xlu1 %v4246_v58  ;;  %4244 = vadd.xlane.f32.xlu0 %v4243_v43 }
 0x57e   :  { %v14822_v11 = vpop.eup %13446 }
 0x57f   :  { %v4222_v35 = vmul.f32 1.442695, %v4193_v2  ;;  %v14824_v31 = vpop.eup %13448  ;;  %v4252_v15 = vsel %vm1539_vm3, %v14822_v11, 0.0 }
 0x580   :  { %v4249_v5 = vsel %vm1539_vm3, %v14824_v31, 0.0  ;;  %v14852_v47 = vpop.permute.xlu0 %5854 }
 0x581   :  { %13458 = vpow2.f32 %v4222_v35  ;;  %4253 = vadd.xlane.f32.xlu1 %v4252_v15  ;;  %4250 = vadd.xlane.f32.xlu0 %v4249_v5 }
 0x582   :  { %v14830_v13 = vpop.eup %13450 }
 0x583   :  { %v14832_v54 = vpop.eup %13452  ;;  %v4258_v44 = vsel %vm1539_vm3, %v14830_v13, 0.0 }
 0x584   :  { %v4255_v39 = vsel %vm1539_vm3, %v14832_v54, 0.0 }
 0x585   :  { %4259 = vadd.xlane.f32.xlu1 %v4258_v44  ;;  %4256 = vadd.xlane.f32.xlu0 %v4255_v39 }
 0x586   :  { %v14838_v27 = vpop.eup %13454 }
 0x587   :  { %v14840_v57 = vpop.eup %13456  ;;  %v4264_v6 = vsel %vm1539_vm3, %v14838_v27, 0.0 }
 0x588   :  { %v4261_v1 = vsel %vm1539_vm3, %v14840_v57, 0.0 }
 0x589   :  { %4265 = vadd.xlane.f32.xlu1 %v4264_v6  ;;  %4262 = vadd.xlane.f32.xlu0 %v4261_v1 }
 0x58b   :  { %v14846_v23 = vpop.eup %13458 }
 0x58c   :  { %v4267_v3 = vsel %vm1539_vm3, %v14846_v23, 0.0 }
 0x58d   :  { %4268 = vadd.xlane.f32.xlu0 %v4267_v3 }
 0x5ac   :  { %v4176_v33 = vpop.xlane.xlu1 %4175 }
 0x5ad   :  { %v4194_v58 = vsub.f32 %v14714_v45, %v4176_v33 }
 0x5af   :  { %v4224_v2 = vmul.f32 1.442695, %v4194_v58 }
 0x5b0   :  { %v4179_v43 = vpop.xlane.xlu0 %4178  ;;  %v14898_v45 = vpop.permute.xlu1 %5930 }
 0x5b1   :  { %13460 = vpow2.f32 %v4224_v2  ;;  %v4195_v35 = vsub.f32 %v14718_v17, %v4179_v43 }
 0x5b3   :  { %v4226_v15 = vmul.f32 1.442695, %v4195_v35 }
 0x5b4   :  { %v14904_v17 = vpop.permute.xlu0 %5852  ;;  %v14908_v1 = vpop.permute.xlu1 %6088 }
 0x5b5   :  { %13462 = vpow2.f32 %v4226_v15 }
 0x5b8   :  { %v14914_v3 = vpop.permute.xlu0 %6010 }
 0x5bb   :  { %v14856_v5 = vpop.eup %13460 }
 0x5bc   :  { %v4270_v44 = vsel %vm1539_vm3, %v14856_v5, 0.0 }
 0x5bd   :  { %4271 = vadd.xlane.f32.xlu1 %v4270_v44 }
 0x5bf   :  { %v14860_v39 = vpop.eup %13462 }
 0x5c0   :  { %v4273_v6 = vsel %vm1539_vm3, %v14860_v39, 0.0 }
 0x5c1   :  { %4274 = vadd.xlane.f32.xlu0 %v4273_v6 }
 0x5ce   :  { %6086 = vrot.lane.b32.xlu1 %v13987_v14, %s13808_s28 }
 0x5d2   :  { %6244 = vrot.lane.b32.xlu1 %v14003_v22, %s13807_s27 }
 0x5d6   :  { %6242 = vrot.lane.b32.xlu1 %v14003_v22, %s13808_s28 }
 0x5d7   :  { %6008 = vrot.lane.b32.xlu0 %v13979_v10, %s13808_s28 }
 0x5da   :  { %6400 = vrot.lane.b32.xlu1 %v14019_v30, %s13807_s27 }
 0x5db   :  { %6166 = vrot.lane.b32.xlu0 %v13995_v18, %s13807_s27 }
 0x5de   :  { %6398 = vrot.lane.b32.xlu1 %v14019_v30, %s13808_s28 }
 0x5df   :  { %6164 = vrot.lane.b32.xlu0 %v13995_v18, %s13808_s28 }
 0x5e2   :  { %6556 = vrot.lane.b32.xlu1 %v14035_v38, %s13807_s27 }
 0x5e3   :  { %6322 = vrot.lane.b32.xlu0 %v14011_v26, %s13807_s27 }
 0x5e6   :  { %6554 = vrot.lane.b32.xlu1 %v14035_v38, %s13808_s28 }
 0x5e7   :  { %6320 = vrot.lane.b32.xlu0 %v14011_v26, %s13808_s28 }
 0x5ea   :  { %6712 = vrot.lane.b32.xlu1 %v14051_v56, %s13807_s27 }
 0x5eb   :  { %6478 = vrot.lane.b32.xlu0 %v14027_v34, %s13807_s27 }
 0x5ee   :  { %6710 = vrot.lane.b32.xlu1 %v14051_v56, %s13808_s28 }
 0x5ef   :  { %6476 = vrot.lane.b32.xlu0 %v14027_v34, %s13808_s28 }
 0x5f2   :  { %6964 = vrot.lane.b32.xlu1 %v13932_v51, %s13808_s28 }
 0x5f3   :  { %6634 = vrot.lane.b32.xlu0 %v14043_v48, %s13807_s27 }
 0x5f6   :  { %7192 = vrot.lane.b32.xlu1 %v13956_v63, %s13808_s28 }
 0x5f7   :  { %6632 = vrot.lane.b32.xlu0 %v14043_v48, %s13808_s28 }
 0x5fa   :  { %7344 = vrot.lane.b32.xlu1 %v13974_v8, %s13808_s28 }
 0x5fb   :  { %7040 = vrot.lane.b32.xlu0 %v13940_v55, %s13808_s28 }
 0x5fd   :  { %v4230_v33 = vpop.xlane.xlu1 %4229 }
 0x5fe   :  { %13464 = vrcp.f32 %v4230_v33  ;;  %7420 = vrot.lane.b32.xlu1 %v13982_v12, %s13808_s28 }
 0x5ff   :  { %7116 = vrot.lane.b32.xlu0 %v13948_v59, %s13808_s28 }
 0x601   :  { %v4233_v58 = vpop.xlane.xlu0 %4232 }
 0x602   :  { %v4236_v2 = vpop.xlane.xlu1 %4235  ;;  %13466 = vrcp.f32 %v4233_v58  ;;  %7496 = vrot.lane.b32.xlu1 %v13990_v16, %s13808_s28 }
 0x603   :  { %13468 = vrcp.f32 %v4236_v2  ;;  %7268 = vrot.lane.b32.xlu0 %v13966_v4, %s13808_s28 }
 0x606   :  { %v4242_v43 = vpop.xlane.xlu1 %4241  ;;  %v4239_v35 = vpop.xlane.xlu0 %4238  ;;  %7648 = vrot.lane.b32.xlu1 %v14006_v24, %s13808_s28 }
 0x607   :  { %13470 = vrcp.f32 %v4242_v43  ;;  %7572 = vrot.lane.b32.xlu0 %v13998_v20, %s13808_s28 }
 0x608   :  { %v13465_v15 = vpop.eup %13464  ;;  %13472 = vrcp.f32 %v4239_v35 }
 0x609   :  { %v4292_v44 = vmul.f32 %v13465_v15, %v14787_v9 }
 0x60a   :  { %v4248_v6 = vpop.xlane.xlu1 %4247  ;;  %v4245_v33 = vpop.xlane.xlu0 %4244  ;;  %7800 = vrot.lane.b32.xlu1 %v14022_v32, %s13808_s28 }
 0x60b   :  { %13474 = vrcp.f32 %v4248_v6  ;;  %12873 = vmatmul.mubr.msk.f32.vlgmr.msra.gmra.mrb[66].mxu1 %vm1539_vm3, %v4292_v44  ;;  %7724 = vrot.lane.b32.xlu0 %v14014_v28, %s13808_s28 }
 0x60c   :  { %v13467_v58 = vpop.eup %13466  ;;  %13476 = vrcp.f32 %v4245_v33  ;;  %12881 = vmatpush3.msra.mxu1 %v14732_v37  ;;  %12882 = vmatprep.mubr.msk.f32.mxu1 %vm13803_vm1, %v16575_v21 }
 0x60d   :  { %v13469_v2 = vpop.eup %13468  ;;  %12890 = vmatprep.subr.mxu1 %v16575_v21  ;;  %v4293_v9 = vmul.f32 %v13467_v58, %v14793_v61 }
 0x60e   :  { %v4254_v43 = vpop.xlane.xlu1 %4253  ;;  %v4251_v35 = vpop.xlane.xlu0 %4250  ;;  %7952 = vrot.lane.b32.xlu1 %v14038_v40, %s13808_s28  ;;  %v4294_v15 = vmul.f32 %v13469_v2, %v14795_v46  ;;  %v16615_v2 = vld [vmem:[#allocation41_spill] sm:$0xff] }
 0x60f   :  { %13478 = vrcp.f32 %v4254_v43  ;;  %7876 = vrot.lane.b32.xlu0 %v14030_v36, %s13808_s28  ;;  %12878 = vmatmul.mubr.msk.f32.vlgmr.msra.gmra.mrb[62].mxu0 %vm1539_vm3, %v4293_v9 }
 0x610   :  { %13480 = vrcp.f32 %v4251_v35  ;;  %12883 = vmatmul.mubr.msk.f32.vlgmr.msra.gmra.mrb[68].mxu1 %vm1539_vm3, %v4294_v15  ;;  %12886 = vmatpush3.msra.mxu0 %v14724_v42 }
 0x611   :  { %v13471_v37 = vpop.eup %13470  ;;  %12891 = vmatpush3.msra.mxu1 %v14736_v29  ;;  %12887 = vmatprep.mubr.msk.f32.mxu0 %vm13803_vm1, %v16575_v21 }
 0x612   :  { %v13473_v61 = vpop.eup %13472  ;;  %v4260_v44 = vpop.xlane.xlu1 %4259  ;;  %8104 = vrot.lane.b32.xlu1 %v14054_v60, %s13808_s28  ;;  %12892 = vmatprep.mubr.msk.f32.mxu1 %vm13803_vm1, %v16575_v21  ;;  %v4296_v6 = vmul.f32 %v13471_v37, %v14803_v62  ;;  %v16618_v37 = vld [vmem:[#allocation42_spill] sm:$0xff] }
 0x613   :  { %v4257_v46 = vpop.xlane.xlu0 %4256  ;;  %13482 = vrcp.f32 %v4260_v44  ;;  %12895 = vmatprep.subr.mxu0 %v16575_v21  ;;  %12900 = vmatprep.subr.mxu1 %v16575_v21  ;;  %v4295_v29 = vmul.f32 %v13473_v61, %v14805_v50  ;;  %v16619_v61 = vld [vmem:[#allocation15_spill] sm:$0xff] }
 0x614   :  { %13484 = vrcp.f32 %v4257_v46  ;;  %12893 = vmatmul.mubr.msk.f32.vlgmr.msra.gmra.mrb[70].mxu1 %vm1539_vm3, %v4296_v6  ;;  %8028 = vrot.lane.b32.xlu0 %v14046_v52, %s13808_s28  ;;  %v16621_v6 = vld [vmem:[#allocation45_spill] sm:$0xff] }
 0x615   :  { %v13475_v42 = vpop.eup %13474  ;;  %12901 = vmatpush3.msra.mxu1 %v14734_v25  ;;  %12888 = vmatmul.mubr.msk.f32.vlgmr.msra.gmra.mrb[64].mxu0 %vm1539_vm3, %v4295_v29  ;;  %v16622_v29 = vld [vmem:[#allocation44_spill] sm:$0xff] }
 0x616   :  { %v13477_v33 = vpop.eup %13476  ;;  %12896 = vmatpush3.msra.mxu0 %v14730_v7  ;;  %v4266_v62 = vpop.xlane.xlu1 %4265  ;;  %8260 = vrot.lane.b32.xlu1 %v13937_v53, %s13801_s21  ;;  %v4298_v50 = vmul.f32 %v13475_v42, %v14813_v0 }
 0x617   :  { %v4263_v58 = vpop.xlane.xlu0 %4262  ;;  %13486 = vrcp.f32 %v4266_v62  ;;  %12897 = vmatprep.mubr.msk.f32.mxu0 %vm13803_vm1, %v16575_v21  ;;  %12902 = vmatprep.mubr.msk.f32.mxu1 %vm13803_vm1, %v16575_v21  ;;  %v4297_v25 = vmul.f32 %v13477_v33, %v14815_v19  ;;  %v16616_v19 = vld [vmem:[#allocation40_spill] sm:$0xff]  ;;  %v16624_v62 = vld [vmem:[#allocation46_spill] sm:$0xff] }
 0x618   :  { %13488 = vrcp.f32 %v4263_v58  ;;  %12905 = vmatprep.subr.mxu0 %v16575_v21  ;;  %12910 = vmatprep.subr.mxu1 %v16575_v21  ;;  %v16625_v58 = vld [vmem:[#allocation17_spill] sm:$0xff] }
 0x619   :  { %v13479_v7 = vpop.eup %13478  ;;  %12903 = vmatmul.mubr.msk.f32.vlgmr.msra.gmra.mrb[72].mxu1 %vm1539_vm3, %v4298_v50  ;;  %8182 = vrot.lane.b32.xlu0 %v13929_v49, %s13801_s21  ;;  %v16626_v50 = vld [vmem:[#allocation16_spill] sm:$0xff] }
 0x61a   :  { %v13481_v0 = vpop.eup %13480  ;;  %12911 = vmatpush3.msra.mxu1 %v16615_v2  ;;  %12898 = vmatmul.mubr.msk.f32.vlgmr.msra.gmra.mrb[66].mxu0 %vm1539_vm3, %v4297_v25  ;;  %v4300_v43 = vmul.f32 %v13479_v7, %v14822_v11 }
 0x61b   :  { %v4269_v9 = vpop.xlane.xlu0 %4268  ;;  %12906 = vmatpush3.msra.mxu0 %v16616_v19  ;;  %8258 = vrot.lane.b32.xlu1 %v13937_v53, %s13809_s29  ;;  %v4299_v35 = vmul.f32 %v13481_v0, %v14824_v31  ;;  %v16617_v53 = vld [vmem:[#allocation43_spill] sm:$0xff] }
 0x61c   :  { %13490 = vrcp.f32 %v4269_v9  ;;  %12907 = vmatprep.mubr.msk.f32.mxu0 %vm13803_vm1, %v16575_v21  ;;  %12912 = vmatprep.mubr.msk.f32.mxu1 %vm13803_vm1, %v16575_v21 }
 0x61d   :  { %v13483_v15 = vpop.eup %13482  ;;  %12915 = vmatprep.subr.mxu0 %v16575_v21  ;;  %12920 = vmatprep.subr.mxu1 %v16575_v21 }
 0x61e   :  { %v13485_v11 = vpop.eup %13484  ;;  %12913 = vmatmul.mubr.msk.f32.vlgmr.msra.gmra.mrb[74].mxu1 %vm1539_vm3, %v4300_v43  ;;  %8180 = vrot.lane.b32.xlu0 %v13929_v49, %s13809_s29  ;;  %v4302_v31 = vmul.f32 %v13483_v15, %v14830_v13  ;;  %v16620_v13 = vld [vmem:[#allocation14_spill] sm:$0xff] }
 0x61f   :  { %12921 = vmatpush3.msra.mxu1 %v16617_v53  ;;  %12908 = vmatmul.mubr.msk.f32.vlgmr.msra.gmra.mrb[68].mxu0 %vm1539_vm3, %v4299_v35  ;;  %v4301_v44 = vmul.f32 %v13485_v11, %v14832_v54  ;;  %v16628_v53 = vld [vmem:[#allocation49_spill] sm:$0xff] }
 0x620   :  { %12916 = vmatpush3.msra.mxu0 %v16618_v37  ;;  %8416 = vrot.lane.b32.xlu1 %v16619_v61, %s13801_s21 }
 0x621   :  { %v13487_v46 = vpop.eup %13486  ;;  %12917 = vmatprep.mubr.msk.f32.mxu0 %vm13803_vm1, %v16575_v21  ;;  %12922 = vmatprep.mubr.msk.f32.mxu1 %vm13803_vm1, %v16575_v21 }
 0x622   :  { %v13489_v49 = vpop.eup %13488  ;;  %12925 = vmatprep.subr.mxu0 %v16575_v21  ;;  %12930 = vmatprep.subr.mxu1 %v16575_v21  ;;  %v4304_v54 = vmul.f32 %v13487_v46, %v14838_v27  ;;  %v16623_v27 = vld [vmem:[#allocation47_spill] sm:$0xff]  ;;  %v16631_v46 = vld [vmem:[#allocation53_spill] sm:$0xff] }
 0x623   :  { %12923 = vmatmul.mubr.msk.f32.vlgmr.msra.gmra.mrb[76].mxu1 %vm1539_vm3, %v4302_v31  ;;  %8338 = vrot.lane.b32.xlu0 %v16620_v13, %s13801_s21  ;;  %v4303_v42 = vmul.f32 %v13489_v49, %v14840_v57 }
 0x624   :  { %12931 = vmatpush3.msra.mxu1 %v16621_v6  ;;  %12918 = vmatmul.mubr.msk.f32.vlgmr.msra.gmra.mrb[70].mxu0 %vm1539_vm3, %v4301_v44  ;;  %v16629_v44 = vld [vmem:[#allocation51_spill] sm:$0xff] }
 0x625   :  { %12926 = vmatpush3.msra.mxu0 %v16622_v29  ;;  %8414 = vrot.lane.b32.xlu1 %v16619_v61, %s13809_s29  ;;  %v16633_v6 = vld [vmem:[#allocation55_spill] sm:$0xff] }
 0x626   :  { %v13491_v33 = vpop.eup %13490  ;;  %12927 = vmatprep.mubr.msk.f32.mxu0 %vm13803_vm1, %v16575_v21  ;;  %12932 = vmatprep.mubr.msk.f32.mxu1 %vm13803_vm1, %v16575_v21 }
 0x627   :  { %12935 = vmatprep.subr.mxu0 %v16575_v21  ;;  %12940 = vmatprep.subr.mxu1 %v16575_v21  ;;  %v4305_v57 = vmul.f32 %v13491_v33, %v14846_v23  ;;  %v16627_v23 = vld [vmem:[#allocation48_spill] sm:$0xff] }
 0x628   :  { %12933 = vmatmul.mubr.msk.f32.vlgmr.msra.gmra.mrb[78].mxu1 %vm1539_vm3, %v4304_v54  ;;  %8336 = vrot.lane.b32.xlu0 %v16620_v13, %s13809_s29  ;;  %v16634_v54 = vld [vmem:[#allocation54_spill] sm:$0xff]  ;;  %v16635_v33 = vld [vmem:[#allocation56_spill] sm:$0xff] }
 0x629   :  { %12941 = vmatpush3.msra.mxu1 %v16623_v27  ;;  %12928 = vmatmul.mubr.msk.f32.vlgmr.msra.gmra.mrb[72].mxu0 %vm1539_vm3, %v4303_v42 }
 0x62a   :  { %12936 = vmatpush3.msra.mxu0 %v16624_v62  ;;  %8572 = vrot.lane.b32.xlu1 %v16625_v58, %s13801_s21 }
 0x62b   :  { %12937 = vmatprep.mubr.msk.f32.mxu0 %vm13803_vm1, %v16575_v21  ;;  %12945 = vmatprep.subr.mxu0 %v16575_v21 }
 0x62c   :  { %8494 = vrot.lane.b32.xlu0 %v16626_v50, %s13801_s21  ;;  %12942 = vmatprep.mubr.msk.f32.mxu1 %vm13803_vm1, %v16575_v21 }
 0x62d   :  { %12938 = vmatmul.mubr.msk.f32.vlgmr.msra.gmra.mrb[74].mxu0 %vm1539_vm3, %v4305_v57  ;;  %12950 = vmatprep.subr.mxu1 %v16575_v21 }
 0x62e   :  { %12946 = vmatpush3.msra.mxu0 %v16627_v23  ;;  %8570 = vrot.lane.b32.xlu1 %v16625_v58, %s13809_s29 }
 0x62f   :  { %12947 = vmatprep.mubr.msk.f32.mxu0 %vm13803_vm1, %v16575_v21  ;;  %12955 = vmatprep.subr.mxu0 %v16575_v21 }
 0x630   :  { %8492 = vrot.lane.b32.xlu0 %v16626_v50, %s13809_s29 }
 0x64a   :  { %v4272_v25 = vpop.xlane.xlu1 %4271 }
 0x64b   :  { %13492 = vrcp.f32 %v4272_v25 }
 0x64e   :  { %v6087_v7 = vpop.permute.xlu1 %6086  ;;  %v4275_v0 = vpop.xlane.xlu0 %4274 }
 0x64f   :  { %13494 = vrcp.f32 %v4275_v0 }
 0x652   :  { %v6245_v2 = vpop.permute.xlu1 %6244  ;;  %v6009_v9 = vpop.permute.xlu0 %6008 }
 0x655   :  { %v13493_v43 = vpop.eup %13492 }
 0x656   :  { %v6243_v19 = vpop.permute.xlu1 %6242  ;;  %v6167_v35 = vpop.permute.xlu0 %6166  ;;  %v4306_v15 = vmul.f32 %v13493_v43, %v14856_v5  ;;  %v16630_v5 = vld [vmem:[#allocation50_spill] sm:$0xff] }
 0x658   :  { %12943 = vmatmul.mubr.msk.f32.vlgmr.msra.gmra.mrb[80].mxu1 %vm1539_vm3, %v4306_v15 }
 0x659   :  { %v13495_v11 = vpop.eup %13494  ;;  %12951 = vmatpush3.xpose.msk.msra.mxu1 %vm309_vm2, %v16628_v53  ;;  %12952 = vmatprep.mubr.msk.f32.mxu1 %vm13803_vm1, %v16575_v21 }
 0x65a   :  { %v6401_v31 = vpop.permute.xlu1 %6400  ;;  %v6165_v37 = vpop.permute.xlu0 %6164  ;;  %12960 = vmatprep.subr.mxu1 %v16575_v21  ;;  %v4307_v61 = vmul.f32 %v13495_v11, %v14860_v39  ;;  %v16632_v39 = vld [vmem:[#allocation52_spill] sm:$0xff] }
 0x65c   :  { %12948 = vmatmul.mubr.msk.f32.vlgmr.msra.gmra.mrb[76].mxu0 %vm1539_vm3, %v4307_v61  ;;  %12953 = vmatmul.mubr.msk.f32.vlgmr.msra.gmra.mrb[82].mxu1 %vm309_vm2, %v16629_v44 }
 0x65d   :  { %12956 = vmatpush3.xpose.msk.msra.mxu0 %vm309_vm2, %v16630_v5  ;;  %12961 = vmatpush3.xpose.msk.msra.mxu1 %vm309_vm2, %v16631_v46 }
 0x65e   :  { %v6399_v49 = vpop.permute.xlu1 %6398  ;;  %v6323_v13 = vpop.permute.xlu0 %6322  ;;  %12957 = vmatprep.mubr.msk.f32.mxu0 %vm13803_vm1, %v16575_v21  ;;  %12962 = vmatprep.mubr.msk.f32.mxu1 %vm13803_vm1, %v16575_v21 }
 0x65f   :  { %12965 = vmatprep.subr.mxu0 %v16575_v21  ;;  %12970 = vmatprep.subr.mxu1 %v16575_v21 }
 0x660   :  { %12958 = vmatmul.mubr.msk.f32.vlgmr.msra.gmra.mrb[78].mxu0 %vm309_vm2, %v16632_v39  ;;  %12963 = vmatmul.mubr.msk.f32.vlgmr.msra.gmra.mrb[84].mxu1 %vm309_vm2, %v16633_v6 }
 0x661   :  { %12966 = vmatpush3.xpose.msk.msra.mxu0 %vm309_vm2, %v16634_v54  ;;  %12971 = vmatpush3.xpose.msk.msra.mxu1 %vm309_vm2, %v14852_v47 }
 0x662   :  { %v6557_v29 = vpop.permute.xlu1 %6556  ;;  %v6321_v42 = vpop.permute.xlu0 %6320  ;;  %12967 = vmatprep.mubr.msk.f32.mxu0 %vm13803_vm1, %v16575_v21  ;;  %12972 = vmatprep.mubr.msk.f32.mxu1 %vm13803_vm1, %v16575_v21 }
 0x663   :  { %12975 = vmatprep.subr.mxu0 %v16575_v21  ;;  %12980 = vmatprep.subr.mxu1 %v16575_v21 }
 0x664   :  { %12968 = vmatmul.mubr.msk.f32.vlgmr.msra.gmra.mrb[80].mxu0 %vm309_vm2, %v16635_v33  ;;  %12973 = vmatmul.mubr.msk.f32.vlgmr.msra.gmra.mrb[86].mxu1 %vm309_vm2, %v14904_v17 }
 0x665   :  { %12976 = vmatpush3.xpose.msk.msra.mxu0 %vm309_vm2, %v14850_v41  ;;  %12981 = vmatpush3.xpose.msk.msra.mxu1 %vm309_vm2, %v14914_v3 }
 0x666   :  { %v6555_v47 = vpop.permute.xlu1 %6554  ;;  %v6479_v27 = vpop.permute.xlu0 %6478  ;;  %12977 = vmatprep.mubr.msk.f32.mxu0 %vm13803_vm1, %v16575_v21  ;;  %12982 = vmatprep.mubr.msk.f32.mxu1 %vm13803_vm1, %v16575_v21 }
 0x667   :  { %12985 = vmatprep.subr.mxu0 %v16575_v21  ;;  %12990 = vmatprep.subr.mxu1 %v16575_v21 }
 0x668   :  { %12978 = vmatmul.mubr.msk.f32.vlgmr.msra.gmra.mrb[82].mxu0 %vm309_vm2, %v14898_v45  ;;  %12983 = vmatmul.mubr.msk.f32.vlgmr.msra.gmra.mrb[88].mxu1 %vm309_vm2, %v6009_v9 }
 0x669   :  { %12986 = vmatpush3.xpose.msk.msra.mxu0 %vm309_vm2, %v14908_v1  ;;  %12991 = vmatpush3.xpose.msk.msra.mxu1 %vm309_vm2, %v6167_v35 }
 0x66a   :  { %v6477_v41 = vpop.permute.xlu0 %6476  ;;  %12987 = vmatprep.mubr.msk.f32.mxu0 %vm13803_vm1, %v16575_v21  ;;  %12992 = vmatprep.mubr.msk.f32.mxu1 %vm13803_vm1, %v16575_v21  ;;  %v6713_v17 = vpop.permute.xlu1 %6712 }
 0x66b   :  { %12995 = vmatprep.subr.mxu0 %v16575_v21  ;;  %13000 = vmatprep.subr.mxu1 %v16575_v21 }
 0x66c   :  { %12988 = vmatmul.mubr.msk.f32.vlgmr.msra.gmra.mrb[84].mxu0 %vm309_vm2, %v6087_v7  ;;  %12993 = vmatmul.mubr.msk.f32.vlgmr.msra.gmra.mrb[90].mxu1 %vm309_vm2, %v6165_v37 }
 0x66d   :  { %12996 = vmatpush3.xpose.msk.msra.mxu0 %vm309_vm2, %v6245_v2  ;;  %13001 = vmatpush3.xpose.msk.msra.mxu1 %vm309_vm2, %v6323_v13 }
 0x66e   :  { %12997 = vmatprep.mubr.msk.f32.mxu0 %vm13803_vm1, %v16575_v21  ;;  %13002 = vmatprep.mubr.msk.f32.mxu1 %vm13803_vm1, %v16575_v21  ;;  %v6635_v45 = vpop.permute.xlu0 %6634  ;;  %v6711_v1 = vpop.permute.xlu1 %6710 }
 0x66f   :  { %13005 = vmatprep.subr.mxu0 %v16575_v21  ;;  %13010 = vmatprep.subr.mxu1 %v16575_v21 }
 0x670   :  { %12998 = vmatmul.mubr.msk.f32.vlgmr.msra.gmra.mrb[86].mxu0 %vm309_vm2, %v6243_v19  ;;  %13003 = vmatmul.mubr.msk.f32.vlgmr.msra.gmra.mrb[92].mxu1 %vm309_vm2, %v6321_v42 }
 0x671   :  { %13006 = vmatpush3.xpose.msk.msra.mxu0 %vm309_vm2, %v6401_v31  ;;  %13011 = vmatpush3.xpose.msk.msra.mxu1 %vm309_vm2, %v6479_v27 }
 0x672   :  { %13007 = vmatprep.mubr.msk.f32.mxu0 %vm13803_vm1, %v16575_v21  ;;  %13012 = vmatprep.mubr.msk.f32.mxu1 %vm13803_vm1, %v16575_v21  ;;  %v6633_v3 = vpop.permute.xlu0 %6632  ;;  %v6965_v57 = vpop.permute.xlu1 %6964 }
 0x673   :  { %13015 = vmatprep.subr.mxu0 %v16575_v21  ;;  %13020 = vmatprep.subr.mxu1 %v16575_v21 }
 0x674   :  { %13008 = vmatmul.mubr.msk.f32.vlgmr.msra.gmra.mrb[88].mxu0 %vm309_vm2, %v6399_v49  ;;  %13013 = vmatmul.mubr.msk.f32.vlgmr.msra.gmra.mrb[94].mxu1 %vm309_vm2, %v6477_v41 }
 0x675   :  { %13016 = vmatpush3.xpose.msk.msra.mxu0 %vm309_vm2, %v6557_v29  ;;  %13021 = vmatpush3.xpose.msk.msra.mxu1 %vm309_vm2, %v6635_v45 }
 0x676   :  { %13017 = vmatprep.mubr.msk.f32.mxu0 %vm13803_vm1, %v16575_v21  ;;  %13022 = vmatprep.mubr.msk.f32.mxu1 %vm13803_vm1, %v16575_v21  ;;  %v7041_v62 = vpop.permute.xlu0 %7040 }
 0x677   :  { %13025 = vmatprep.subr.mxu0 %v16575_v21  ;;  %13030 = vmatprep.subr.mxu1 %v16575_v21 }
 0x678   :  { %13018 = vmatmul.mubr.msk.f32.vlgmr.msra.gmra.mrb[90].mxu0 %vm309_vm2, %v6555_v47  ;;  %13023 = vmatmul.mubr.msk.f32.vlgmr.msra.gmra.mrb[96].mxu1 %vm309_vm2, %v6633_v3 }
 0x679   :  { %13026 = vmatpush3.xpose.msk.msra.mxu0 %vm309_vm2, %v6713_v17  ;;  %13031 = vmatpush3.msra.mxu1 %v6965_v57 }
 0x67a   :  { %13027 = vmatprep.mubr.msk.f32.mxu0 %vm13803_vm1, %v16575_v21  ;;  %13035 = vmatprep.subr.mxu0 %v16575_v21 }
 0x67b   :  { %13032 = vmatprep.mubr.msk.f32.mxu1 %vm13803_vm1, %v16575_v21  ;;  %13040 = vmatprep.subr.mxu1 %v16575_v21 }
 0x67c   :  { %13028 = vmatmul.mubr.msk.f32.vlgmr.msra.gmra.mrb[92].mxu0 %vm309_vm2, %v6711_v1 }
 0x67d   :  { %13036 = vmatpush3.msra.mxu0 %v7041_v62  ;;  %13037 = vmatprep.mubr.msk.f32.mxu0 %vm13803_vm1, %v16575_v21 }
 0x67e   :  { %13045 = vmatprep.subr.mxu0 %v16575_v21 }
 0x6de   :  { %v15152_v58 = vpop.f32.mrb[66].mxu1 }
 0x6df   :  { %16636 = vst [vmem:[#allocation41_spill] sm:$0xff] %v15152_v58  ;;  %v12874_v50 = vpop.f32.mrb[67].mxu1 }
 0x6e2   :  { %v15154_v23 = vpop.f32.mrb[62].mxu0 }
 0x6e3   :  { %16637 = vst [vmem:[#allocation40_spill] sm:$0xff] %v15154_v23  ;;  %v15156_v25 = vpop.f32.mrb[68].mxu1  ;;  %v12879_v7 = vpop.f32.mrb[63].mxu0 }
 0x6e4   :  { %16638 = vst [vmem:[#allocation43_spill] sm:$0xff] %v15156_v25  ;;  %v12884_v0 = vpop.f32.mrb[69].mxu1 }
 0x6e7   :  { %v15158_v2 = vpop.f32.mrb[70].mxu1 }
 0x6e8   :  { %16639 = vst [vmem:[#allocation42_spill] sm:$0xff] %v15158_v2  ;;  %v15160_v9 = vpop.f32.mrb[64].mxu0  ;;  %v12894_v43 = vpop.f32.mrb[71].mxu1 }
 0x6e9   :  { %16640 = vst [vmem:[#allocation15_spill] sm:$0xff] %v15160_v9  ;;  %v12889_v19 = vpop.f32.mrb[65].mxu0 }
 0x6ec   :  { %v15162_v35 = vpop.f32.mrb[72].mxu1 }
 0x6ed   :  { %16641 = vst [vmem:[#allocation14_spill] sm:$0xff] %v15162_v35  ;;  %v15164_v15 = vpop.f32.mrb[66].mxu0  ;;  %v12904_v11 = vpop.f32.mrb[73].mxu1 }
 0x6ee   :  { %16642 = vst [vmem:[#allocation45_spill] sm:$0xff] %v15164_v15  ;;  %v12899_v53 = vpop.f32.mrb[67].mxu0 }
 0x6f1   :  { %v15166_v31 = vpop.f32.mrb[74].mxu1 }
 0x6f2   :  { %16643 = vst [vmem:[#allocation44_spill] sm:$0xff] %v15166_v31  ;;  %v15168_v37 = vpop.f32.mrb[68].mxu0  ;;  %v12914_v61 = vpop.f32.mrb[75].mxu1 }
 0x6f3   :  { %16644 = vst [vmem:[#allocation47_spill] sm:$0xff] %v15168_v37  ;;  %v12909_v44 = vpop.f32.mrb[69].mxu0 }
 0x6f6   :  { %v15170_v5 = vpop.f32.mrb[76].mxu1 }
 0x6f7   :  { %16645 = vst [vmem:[#allocation46_spill] sm:$0xff] %v15170_v5  ;;  %v15172_v46 = vpop.f32.mrb[70].mxu0  ;;  %v12924_v49 = vpop.f32.mrb[77].mxu1 }
 0x6f8   :  { %16646 = vst [vmem:[#allocation17_spill] sm:$0xff] %v15172_v46  ;;  %v12919_v13 = vpop.f32.mrb[71].mxu0 }
 0x6fb   :  { %v15174_v39 = vpop.f32.mrb[78].mxu1 }
 0x6fc   :  { %16647 = vst [vmem:[#allocation16_spill] sm:$0xff] %v15174_v39  ;;  %v15176_v6 = vpop.f32.mrb[72].mxu0  ;;  %v12934_v54 = vpop.f32.mrb[79].mxu1 }
 0x6fd   :  { %16648 = vst [vmem:[#allocation48_spill] sm:$0xff] %v15176_v6  ;;  %v12929_v29 = vpop.f32.mrb[73].mxu0 }
 0x700   :  { %v15178_v42 = vpop.f32.mrb[74].mxu0 }
 0x701   :  { %16649 = vst [vmem:[#allocation49_spill] sm:$0xff] %v15178_v42  ;;  %v12939_v33 = vpop.f32.mrb[75].mxu0 }
 0x72b   :  { %v15180_v47 = vpop.f32.mrb[80].mxu1 }
 0x72c   :  { %16650 = vst [vmem:[#allocation51_spill] sm:$0xff] %v15180_v47  ;;  %v12944_v27 = vpop.f32.mrb[81].mxu1 }
 0x72f   :  { %v15182_v41 = vpop.f32.mrb[76].mxu0  ;;  %v15184_v17 = vpop.f32.mrb[82].mxu1 }
 0x730   :  { %16651 = vst [vmem:[#allocation50_spill] sm:$0xff] %v15182_v41  ;;  %v12949_v45 = vpop.f32.mrb[77].mxu0  ;;  %v12954_v1 = vpop.f32.mrb[83].mxu1  ;;  %v6788_v3 = vsel %vm1539_vm3, %v15184_v17, -inf }
 0x731   :  { %6789 = vmax.xlane.f32.xlu0 %v6788_v3 }
 0x733   :  { %v15188_v57 = vpop.f32.mrb[78].mxu0  ;;  %v15190_v62 = vpop.f32.mrb[84].mxu1 }
 0x734   :  { %v12959_v50 = vpop.f32.mrb[79].mxu0  ;;  %v12964_v7 = vpop.f32.mrb[85].mxu1  ;;  %v6794_v0 = vsel %vm1539_vm3, %v15190_v62, -inf  ;;  %v6791_v43 = vsel %vm1539_vm3, %v15188_v57, -inf }
 0x735   :  { %6795 = vmax.xlane.f32.xlu0 %v6794_v0  ;;  %6792 = vmax.xlane.f32.xlu1 %v6791_v43 }
 0x737   :  { %v15196_v19 = vpop.f32.mrb[80].mxu0  ;;  %v15198_v11 = vpop.f32.mrb[86].mxu1 }
 0x738   :  { %v12969_v53 = vpop.f32.mrb[81].mxu0  ;;  %v12974_v61 = vpop.f32.mrb[87].mxu1  ;;  %v6800_v44 = vsel %vm1539_vm3, %v15198_v11, -inf  ;;  %v6797_v49 = vsel %vm1539_vm3, %v15196_v19, -inf }
 0x739   :  { %6801 = vmax.xlane.f32.xlu1 %v6800_v44  ;;  %6798 = vmax.xlane.f32.xlu0 %v6797_v49 }
 0x73b   :  { %v15204_v13 = vpop.f32.mrb[82].mxu0  ;;  %v15206_v54 = vpop.f32.mrb[88].mxu1 }
 0x73c   :  { %v12979_v29 = vpop.f32.mrb[83].mxu0  ;;  %v12984_v33 = vpop.f32.mrb[89].mxu1  ;;  %v6803_v27 = vsel %vm1539_vm3, %v15204_v13, -inf  ;;  %v6806_v45 = vsel %vm1539_vm3, %v15206_v54, -inf }
 0x73d   :  { %6804 = vmax.xlane.f32.xlu0 %v6803_v27  ;;  %6807 = vmax.xlane.f32.xlu1 %v6806_v45 }
 0x73f   :  { %v15212_v1 = vpop.f32.mrb[84].mxu0  ;;  %v15214_v3 = vpop.f32.mrb[90].mxu1 }
 0x740   :  { %v12989_v50 = vpop.f32.mrb[85].mxu0  ;;  %v12994_v7 = vpop.f32.mrb[91].mxu1  ;;  %v6809_v0 = vsel %vm1539_vm3, %v15212_v1, -inf  ;;  %v6812_v43 = vsel %vm1539_vm3, %v15214_v3, -inf }
 0x741   :  { %6810 = vmax.xlane.f32.xlu0 %v6809_v0  ;;  %6813 = vmax.xlane.f32.xlu1 %v6812_v43 }
 0x743   :  { %v15220_v53 = vpop.f32.mrb[86].mxu0  ;;  %v15222_v61 = vpop.f32.mrb[92].mxu1 }
 0x744   :  { %v12999_v44 = vpop.f32.mrb[87].mxu0  ;;  %v13004_v49 = vpop.f32.mrb[93].mxu1  ;;  %v6815_v29 = vsel %vm1539_vm3, %v15220_v53, -inf  ;;  %v6818_v33 = vsel %vm1539_vm3, %v15222_v61, -inf }
 0x745   :  { %6816 = vmax.xlane.f32.xlu0 %v6815_v29  ;;  %6819 = vmax.xlane.f32.xlu1 %v6818_v33 }
 0x747   :  { %v15228_v27 = vpop.f32.mrb[88].mxu0  ;;  %v15230_v45 = vpop.f32.mrb[94].mxu1 }
 0x748   :  { %v13009_v50 = vpop.f32.mrb[89].mxu0  ;;  %v13014_v7 = vpop.f32.mrb[95].mxu1  ;;  %v6821_v0 = vsel %vm1539_vm3, %v15228_v27, -inf  ;;  %v6824_v43 = vsel %vm1539_vm3, %v15230_v45, -inf }
 0x749   :  { %6822 = vmax.xlane.f32.xlu0 %v6821_v0  ;;  %6825 = vmax.xlane.f32.xlu1 %v6824_v43  ;;  %v15252_v43 = vpop.permute.xlu1 %7192 }
 0x74b   :  { %v15236_v44 = vpop.f32.mrb[90].mxu0  ;;  %v15238_v49 = vpop.f32.mrb[96].mxu1 }
 0x74c   :  { %v13019_v29 = vpop.f32.mrb[91].mxu0  ;;  %v13024_v33 = vpop.f32.mrb[97].mxu1  ;;  %v6827_v15 = vsel %vm1539_vm3, %v15236_v44, -inf  ;;  %v6830_v50 = vsel %vm1539_vm3, %v15238_v49, -inf }
 0x74d   :  { %6828 = vmax.xlane.f32.xlu0 %v6827_v15  ;;  %6831 = vmax.xlane.f32.xlu1 %v6830_v50  ;;  %v15254_v29 = vpop.permute.xlu1 %7344  ;;  %v15256_v33 = vpop.permute.xlu0 %7116 }
 0x74f   :  { %v15244_v7 = vpop.f32.mrb[92].mxu0 }
 0x750   :  { %v13029_v2 = vpop.f32.mrb[93].mxu0  ;;  %v6833_v0 = vsel %vm1539_vm3, %v15244_v7, -inf }
 0x751   :  { %6834 = vmax.xlane.f32.xlu0 %v6833_v0  ;;  %v15258_v15 = vpop.permute.xlu1 %7420  ;;  %v15260_v50 = vpop.permute.xlu0 %7268 }
 0x755   :  { %v15262_v2 = vpop.permute.xlu1 %7496  ;;  %v15264_v9 = vpop.permute.xlu0 %7572 }
 0x759   :  { %v15266_v0 = vpop.permute.xlu1 %7648  ;;  %v15268_v25 = vpop.permute.xlu0 %7724 }
 0x75d   :  { %v15270_v23 = vpop.permute.xlu1 %7800  ;;  %v15272_v58 = vpop.permute.xlu0 %7876 }
 0x75e   :  { %8728 = vrot.lane.b32.xlu1 %v13987_v14, %s13801_s21 }
 0x761   :  { %v15274_v47 = vpop.permute.xlu1 %7952  ;;  %v15276_v39 = vpop.permute.xlu0 %8028 }
 0x765   :  { %v15278_v41 = vpop.permute.xlu1 %8104  ;;  %v15280_v5 = vpop.permute.xlu0 %8182 }
 0x766   :  { %16652 = vst [vmem:[#allocation53_spill] sm:$0xff] %v15278_v41  ;;  %16653 = vst [vmem:[#allocation52_spill] sm:$0xff] %v15280_v5 }
 0x767   :  { %8650 = vrot.lane.b32.xlu0 %v13979_v10, %s13801_s21 }
 0x769   :  { %v15282_v42 = vpop.permute.xlu1 %8260  ;;  %v15284_v31 = vpop.permute.xlu0 %8180 }
 0x76a   :  { %16654 = vst [vmem:[#allocation55_spill] sm:$0xff] %v15282_v42  ;;  %16655 = vst [vmem:[#allocation54_spill] sm:$0xff] %v15284_v31 }
 0x76d   :  { %v15286_v6 = vpop.permute.xlu1 %8258  ;;  %v15288_v35 = vpop.permute.xlu0 %8338 }
 0x76e   :  { %16656 = vst [vmem:[#allocation56_spill] sm:$0xff] %v15286_v6  ;;  %16657 = vst [vmem:[#allocation57_spill] sm:$0xff] %v15288_v35 }
 0x771   :  { %v15290_v46 = vpop.permute.xlu1 %8416  ;;  %v15292_v52 = vpop.permute.xlu0 %8336 }
 0x772   :  { %16658 = vst [vmem:[#allocation58_spill] sm:$0xff] %v15290_v46  ;;  %16659 = vst [vmem:[#allocation59_spill] sm:$0xff] %v15292_v52 }
 0x775   :  { %v15294_v37 = vpop.permute.xlu1 %8414  ;;  %v15296_v60 = vpop.permute.xlu0 %8494 }
 0x776   :  { %16660 = vst [vmem:[#allocation60_spill] sm:$0xff] %v15294_v37  ;;  %16661 = vst [vmem:[#allocation61_spill] sm:$0xff] %v15296_v60 }
 0x779   :  { %v15298_v36 = vpop.permute.xlu1 %8572  ;;  %v15300_v28 = vpop.permute.xlu0 %8492 }
 0x77a   :  { %16662 = vst [vmem:[#allocation62_spill] sm:$0xff] %v15298_v36  ;;  %16663 = vst [vmem:[#allocation63_spill] sm:$0xff] %v15300_v28 }
 0x77d   :  { %v15302_v40 = vpop.permute.xlu1 %8570 }
 0x77e   :  { %16664 = vst [vmem:[#allocation64_spill] sm:$0xff] %v15302_v40 }
 0x7be   :  { %v6790_v32 = vpop.xlane.xlu0 %6789 }
 0x7bf   :  { %v6836_v42 = vsub.f32 %v15184_v17, %v6790_v32 }
 0x7c1   :  { %v6852_v6 = vmul.f32 1.442695, %v6836_v42 }
 0x7c2   :  { %v6793_v31 = vpop.xlane.xlu1 %6792  ;;  %v6796_v35 = vpop.xlane.xlu0 %6795 }
 0x7c3   :  { %13496 = vpow2.f32 %v6852_v6  ;;  %v6837_v46 = vsub.f32 %v15188_v57, %v6793_v31  ;;  %v6838_v52 = vsub.f32 %v15190_v62, %v6796_v35 }
 0x7c5   :  { %v6854_v37 = vmul.f32 1.442695, %v6837_v46  ;;  %v6856_v5 = vmul.f32 1.442695, %v6838_v52 }
 0x7c6   :  { %v6802_v60 = vpop.xlane.xlu1 %6801  ;;  %v6799_v41 = vpop.xlane.xlu0 %6798 }
 0x7c7   :  { %13498 = vpow2.f32 %v6854_v37  ;;  %v6840_v36 = vsub.f32 %v15198_v11, %v6802_v60  ;;  %v6839_v40 = vsub.f32 %v15196_v19, %v6799_v41 }
 0x7c8   :  { %13500 = vpow2.f32 %v6856_v5 }
 0x7c9   :  { %v6860_v28 = vmul.f32 1.442695, %v6840_v36  ;;  %v6858_v32 = vmul.f32 1.442695, %v6839_v40 }
 0x7ca   :  { %v6808_v42 = vpop.xlane.xlu1 %6807  ;;  %v6805_v17 = vpop.xlane.xlu0 %6804 }
 0x7cb   :  { %13502 = vpow2.f32 %v6860_v28  ;;  %v6842_v6 = vsub.f32 %v15206_v54, %v6808_v42  ;;  %v6841_v31 = vsub.f32 %v15204_v13, %v6805_v17 }
 0x7cc   :  { %13504 = vpow2.f32 %v6858_v32 }
 0x7cd   :  { %v15311_v35 = vpop.eup %13496  ;;  %v6864_v52 = vmul.f32 1.442695, %v6842_v6  ;;  %v6862_v46 = vmul.f32 1.442695, %v6841_v31 }
 0x7ce   :  { %v6814_v37 = vpop.xlane.xlu1 %6813  ;;  %v6811_v57 = vpop.xlane.xlu0 %6810  ;;  %v6884_v60 = vsel %vm1539_vm3, %v15311_v35, 0.0 }
 0x7cf   :  { %13506 = vpow2.f32 %v6864_v52  ;;  %v6844_v36 = vsub.f32 %v15214_v3, %v6814_v37  ;;  %v6843_v40 = vsub.f32 %v15212_v1, %v6811_v57  ;;  %6885 = vadd.xlane.f32.xlu1 %v6884_v60 }
 0x7d0   :  { %13508 = vpow2.f32 %v6862_v46 }
 0x7d1   :  { %v15317_v28 = vpop.eup %13498  ;;  %v6868_v5 = vmul.f32 1.442695, %v6844_v36  ;;  %v6866_v41 = vmul.f32 1.442695, %v6843_v40 }
 0x7d2   :  { %v15319_v62 = vpop.eup %13500  ;;  %v6820_v19 = vpop.xlane.xlu1 %6819  ;;  %v6887_v13 = vsel %vm1539_vm3, %v15317_v28, 0.0 }
 0x7d3   :  { %v6817_v11 = vpop.xlane.xlu0 %6816  ;;  %13510 = vpow2.f32 %v6868_v5  ;;  %v6846_v54 = vsub.f32 %v15222_v61, %v6820_v19  ;;  %6888 = vadd.xlane.f32.xlu0 %v6887_v13  ;;  %v6890_v1 = vsel %vm1539_vm3, %v15319_v62, 0.0 }
 0x7d4   :  { %v6845_v3 = vsub.f32 %v15220_v53, %v6817_v11  ;;  %13512 = vpow2.f32 %v6866_v41  ;;  %6891 = vadd.xlane.f32.xlu1 %v6890_v1 }
 0x7d5   :  { %v15327_v32 = vpop.eup %13502  ;;  %v6872_v42 = vmul.f32 1.442695, %v6846_v54 }
 0x7d6   :  { %v6870_v17 = vmul.f32 1.442695, %v6845_v3  ;;  %v15329_v6 = vpop.eup %13504  ;;  %v6826_v31 = vpop.xlane.xlu1 %6825  ;;  %v6896_v46 = vsel %vm1539_vm3, %v15327_v32, 0.0 }
 0x7d7   :  { %v6823_v52 = vpop.xlane.xlu0 %6822  ;;  %13514 = vpow2.f32 %v6872_v42  ;;  %v6848_v53 = vsub.f32 %v15230_v45, %v6826_v31  ;;  %v6893_v37 = vsel %vm1539_vm3, %v15329_v6, 0.0 }
 0x7d8   :  { %v6847_v61 = vsub.f32 %v15228_v27, %v6823_v52  ;;  %13516 = vpow2.f32 %v6870_v17  ;;  %6897 = vadd.xlane.f32.xlu1 %v6896_v46  ;;  %6894 = vadd.xlane.f32.xlu0 %v6893_v37 }
 0x7d9   :  { %v15337_v57 = vpop.eup %13506  ;;  %v6876_v60 = vmul.f32 1.442695, %v6848_v53 }
 0x7da   :  { %v6874_v36 = vmul.f32 1.442695, %v6847_v61  ;;  %v15339_v40 = vpop.eup %13508  ;;  %v6902_v41 = vsel %vm1539_vm3, %v15337_v57, 0.0 }
 0x7db   :  { %v6829_v5 = vpop.xlane.xlu0 %6828  ;;  %13518 = vpow2.f32 %v6876_v60  ;;  %v6899_v27 = vsel %vm1539_vm3, %v15339_v40, 0.0  ;;  %v6832_v60 = vpop.xlane.xlu1 %6831 }
 0x7dc   :  { %v6849_v45 = vsub.f32 %v15236_v44, %v6829_v5  ;;  %13520 = vpow2.f32 %v6874_v36  ;;  %6903 = vadd.xlane.f32.xlu1 %v6902_v41  ;;  %6900 = vadd.xlane.f32.xlu0 %v6899_v27  ;;  %v6850_v36 = vsub.f32 %v15238_v49, %v6832_v60 }
 0x7dd   :  { %v15346_v19 = vpop.eup %13510 }
 0x7de   :  { %v6878_v11 = vmul.f32 1.442695, %v6849_v45  ;;  %v15348_v13 = vpop.eup %13512  ;;  %v6908_v54 = vsel %vm1539_vm3, %v15346_v19, 0.0  ;;  %v6880_v41 = vmul.f32 1.442695, %v6850_v36 }
 0x7df   :  { %v6905_v3 = vsel %vm1539_vm3, %v15348_v13, 0.0  ;;  %v6835_v5 = vpop.xlane.xlu0 %6834 }
 0x7e0   :  { %13522 = vpow2.f32 %v6878_v11  ;;  %6909 = vadd.xlane.f32.xlu1 %v6908_v54  ;;  %6906 = vadd.xlane.f32.xlu0 %v6905_v3  ;;  %v6851_v45 = vsub.f32 %v15244_v7, %v6835_v5 }
 0x7e1   :  { %v15354_v44 = vpop.eup %13514  ;;  %13524 = vpow2.f32 %v6880_v41 }
 0x7e2   :  { %v15356_v1 = vpop.eup %13516  ;;  %v6914_v42 = vsel %vm1539_vm3, %v15354_v44, 0.0  ;;  %v6882_v27 = vmul.f32 1.442695, %v6851_v45  ;;  %v16666_v45 = vld [vmem:[#allocation52_spill] sm:$0xff] }
 0x7e3   :  { %v6911_v17 = vsel %vm1539_vm3, %v15356_v1, 0.0 }
 0x7e4   :  { %6915 = vadd.xlane.f32.xlu1 %v6914_v42  ;;  %6912 = vadd.xlane.f32.xlu0 %v6911_v17  ;;  %13526 = vpow2.f32 %v6882_v27  ;;  %v16665_v17 = vld [vmem:[#allocation53_spill] sm:$0xff] }
 0x7e5   :  { %v15362_v31 = vpop.eup %13518 }
 0x7e6   :  { %v15364_v52 = vpop.eup %13520  ;;  %v6920_v46 = vsel %vm1539_vm3, %v15362_v31, 0.0 }
 0x7e7   :  { %v6917_v53 = vsel %vm1539_vm3, %v15364_v52, 0.0 }
 0x7e8   :  { %6921 = vadd.xlane.f32.xlu1 %v6920_v46  ;;  %6918 = vadd.xlane.f32.xlu0 %v6917_v53 }
 0x7ea   :  { %v15370_v61 = vpop.eup %13522 }
 0x7eb   :  { %v6923_v37 = vsel %vm1539_vm3, %v15370_v61, 0.0  ;;  %v15380_v11 = vpop.eup %13524 }
 0x7ec   :  { %6924 = vadd.xlane.f32.xlu0 %v6923_v37  ;;  %v6926_v54 = vsel %vm1539_vm3, %v15380_v11, 0.0 }
 0x7ee   :  { %v15384_v3 = vpop.eup %13526 }
 0x7f9   :  { %8726 = vrot.lane.b32.xlu1 %v13987_v14, %s13809_s29  ;;  %v15428_v14 = vpop.permute.xlu1 %8728 }
 0x802   :  { %8648 = vrot.lane.b32.xlu0 %v13979_v10, %s13809_s29  ;;  %v6929_v10 = vsel %vm1539_vm3, %v15384_v3, 0.0 }
 0x81d   :  { %6927 = vadd.xlane.f32.xlu1 %v6926_v54 }
 0x821   :  { %6930 = vadd.xlane.f32.xlu0 %v6929_v10 }
 0x82e   :  { %8884 = vrot.lane.b32.xlu1 %v14003_v22, %s13801_s21 }
 0x832   :  { %8882 = vrot.lane.b32.xlu1 %v14003_v22, %s13809_s29 }
 0x836   :  { %9040 = vrot.lane.b32.xlu1 %v14019_v30, %s13801_s21 }
 0x837   :  { %8806 = vrot.lane.b32.xlu0 %v13995_v18, %s13801_s21 }
 0x83a   :  { %9038 = vrot.lane.b32.xlu1 %v14019_v30, %s13809_s29 }
 0x83b   :  { %8804 = vrot.lane.b32.xlu0 %v13995_v18, %s13809_s29 }
 0x83e   :  { %9196 = vrot.lane.b32.xlu1 %v14035_v38, %s13801_s21 }
 0x83f   :  { %8962 = vrot.lane.b32.xlu0 %v14011_v26, %s13801_s21 }
 0x842   :  { %9194 = vrot.lane.b32.xlu1 %v14035_v38, %s13809_s29 }
 0x843   :  { %8960 = vrot.lane.b32.xlu0 %v14011_v26, %s13809_s29 }
 0x846   :  { %9352 = vrot.lane.b32.xlu1 %v14051_v56, %s13801_s21 }
 0x847   :  { %9118 = vrot.lane.b32.xlu0 %v14027_v34, %s13801_s21 }
 0x84a   :  { %9350 = vrot.lane.b32.xlu1 %v14051_v56, %s13809_s29 }
 0x84b   :  { %9116 = vrot.lane.b32.xlu0 %v14027_v34, %s13809_s29 }
 0x84e   :  { %9604 = vrot.lane.b32.xlu1 %v13932_v51, %s13809_s29  ;;  %v15434_v51 = vpop.permute.xlu0 %8650 }
 0x84f   :  { %9274 = vrot.lane.b32.xlu0 %v14043_v48, %s13801_s21 }
 0x852   :  { %9756 = vrot.lane.b32.xlu1 %v13948_v59, %s13809_s29 }
 0x853   :  { %9272 = vrot.lane.b32.xlu0 %v14043_v48, %s13809_s29 }
 0x856   :  { %9908 = vrot.lane.b32.xlu1 %v13966_v4, %s13809_s29 }
 0x857   :  { %9680 = vrot.lane.b32.xlu0 %v13940_v55, %s13809_s29 }
 0x85a   :  { %9984 = vrot.lane.b32.xlu1 %v13974_v8, %s13809_s29 }
 0x85b   :  { %9832 = vrot.lane.b32.xlu0 %v13956_v63, %s13809_s29 }
 0x85c   :  { %v6886_v59 = vpop.xlane.xlu1 %6885 }
 0x85d   :  { %13528 = vrcp.f32 %v6886_v59  ;;  %v16667_v59 = vld [vmem:[#allocation54_spill] sm:$0xff] }
 0x85e   :  { %10136 = vrot.lane.b32.xlu1 %v13990_v16, %s13809_s29 }
 0x85f   :  { %10060 = vrot.lane.b32.xlu0 %v13982_v12, %s13809_s29 }
 0x860   :  { %v6889_v4 = vpop.xlane.xlu0 %6888 }
 0x861   :  { %v6892_v55 = vpop.xlane.xlu1 %6891  ;;  %13530 = vrcp.f32 %v6889_v4  ;;  %v16669_v4 = vld [vmem:[#allocation57_spill] sm:$0xff] }
 0x862   :  { %13532 = vrcp.f32 %v6892_v55  ;;  %10288 = vrot.lane.b32.xlu1 %v14006_v24, %s13809_s29 }
 0x863   :  { %10212 = vrot.lane.b32.xlu0 %v13998_v20, %s13809_s29 }
 0x865   :  { %v6898_v63 = vpop.xlane.xlu1 %6897  ;;  %v6895_v8 = vpop.xlane.xlu0 %6894 }
 0x866   :  { %13534 = vrcp.f32 %v6898_v63  ;;  %v16670_v63 = vld [vmem:[#allocation56_spill] sm:$0xff] }
 0x867   :  { %v13529_v18 = vpop.eup %13528  ;;  %13536 = vrcp.f32 %v6895_v8  ;;  %v16671_v8 = vld [vmem:[#allocation59_spill] sm:$0xff] }
 0x868   :  { %v6948_v16 = vmul.f32 %v13529_v18, %v15311_v35  ;;  %v16672_v18 = vld [vmem:[#allocation58_spill] sm:$0xff] }
 0x869   :  { %v6904_v22 = vpop.xlane.xlu1 %6903  ;;  %v6901_v26 = vpop.xlane.xlu0 %6900 }
 0x86a   :  { %13538 = vrcp.f32 %v6904_v22  ;;  %13033 = vmatmul.mubr.msk.f32.vlgmr.msra.gmra.mrb[98].mxu1 %vm1539_vm3, %v6948_v16  ;;  %v16673_v16 = vld [vmem:[#allocation61_spill] sm:$0xff] }
 0x86b   :  { %v13531_v12 = vpop.eup %13530  ;;  %13540 = vrcp.f32 %v6901_v26  ;;  %13041 = vmatpush3.msra.mxu1 %v15256_v33  ;;  %13042 = vmatprep.mubr.msk.f32.mxu1 %vm13803_vm1, %v16575_v21  ;;  %v16674_v26 = vld [vmem:[#allocation60_spill] sm:$0xff] }
 0x86c   :  { %v13533_v20 = vpop.eup %13532  ;;  %13050 = vmatprep.subr.mxu1 %v16575_v21  ;;  %v6949_v24 = vmul.f32 %v13531_v12, %v15317_v28  ;;  %v16675_v12 = vld [vmem:[#allocation63_spill] sm:$0xff] }
 0x86d   :  { %v6910_v30 = vpop.xlane.xlu1 %6909  ;;  %v6907_v34 = vpop.xlane.xlu0 %6906  ;;  %v6950_v38 = vmul.f32 %v13533_v20, %v15319_v62  ;;  %v16676_v20 = vld [vmem:[#allocation62_spill] sm:$0xff] }
 0x86e   :  { %13542 = vrcp.f32 %v6910_v30  ;;  %13038 = vmatmul.mubr.msk.f32.vlgmr.msra.gmra.mrb[94].mxu0 %vm1539_vm3, %v6949_v24  ;;  %v16677_v30 = vld [vmem:[#allocation64_spill] sm:$0xff] }
 0x86f   :  { %13544 = vrcp.f32 %v6907_v34  ;;  %13043 = vmatmul.mubr.msk.f32.vlgmr.msra.gmra.mrb[100].mxu1 %vm1539_vm3, %v6950_v38  ;;  %13046 = vmatpush3.msra.mxu0 %v15252_v43 }
 0x870   :  { %v13535_v48 = vpop.eup %13534  ;;  %13051 = vmatpush3.msra.mxu1 %v15260_v50  ;;  %13047 = vmatprep.mubr.msk.f32.mxu0 %vm13803_vm1, %v16575_v21 }
 0x871   :  { %v13537_v56 = vpop.eup %13536  ;;  %v6916_v49 = vpop.xlane.xlu1 %6915  ;;  %13052 = vmatprep.mubr.msk.f32.mxu1 %vm13803_vm1, %v16575_v21  ;;  %13055 = vmatprep.subr.mxu0 %v16575_v21  ;;  %v6952_v33 = vmul.f32 %v13535_v48, %v15327_v32 }
 0x872   :  { %v6913_v7 = vpop.xlane.xlu0 %6912  ;;  %13546 = vrcp.f32 %v6916_v49  ;;  %13060 = vmatprep.subr.mxu1 %v16575_v21  ;;  %v6951_v43 = vmul.f32 %v13537_v56, %v15329_v6 }
 0x873   :  { %13548 = vrcp.f32 %v6913_v7  ;;  %13053 = vmatmul.mubr.msk.f32.vlgmr.msra.gmra.mrb[102].mxu1 %vm1539_vm3, %v6952_v33 }
 0x874   :  { %v13539_v50 = vpop.eup %13538  ;;  %13048 = vmatmul.mubr.msk.f32.vlgmr.msra.gmra.mrb[96].mxu0 %vm1539_vm3, %v6951_v43  ;;  %13061 = vmatpush3.msra.mxu1 %v15258_v15 }
 0x875   :  { %v13541_v35 = vpop.eup %13540  ;;  %13056 = vmatpush3.msra.mxu0 %v15254_v29  ;;  %v6922_v28 = vpop.xlane.xlu1 %6921  ;;  %13057 = vmatprep.mubr.msk.f32.mxu0 %vm13803_vm1, %v16575_v21  ;;  %v6954_v32 = vmul.f32 %v13539_v50, %v15337_v57 }
 0x876   :  { %v6919_v62 = vpop.xlane.xlu0 %6918  ;;  %13550 = vrcp.f32 %v6922_v28  ;;  %13062 = vmatprep.mubr.msk.f32.mxu1 %vm13803_vm1, %v16575_v21  ;;  %13065 = vmatprep.subr.mxu0 %v16575_v21  ;;  %v6953_v6 = vmul.f32 %v13541_v35, %v15339_v40 }
 0x877   :  { %13552 = vrcp.f32 %v6919_v62  ;;  %13070 = vmatprep.subr.mxu1 %v16575_v21  ;;  %13063 = vmatmul.mubr.msk.f32.vlgmr.msra.gmra.mrb[104].mxu1 %vm1539_vm3, %v6954_v32 }
 0x878   :  { %v13543_v29 = vpop.eup %13542  ;;  %13058 = vmatmul.mubr.msk.f32.vlgmr.msra.gmra.mrb[98].mxu0 %vm1539_vm3, %v6953_v6  ;;  %13071 = vmatpush3.msra.mxu1 %v15264_v9 }
 0x879   :  { %v13545_v15 = vpop.eup %13544  ;;  %13066 = vmatpush3.msra.mxu0 %v15262_v2  ;;  %13067 = vmatprep.mubr.msk.f32.mxu0 %vm13803_vm1, %v16575_v21  ;;  %v6956_v42 = vmul.f32 %v13543_v29, %v15346_v19 }
 0x87a   :  { %v6925_v57 = vpop.xlane.xlu0 %6924  ;;  %13072 = vmatprep.mubr.msk.f32.mxu1 %vm13803_vm1, %v16575_v21  ;;  %13075 = vmatprep.subr.mxu0 %v16575_v21  ;;  %v6955_v40 = vmul.f32 %v13545_v15, %v15348_v13 }
 0x87b   :  { %13554 = vrcp.f32 %v6925_v57  ;;  %13080 = vmatprep.subr.mxu1 %v16575_v21  ;;  %13073 = vmatmul.mubr.msk.f32.vlgmr.msra.gmra.mrb[106].mxu1 %vm1539_vm3, %v6956_v42 }
 0x87c   :  { %v13547_v9 = vpop.eup %13546  ;;  %13068 = vmatmul.mubr.msk.f32.vlgmr.msra.gmra.mrb[100].mxu0 %vm1539_vm3, %v6955_v40  ;;  %13081 = vmatpush3.msra.mxu1 %v15268_v25 }
 0x87d   :  { %v13549_v2 = vpop.eup %13548  ;;  %13076 = vmatpush3.msra.mxu0 %v15266_v0  ;;  %13077 = vmatprep.mubr.msk.f32.mxu0 %vm13803_vm1, %v16575_v21  ;;  %v6958_v19 = vmul.f32 %v13547_v9, %v15354_v44 }
 0x87e   :  { %13082 = vmatprep.mubr.msk.f32.mxu1 %vm13803_vm1, %v16575_v21  ;;  %13085 = vmatprep.subr.mxu0 %v16575_v21  ;;  %v6957_v13 = vmul.f32 %v13549_v2, %v15356_v1 }
 0x87f   :  { %13090 = vmatprep.subr.mxu1 %v16575_v21  ;;  %13083 = vmatmul.mubr.msk.f32.vlgmr.msra.gmra.mrb[108].mxu1 %vm1539_vm3, %v6958_v19 }
 0x880   :  { %v13551_v25 = vpop.eup %13550  ;;  %13078 = vmatmul.mubr.msk.f32.vlgmr.msra.gmra.mrb[102].mxu0 %vm1539_vm3, %v6957_v13  ;;  %13091 = vmatpush3.msra.mxu1 %v15272_v58 }
 0x881   :  { %v13553_v0 = vpop.eup %13552  ;;  %13086 = vmatpush3.msra.mxu0 %v15270_v23  ;;  %13087 = vmatprep.mubr.msk.f32.mxu0 %vm13803_vm1, %v16575_v21  ;;  %v6960_v44 = vmul.f32 %v13551_v25, %v15362_v31 }
 0x882   :  { %13092 = vmatprep.mubr.msk.f32.mxu1 %vm13803_vm1, %v16575_v21  ;;  %13095 = vmatprep.subr.mxu0 %v16575_v21  ;;  %v6959_v1 = vmul.f32 %v13553_v0, %v15364_v52 }
 0x883   :  { %13100 = vmatprep.subr.mxu1 %v16575_v21  ;;  %13093 = vmatmul.mubr.msk.f32.vlgmr.msra.gmra.mrb[110].mxu1 %vm1539_vm3, %v6960_v44 }
 0x884   :  { %13088 = vmatmul.mubr.msk.f32.vlgmr.msra.gmra.mrb[104].mxu0 %vm1539_vm3, %v6959_v1  ;;  %13101 = vmatpush3.msra.mxu1 %v15276_v39  ;;  %v8727_v39 = vpop.permute.xlu1 %8726 }
 0x885   :  { %v13555_v58 = vpop.eup %13554  ;;  %13096 = vmatpush3.msra.mxu0 %v15274_v47  ;;  %13097 = vmatprep.mubr.msk.f32.mxu0 %vm13803_vm1, %v16575_v21  ;;  %v8649_v47 = vpop.permute.xlu0 %8648 }
 0x886   :  { %v6961_v23 = vmul.f32 %v13555_v58, %v15370_v61  ;;  %13105 = vmatprep.subr.mxu0 %v16575_v21  ;;  %13102 = vmatprep.mubr.msk.f32.mxu1 %vm13803_vm1, %v16575_v21 }
 0x887   :  { %13110 = vmatprep.subr.mxu1 %v16575_v21 }
 0x888   :  { %13098 = vmatmul.mubr.msk.f32.vlgmr.msra.gmra.mrb[106].mxu0 %vm1539_vm3, %v6961_v23 }
 0x889   :  { %13106 = vmatpush3.msra.mxu0 %v16665_v17  ;;  %13107 = vmatprep.mubr.msk.f32.mxu0 %vm13803_vm1, %v16575_v21 }
 0x88a   :  { %13115 = vmatprep.subr.mxu0 %v16575_v21 }
 0x8aa   :  { %v6928_v31 = vpop.xlane.xlu1 %6927 }
 0x8ab   :  { %13556 = vrcp.f32 %v6928_v31 }
 0x8ae   :  { %v8885_v52 = vpop.permute.xlu1 %8884  ;;  %v6931_v46 = vpop.xlane.xlu0 %6930 }
 0x8af   :  { %13558 = vrcp.f32 %v6931_v46 }
 0x8b2   :  { %v8883_v53 = vpop.permute.xlu1 %8882  ;;  %v8807_v61 = vpop.permute.xlu0 %8806 }
 0x8b5   :  { %v13557_v37 = vpop.eup %13556 }
 0x8b6   :  { %v9041_v60 = vpop.permute.xlu1 %9040  ;;  %v8805_v36 = vpop.permute.xlu0 %8804  ;;  %v6962_v5 = vmul.f32 %v13557_v37, %v15380_v11  ;;  %v16668_v11 = vld [vmem:[#allocation55_spill] sm:$0xff] }
 0x8b8   :  { %13103 = vmatmul.mubr.msk.f32.vlgmr.msra.gmra.mrb[112].mxu1 %vm1539_vm3, %v6962_v5 }
 0x8b9   :  { %v13559_v41 = vpop.eup %13558  ;;  %13111 = vmatpush3.xpose.msk.msra.mxu1 %vm309_vm2, %v16666_v45  ;;  %13112 = vmatprep.mubr.msk.f32.mxu1 %vm13803_vm1, %v16575_v21 }
 0x8ba   :  { %v9039_v27 = vpop.permute.xlu1 %9038  ;;  %v8963_v54 = vpop.permute.xlu0 %8962  ;;  %13120 = vmatprep.subr.mxu1 %v16575_v21  ;;  %v6963_v10 = vmul.f32 %v13559_v41, %v15384_v3 }
 0x8bc   :  { %13108 = vmatmul.mubr.msk.f32.vlgmr.msra.gmra.mrb[108].mxu0 %vm1539_vm3, %v6963_v10  ;;  %13113 = vmatmul.mubr.msk.f32.vlgmr.msra.gmra.mrb[114].mxu1 %vm309_vm2, %v16667_v59 }
 0x8bd   :  { %13116 = vmatpush3.xpose.msk.msra.mxu0 %vm309_vm2, %v16668_v11  ;;  %13121 = vmatpush3.xpose.msk.msra.mxu1 %vm309_vm2, %v16669_v4 }
 0x8be   :  { %v8961_v55 = vpop.permute.xlu0 %8960  ;;  %13117 = vmatprep.mubr.msk.f32.mxu0 %vm13803_vm1, %v16575_v21  ;;  %13122 = vmatprep.mubr.msk.f32.mxu1 %vm13803_vm1, %v16575_v21  ;;  %v9197_v3 = vpop.permute.xlu1 %9196 }
 0x8bf   :  { %13125 = vmatprep.subr.mxu0 %v16575_v21  ;;  %13130 = vmatprep.subr.mxu1 %v16575_v21 }
 0x8c0   :  { %13118 = vmatmul.mubr.msk.f32.vlgmr.msra.gmra.mrb[110].mxu0 %vm309_vm2, %v16670_v63  ;;  %13123 = vmatmul.mubr.msk.f32.vlgmr.msra.gmra.mrb[116].mxu1 %vm309_vm2, %v16671_v8 }
 0x8c1   :  { %13126 = vmatpush3.xpose.msk.msra.mxu0 %vm309_vm2, %v16672_v18  ;;  %13131 = vmatpush3.xpose.msk.msra.mxu1 %vm309_vm2, %v16673_v16 }
 0x8c2   :  { %13127 = vmatprep.mubr.msk.f32.mxu0 %vm13803_vm1, %v16575_v21  ;;  %13132 = vmatprep.mubr.msk.f32.mxu1 %vm13803_vm1, %v16575_v21  ;;  %v9119_v22 = vpop.permute.xlu0 %9118  ;;  %v9195_v24 = vpop.permute.xlu1 %9194 }
 0x8c3   :  { %13135 = vmatprep.subr.mxu0 %v16575_v21  ;;  %13140 = vmatprep.subr.mxu1 %v16575_v21 }
 0x8c4   :  { %13128 = vmatmul.mubr.msk.f32.vlgmr.msra.gmra.mrb[112].mxu0 %vm309_vm2, %v16674_v26  ;;  %13133 = vmatmul.mubr.msk.f32.vlgmr.msra.gmra.mrb[118].mxu1 %vm309_vm2, %v16675_v12 }
 0x8c5   :  { %13136 = vmatpush3.xpose.msk.msra.mxu0 %vm309_vm2, %v16676_v20  ;;  %13141 = vmatpush3.xpose.msk.msra.mxu1 %vm309_vm2, %v15434_v51 }
 0x8c6   :  { %13137 = vmatprep.mubr.msk.f32.mxu0 %vm13803_vm1, %v16575_v21  ;;  %13142 = vmatprep.mubr.msk.f32.mxu1 %vm13803_vm1, %v16575_v21  ;;  %v9117_v51 = vpop.permute.xlu0 %9116  ;;  %v9353_v34 = vpop.permute.xlu1 %9352 }
 0x8c7   :  { %13145 = vmatprep.subr.mxu0 %v16575_v21  ;;  %13150 = vmatprep.subr.mxu1 %v16575_v21 }
 0x8c8   :  { %13138 = vmatmul.mubr.msk.f32.vlgmr.msra.gmra.mrb[114].mxu0 %vm309_vm2, %v16677_v30  ;;  %13143 = vmatmul.mubr.msk.f32.vlgmr.msra.gmra.mrb[120].mxu1 %vm309_vm2, %v8649_v47 }
 0x8c9   :  { %13146 = vmatpush3.xpose.msk.msra.mxu0 %vm309_vm2, %v15428_v14  ;;  %13151 = vmatpush3.xpose.msk.msra.mxu1 %vm309_vm2, %v8807_v61 }
 0x8ca   :  { %13147 = vmatprep.mubr.msk.f32.mxu0 %vm13803_vm1, %v16575_v21  ;;  %13152 = vmatprep.mubr.msk.f32.mxu1 %vm13803_vm1, %v16575_v21  ;;  %v9275_v14 = vpop.permute.xlu0 %9274  ;;  %v9351_v38 = vpop.permute.xlu1 %9350 }
 0x8cb   :  { %13155 = vmatprep.subr.mxu0 %v16575_v21  ;;  %13160 = vmatprep.subr.mxu1 %v16575_v21 }
 0x8cc   :  { %13148 = vmatmul.mubr.msk.f32.vlgmr.msra.gmra.mrb[116].mxu0 %vm309_vm2, %v8727_v39  ;;  %13153 = vmatmul.mubr.msk.f32.vlgmr.msra.gmra.mrb[122].mxu1 %vm309_vm2, %v8805_v36 }
 0x8cd   :  { %13156 = vmatpush3.xpose.msk.msra.mxu0 %vm309_vm2, %v8885_v52  ;;  %13161 = vmatpush3.xpose.msk.msra.mxu1 %vm309_vm2, %v8963_v54 }
 0x8ce   :  { %13157 = vmatprep.mubr.msk.f32.mxu0 %vm13803_vm1, %v16575_v21  ;;  %13162 = vmatprep.mubr.msk.f32.mxu1 %vm13803_vm1, %v16575_v21  ;;  %v9273_v48 = vpop.permute.xlu0 %9272  ;;  %v9605_v56 = vpop.permute.xlu1 %9604 }
 0x8cf   :  { %13165 = vmatprep.subr.mxu0 %v16575_v21  ;;  %13170 = vmatprep.subr.mxu1 %v16575_v21 }
 0x8d0   :  { %13158 = vmatmul.mubr.msk.f32.vlgmr.msra.gmra.mrb[118].mxu0 %vm309_vm2, %v8883_v53  ;;  %13163 = vmatmul.mubr.msk.f32.vlgmr.msra.gmra.mrb[124].mxu1 %vm309_vm2, %v8961_v55 }
 0x8d1   :  { %13166 = vmatpush3.xpose.msk.msra.mxu0 %vm309_vm2, %v9041_v60  ;;  %13171 = vmatpush3.xpose.msk.msra.mxu1 %vm309_vm2, %v9119_v22 }
 0x8d2   :  { %13167 = vmatprep.mubr.msk.f32.mxu0 %vm13803_vm1, %v16575_v21  ;;  %13172 = vmatprep.mubr.msk.f32.mxu1 %vm13803_vm1, %v16575_v21  ;;  %v9681_v49 = vpop.permute.xlu0 %9680 }
 0x8d3   :  { %13175 = vmatprep.subr.mxu0 %v16575_v21  ;;  %13180 = vmatprep.subr.mxu1 %v16575_v21 }
 0x8d4   :  { %13168 = vmatmul.mubr.msk.f32.vlgmr.msra.gmra.mrb[120].mxu0 %vm309_vm2, %v9039_v27  ;;  %13173 = vmatmul.mubr.msk.f32.vlgmr.msra.gmra.mrb[126].mxu1 %vm309_vm2, %v9117_v51 }
 0x8d5   :  { %13176 = vmatpush3.xpose.msk.msra.mxu0 %vm309_vm2, %v9197_v3  ;;  %13181 = vmatpush3.xpose.msk.msra.mxu1 %vm309_vm2, %v9275_v14 }
 0x8d6   :  { %13177 = vmatprep.mubr.msk.f32.mxu0 %vm13803_vm1, %v16575_v21  ;;  %13182 = vmatprep.mubr.msk.f32.mxu1 %vm13803_vm1, %v16575_v21 }
 0x8d7   :  { %13185 = vmatprep.subr.mxu0 %v16575_v21  ;;  %13190 = vmatprep.subr.mxu1 %v16575_v21 }
 0x8d8   :  { %13178 = vmatmul.mubr.msk.f32.vlgmr.msra.gmra.mrb[122].mxu0 %vm309_vm2, %v9195_v24  ;;  %13183 = vmatmul.mubr.msk.f32.vlgmr.msra.gmra.mrb[128].mxu1 %vm309_vm2, %v9273_v48 }
 0x8d9   :  { %13186 = vmatpush3.xpose.msk.msra.mxu0 %vm309_vm2, %v9353_v34  ;;  %13191 = vmatpush3.msra.mxu1 %v9605_v56 }
 0x8da   :  { %13187 = vmatprep.mubr.msk.f32.mxu0 %vm13803_vm1, %v16575_v21  ;;  %13195 = vmatprep.subr.mxu0 %v16575_v21 }
 0x8db   :  { %13192 = vmatprep.mubr.msk.f32.mxu1 %vm13803_vm1, %v16575_v21  ;;  %13200 = vmatprep.subr.mxu1 %v16575_v21 }
 0x8dc   :  { %13188 = vmatmul.mubr.msk.f32.vlgmr.msra.gmra.mrb[124].mxu0 %vm309_vm2, %v9351_v38 }
 0x8dd   :  { %13196 = vmatpush3.msra.mxu0 %v9681_v49  ;;  %13197 = vmatprep.mubr.msk.f32.mxu0 %vm13803_vm1, %v16575_v21 }
 0x8de   :  { %13205 = vmatprep.subr.mxu0 %v16575_v21 }
 0x93d   :  { %v15632_v7 = vpop.f32.mrb[98].mxu1 }
 0x93e   :  { %v13034_v33 = vpop.f32.mrb[99].mxu1 }
 0x941   :  { %v15634_v43 = vpop.f32.mrb[94].mxu0 }
 0x942   :  { %v15636_v50 = vpop.f32.mrb[100].mxu1  ;;  %v13039_v35 = vpop.f32.mrb[95].mxu0 }
 0x943   :  { %v13044_v28 = vpop.f32.mrb[101].mxu1 }
 0x946   :  { %v15638_v62 = vpop.f32.mrb[102].mxu1 }
 0x947   :  { %v15640_v32 = vpop.f32.mrb[96].mxu0  ;;  %v13054_v6 = vpop.f32.mrb[103].mxu1 }
 0x948   :  { %v13049_v29 = vpop.f32.mrb[97].mxu0 }
 0x94a   :  { %v15642_v15 = vpop.f32.mrb[104].mxu1 }
 0x94b   :  { %v15644_v57 = vpop.f32.mrb[98].mxu0  ;;  %v13064_v42 = vpop.f32.mrb[105].mxu1 }
 0x94c   :  { %v13059_v40 = vpop.f32.mrb[99].mxu0 }
 0x94e   :  { %v15646_v9 = vpop.f32.mrb[106].mxu1 }
 0x94f   :  { %v15648_v2 = vpop.f32.mrb[100].mxu0  ;;  %v13074_v19 = vpop.f32.mrb[107].mxu1 }
 0x950   :  { %v13069_v13 = vpop.f32.mrb[101].mxu0 }
 0x952   :  { %v15650_v25 = vpop.f32.mrb[108].mxu1 }
 0x953   :  { %v15652_v0 = vpop.f32.mrb[102].mxu0  ;;  %v13084_v44 = vpop.f32.mrb[109].mxu1 }
 0x954   :  { %v13079_v1 = vpop.f32.mrb[103].mxu0 }
 0x956   :  { %v15654_v58 = vpop.f32.mrb[110].mxu1 }
 0x957   :  { %v15656_v23 = vpop.f32.mrb[104].mxu0  ;;  %v13094_v17 = vpop.f32.mrb[111].mxu1 }
 0x958   :  { %v13089_v39 = vpop.f32.mrb[105].mxu0 }
 0x95b   :  { %v15658_v47 = vpop.f32.mrb[106].mxu0 }
 0x95c   :  { %v13099_v31 = vpop.f32.mrb[107].mxu0 }
 0x98b   :  { %v15660_v52 = vpop.f32.mrb[112].mxu1 }
 0x98c   :  { %v13104_v46 = vpop.f32.mrb[113].mxu1 }
 0x98f   :  { %v15662_v53 = vpop.f32.mrb[108].mxu0  ;;  %v15664_v61 = vpop.f32.mrb[114].mxu1 }
 0x990   :  { %v13109_v37 = vpop.f32.mrb[109].mxu0  ;;  %v13114_v60 = vpop.f32.mrb[115].mxu1  ;;  %v9428_v36 = vsel %vm1539_vm3, %v15664_v61, -inf }
 0x991   :  { %9429 = vmax.xlane.f32.xlu0 %v9428_v36  ;;  %v16678_v36 = vld [vmem:[#allocation19_spill] sm:$0xff] }
 0x993   :  { %v15668_v5 = vpop.f32.mrb[110].mxu0  ;;  %v15670_v41 = vpop.f32.mrb[116].mxu1 }
 0x994   :  { %v13119_v45 = vpop.f32.mrb[111].mxu0  ;;  %v13124_v27 = vpop.f32.mrb[117].mxu1  ;;  %v9434_v54 = vsel %vm1539_vm3, %v15670_v41, -inf  ;;  %v9431_v10 = vsel %vm1539_vm3, %v15668_v5, -inf }
 0x995   :  { %9435 = vmax.xlane.f32.xlu0 %v9434_v54  ;;  %9432 = vmax.xlane.f32.xlu1 %v9431_v10  ;;  %v16679_v45 = vld [vmem:[#allocation21_spill] sm:$0xff]  ;;  %v16680_v27 = vld [vmem:[#allocation18_spill] sm:$0xff]  ;;  %v16681_v54 = vld [vmem:[#allocation20_spill] sm:$0xff]  ;;  %v15736_v10 = vpop.permute.xlu1 %9756 }
 0x997   :  { %v15676_v59 = vpop.f32.mrb[112].mxu0  ;;  %v15678_v11 = vpop.f32.mrb[118].mxu1 }
 0x998   :  { %v13129_v4 = vpop.f32.mrb[113].mxu0  ;;  %v13134_v55 = vpop.f32.mrb[119].mxu1  ;;  %v9440_v3 = vsel %vm1539_vm3, %v15678_v11, -inf  ;;  %v9437_v63 = vsel %vm1539_vm3, %v15676_v59, -inf }
 0x999   :  { %9441 = vmax.xlane.f32.xlu1 %v9440_v3  ;;  %9438 = vmax.xlane.f32.xlu0 %v9437_v63  ;;  %v15738_v4 = vpop.permute.xlu1 %9908  ;;  %v15740_v55 = vpop.permute.xlu0 %9832 }
 0x99b   :  { %v15684_v8 = vpop.f32.mrb[114].mxu0  ;;  %v15686_v18 = vpop.f32.mrb[120].mxu1 }
 0x99c   :  { %v13139_v16 = vpop.f32.mrb[115].mxu0  ;;  %v13144_v22 = vpop.f32.mrb[121].mxu1  ;;  %v9446_v26 = vsel %vm1539_vm3, %v15686_v18, -inf  ;;  %v9443_v12 = vsel %vm1539_vm3, %v15684_v8, -inf }
 0x99d   :  { %9447 = vmax.xlane.f32.xlu1 %v9446_v26  ;;  %9444 = vmax.xlane.f32.xlu0 %v9443_v12  ;;  %v15742_v3 = vpop.permute.xlu1 %9984  ;;  %v15744_v63 = vpop.permute.xlu0 %10060 }
 0x99f   :  { %v15692_v20 = vpop.f32.mrb[116].mxu0  ;;  %v15694_v24 = vpop.f32.mrb[122].mxu1 }
 0x9a0   :  { %v13149_v30 = vpop.f32.mrb[117].mxu0  ;;  %v13154_v51 = vpop.f32.mrb[123].mxu1  ;;  %v9449_v34 = vsel %vm1539_vm3, %v15692_v20, -inf  ;;  %v9452_v14 = vsel %vm1539_vm3, %v15694_v24, -inf }
 0x9a1   :  { %9450 = vmax.xlane.f32.xlu0 %v9449_v34  ;;  %9453 = vmax.xlane.f32.xlu1 %v9452_v14  ;;  %v15746_v16 = vpop.permute.xlu1 %10136  ;;  %v15748_v22 = vpop.permute.xlu0 %10212 }
 0x9a3   :  { %v15700_v38 = vpop.f32.mrb[118].mxu0  ;;  %v15702_v48 = vpop.f32.mrb[124].mxu1 }
 0x9a4   :  { %v13159_v56 = vpop.f32.mrb[119].mxu0  ;;  %v13164_v49 = vpop.f32.mrb[125].mxu1  ;;  %v9455_v33 = vsel %vm1539_vm3, %v15700_v38, -inf  ;;  %v9458_v35 = vsel %vm1539_vm3, %v15702_v48, -inf }
 0x9a5   :  { %9456 = vmax.xlane.f32.xlu0 %v9455_v33  ;;  %9459 = vmax.xlane.f32.xlu1 %v9458_v35  ;;  %v15750_v26 = vpop.permute.xlu1 %10288 }
 0x9a7   :  { %v15708_v28 = vpop.f32.mrb[120].mxu0  ;;  %v15710_v6 = vpop.f32.mrb[126].mxu1 }
 0x9a8   :  { %v13169_v29 = vpop.f32.mrb[121].mxu0  ;;  %v13174_v42 = vpop.f32.mrb[127].mxu1  ;;  %v9461_v40 = vsel %vm1539_vm3, %v15708_v28, -inf  ;;  %v9464_v19 = vsel %vm1539_vm3, %v15710_v6, -inf }
 0x9a9   :  { %9462 = vmax.xlane.f32.xlu0 %v9461_v40  ;;  %9465 = vmax.xlane.f32.xlu1 %v9464_v19 }
 0x9ab   :  { %v15716_v13 = vpop.f32.mrb[122].mxu0  ;;  %v15718_v44 = vpop.f32.mrb[128].mxu1 }
 0x9ac   :  { %v13179_v1 = vpop.f32.mrb[123].mxu0  ;;  %v13184_v17 = vpop.f32.mrb[129].mxu1  ;;  %v9467_v39 = vsel %vm1539_vm3, %v15716_v13, -inf  ;;  %v9470_v31 = vsel %vm1539_vm3, %v15718_v44, -inf }
 0x9ad   :  { %9468 = vmax.xlane.f32.xlu0 %v9467_v39  ;;  %9471 = vmax.xlane.f32.xlu1 %v9470_v31 }
 0x9af   :  { %v15724_v46 = vpop.f32.mrb[124].mxu0 }
 0x9b0   :  { %v13189_v37 = vpop.f32.mrb[125].mxu0  ;;  %v9473_v60 = vsel %vm1539_vm3, %v15724_v46, -inf }
 0x9b1   :  { %9474 = vmax.xlane.f32.xlu0 %v9473_v60 }
 0x9be   :  { %10440 = vrot.lane.b32.xlu1 %v16678_v36, %s13809_s29 }
 0x9c2   :  { %10592 = vrot.lane.b32.xlu1 %v16679_v45, %s13809_s29 }
 0x9c7   :  { %10364 = vrot.lane.b32.xlu0 %v16680_v27, %s13809_s29 }
 0x9cb   :  { %10516 = vrot.lane.b32.xlu0 %v16681_v54, %s13809_s29 }
 0xa1e   :  { %v9430_v12 = vpop.xlane.xlu0 %9429 }
 0xa1f   :  { %v9476_v30 = vsub.f32 %v15664_v61, %v9430_v12 }
 0xa21   :  { %v9492_v51 = vmul.f32 1.442695, %v9476_v30 }
 0xa22   :  { %v9433_v34 = vpop.xlane.xlu1 %9432  ;;  %v9436_v14 = vpop.xlane.xlu0 %9435 }
 0xa23   :  { %13560 = vpow2.f32 %v9492_v51  ;;  %v9477_v56 = vsub.f32 %v15668_v5, %v9433_v34  ;;  %v9478_v49 = vsub.f32 %v15670_v41, %v9436_v14 }
 0xa25   :  { %v9494_v33 = vmul.f32 1.442695, %v9477_v56  ;;  %v9496_v35 = vmul.f32 1.442695, %v9478_v49 }
 0xa26   :  { %v9442_v29 = vpop.xlane.xlu1 %9441  ;;  %v9439_v42 = vpop.xlane.xlu0 %9438 }
 0xa27   :  { %13562 = vpow2.f32 %v9494_v33  ;;  %v9480_v40 = vsub.f32 %v15678_v11, %v9442_v29  ;;  %v9479_v19 = vsub.f32 %v15676_v59, %v9439_v42 }
 0xa28   :  { %13564 = vpow2.f32 %v9496_v35 }
 0xa29   :  { %v9500_v1 = vmul.f32 1.442695, %v9480_v40  ;;  %v9498_v61 = vmul.f32 1.442695, %v9479_v19 }
 0xa2a   :  { %v9448_v17 = vpop.xlane.xlu1 %9447  ;;  %v9445_v39 = vpop.xlane.xlu0 %9444 }
 0xa2b   :  { %13566 = vpow2.f32 %v9500_v1  ;;  %v9482_v31 = vsub.f32 %v15686_v18, %v9448_v17  ;;  %v9481_v5 = vsub.f32 %v15684_v8, %v9445_v39 }
 0xa2c   :  { %13568 = vpow2.f32 %v9498_v61 }
 0xa2d   :  { %v15759_v41 = vpop.eup %13560  ;;  %v9504_v37 = vmul.f32 1.442695, %v9482_v31  ;;  %v9502_v60 = vmul.f32 1.442695, %v9481_v5 }
 0xa2e   :  { %v9454_v36 = vpop.xlane.xlu1 %9453  ;;  %v9451_v45 = vpop.xlane.xlu0 %9450  ;;  %v9524_v59 = vsel %vm1539_vm3, %v15759_v41, 0.0 }
 0xa2f   :  { %13570 = vpow2.f32 %v9504_v37  ;;  %v9484_v11 = vsub.f32 %v15694_v24, %v9454_v36  ;;  %v9483_v27 = vsub.f32 %v15692_v20, %v9451_v45  ;;  %9525 = vadd.xlane.f32.xlu1 %v9524_v59 }
 0xa30   :  { %13572 = vpow2.f32 %v9502_v60 }
 0xa31   :  { %v15765_v18 = vpop.eup %13562  ;;  %v9508_v8 = vmul.f32 1.442695, %v9484_v11  ;;  %v9506_v54 = vmul.f32 1.442695, %v9483_v27 }
 0xa32   :  { %v15767_v12 = vpop.eup %13564  ;;  %v9460_v30 = vpop.xlane.xlu1 %9459  ;;  %v9527_v34 = vsel %vm1539_vm3, %v15765_v18, 0.0 }
 0xa33   :  { %v9457_v51 = vpop.xlane.xlu0 %9456  ;;  %13574 = vpow2.f32 %v9508_v8  ;;  %v9486_v14 = vsub.f32 %v15702_v48, %v9460_v30  ;;  %9528 = vadd.xlane.f32.xlu0 %v9527_v34  ;;  %v9530_v20 = vsel %vm1539_vm3, %v15767_v12, 0.0 }
 0xa34   :  { %v9485_v24 = vsub.f32 %v15700_v38, %v9457_v51  ;;  %13576 = vpow2.f32 %v9506_v54  ;;  %9531 = vadd.xlane.f32.xlu1 %v9530_v20 }
 0xa35   :  { %v15775_v56 = vpop.eup %13566  ;;  %v9512_v49 = vmul.f32 1.442695, %v9486_v14 }
 0xa36   :  { %v9510_v33 = vmul.f32 1.442695, %v9485_v24  ;;  %v15777_v35 = vpop.eup %13568  ;;  %v9466_v29 = vpop.xlane.xlu1 %9465  ;;  %v9536_v40 = vsel %vm1539_vm3, %v15775_v56, 0.0 }
 0xa37   :  { %v9463_v42 = vpop.xlane.xlu0 %9462  ;;  %13578 = vpow2.f32 %v9512_v49  ;;  %v9488_v38 = vsub.f32 %v15710_v6, %v9466_v29  ;;  %v9533_v19 = vsel %vm1539_vm3, %v15777_v35, 0.0 }
 0xa38   :  { %v9487_v48 = vsub.f32 %v15708_v28, %v9463_v42  ;;  %13580 = vpow2.f32 %v9510_v33  ;;  %9537 = vadd.xlane.f32.xlu1 %v9536_v40  ;;  %9534 = vadd.xlane.f32.xlu0 %v9533_v19  ;;  %v16682_v19 = vld [vmem:[#allocation23_spill] sm:$0xff] }
 0xa39   :  { %v15785_v1 = vpop.eup %13570  ;;  %v9516_v61 = vmul.f32 1.442695, %v9488_v38 }
 0xa3a   :  { %v9514_v17 = vmul.f32 1.442695, %v9487_v48  ;;  %v15787_v39 = vpop.eup %13572  ;;  %v9472_v31 = vpop.xlane.xlu1 %9471  ;;  %v9542_v37 = vsel %vm1539_vm3, %v15785_v1, 0.0 }
 0xa3b   :  { %v9469_v5 = vpop.xlane.xlu0 %9468  ;;  %13582 = vpow2.f32 %v9516_v61  ;;  %v9490_v28 = vsub.f32 %v15718_v44, %v9472_v31  ;;  %v9539_v60 = vsel %vm1539_vm3, %v15787_v39, 0.0  ;;  %v16683_v61 = vld [vmem:[#allocation47_spill] sm:$0xff]  ;;  %v16685_v31 = vld [vmem:[#allocation17_spill] sm:$0xff] }
 0xa3c   :  { %v9489_v6 = vsub.f32 %v15716_v13, %v9469_v5  ;;  %13584 = vpow2.f32 %v9514_v17  ;;  %9543 = vadd.xlane.f32.xlu1 %v9542_v37  ;;  %9540 = vadd.xlane.f32.xlu0 %v9539_v60  ;;  %v16684_v17 = vld [vmem:[#allocation22_spill] sm:$0xff]  ;;  %v16687_v37 = vld [vmem:[#allocation48_spill] sm:$0xff] }
 0xa3d   :  { %v15795_v36 = vpop.eup %13574  ;;  %v9520_v45 = vmul.f32 1.442695, %v9490_v28  ;;  %v16686_v5 = vld [vmem:[#allocation14_spill] sm:$0xff]  ;;  %v16689_v28 = vld [vmem:[#allocation49_spill] sm:$0xff] }
 0xa3e   :  { %v9518_v59 = vmul.f32 1.442695, %v9489_v6  ;;  %v15797_v11 = vpop.eup %13576  ;;  %v9548_v8 = vsel %vm1539_vm3, %v15795_v36, 0.0 }
 0xa3f   :  { %v9475_v27 = vpop.xlane.xlu0 %9474  ;;  %13586 = vpow2.f32 %v9520_v45  ;;  %v9545_v13 = vsel %vm1539_vm3, %v15797_v11, 0.0 }
 0xa40   :  { %v9491_v44 = vsub.f32 %v15724_v46, %v9475_v27  ;;  %13588 = vpow2.f32 %v9518_v59  ;;  %9549 = vadd.xlane.f32.xlu1 %v9548_v8  ;;  %9546 = vadd.xlane.f32.xlu0 %v9545_v13 }
 0xa41   :  { %v15804_v54 = vpop.eup %13578 }
 0xa42   :  { %v9522_v30 = vmul.f32 1.442695, %v9491_v44  ;;  %v15806_v51 = vpop.eup %13580  ;;  %v9554_v34 = vsel %vm1539_vm3, %v15804_v54, 0.0 }
 0xa43   :  { %v9551_v14 = vsel %vm1539_vm3, %v15806_v51, 0.0 }
 0xa44   :  { %13590 = vpow2.f32 %v9522_v30  ;;  %9555 = vadd.xlane.f32.xlu1 %v9554_v34  ;;  %9552 = vadd.xlane.f32.xlu0 %v9551_v14 }
 0xa45   :  { %v15812_v46 = vpop.eup %13582 }
 0xa46   :  { %v15814_v24 = vpop.eup %13584  ;;  %v9560_v20 = vsel %vm1539_vm3, %v15812_v46, 0.0 }
 0xa47   :  { %v9557_v49 = vsel %vm1539_vm3, %v15814_v24, 0.0 }
 0xa48   :  { %9561 = vadd.xlane.f32.xlu1 %v9560_v20  ;;  %9558 = vadd.xlane.f32.xlu0 %v9557_v49 }
 0xa49   :  { %v15820_v33 = vpop.eup %13586 }
 0xa4a   :  { %v15822_v29 = vpop.eup %13588  ;;  %v9566_v42 = vsel %vm1539_vm3, %v15820_v33, 0.0 }
 0xa4b   :  { %v9563_v40 = vsel %vm1539_vm3, %v15822_v29, 0.0 }
 0xa4c   :  { %9567 = vadd.xlane.f32.xlu1 %v9566_v42  ;;  %9564 = vadd.xlane.f32.xlu0 %v9563_v40 }
 0xa4e   :  { %v15828_v38 = vpop.eup %13590 }
 0xa4f   :  { %v9569_v48 = vsel %vm1539_vm3, %v15828_v38, 0.0 }
 0xa50   :  { %9570 = vadd.xlane.f32.xlu0 %v9569_v48 }
 0xa5d   :  { %10744 = vrot.lane.b32.xlu1 %v16682_v19, %s13809_s29 }
 0xa61   :  { %10850 = vrot.lane.b32.xlu1 %v16683_v61, %s13801_s21 }
 0xa65   :  { %10914 = vrot.lane.b32.xlu1 %v15648_v2, %s13807_s27  ;;  %v16688_v2 = vld [vmem:[#allocation44_spill] sm:$0xff] }
 0xa66   :  { %10668 = vrot.lane.b32.xlu0 %v16684_v17, %s13809_s29 }
 0xa69   :  { %10854 = vrot.lane.b32.xlu1 %v16685_v31, %s13801_s21 }
 0xa6a   :  { %10848 = vrot.lane.b32.xlu0 %v16686_v5, %s13801_s21 }
 0xa6d   :  { %10918 = vrot.lane.b32.xlu1 %v15652_v0, %s13807_s27  ;;  %v16690_v0 = vld [vmem:[#allocation46_spill] sm:$0xff] }
 0xa6e   :  { %10912 = vrot.lane.b32.xlu0 %v15642_v15, %s13807_s27  ;;  %v16691_v15 = vld [vmem:[#allocation50_spill] sm:$0xff] }
 0xa71   :  { %10858 = vrot.lane.b32.xlu1 %v16687_v37, %s13801_s21 }
 0xa72   :  { %10852 = vrot.lane.b32.xlu0 %v16688_v2, %s13801_s21 }
 0xa75   :  { %10922 = vrot.lane.b32.xlu1 %v15656_v23, %s13807_s27  ;;  %v16692_v23 = vld [vmem:[#allocation16_spill] sm:$0xff] }
 0xa76   :  { %10916 = vrot.lane.b32.xlu0 %v15646_v9, %s13807_s27  ;;  %v16693_v9 = vld [vmem:[#allocation51_spill] sm:$0xff] }
 0xa79   :  { %10862 = vrot.lane.b32.xlu1 %v16689_v28, %s13801_s21 }
 0xa7a   :  { %10856 = vrot.lane.b32.xlu0 %v16690_v0, %s13801_s21 }
 0xa7d   :  { %10926 = vrot.lane.b32.xlu1 %v15658_v47, %s13807_s27  ;;  %v15876_v47 = vpop.permute.xlu1 %10440 }
 0xa7e   :  { %10920 = vrot.lane.b32.xlu0 %v15650_v25, %s13807_s27  ;;  %v15878_v25 = vpop.permute.xlu0 %10364 }
 0xa81   :  { %10866 = vrot.lane.b32.xlu1 %v16691_v15, %s13801_s21  ;;  %v15880_v6 = vpop.permute.xlu1 %10592 }
 0xa82   :  { %10860 = vrot.lane.b32.xlu0 %v16692_v23, %s13801_s21  ;;  %v15882_v60 = vpop.permute.xlu0 %10516 }
 0xa85   :  { %10930 = vrot.lane.b32.xlu1 %v15662_v53, %s13807_s27 }
 0xa86   :  { %10924 = vrot.lane.b32.xlu0 %v15654_v58, %s13807_s27 }
 0xa8a   :  { %10864 = vrot.lane.b32.xlu0 %v16693_v9, %s13801_s21 }
 0xa8e   :  { %10928 = vrot.lane.b32.xlu0 %v15660_v52, %s13807_s27 }
 0xabc   :  { %v9526_v45 = vpop.xlane.xlu1 %9525 }
 0xabd   :  { %13592 = vrcp.f32 %v9526_v45 }
 0xac0   :  { %v9529_v53 = vpop.xlane.xlu0 %9528 }
 0xac1   :  { %v9532_v59 = vpop.xlane.xlu1 %9531  ;;  %13594 = vrcp.f32 %v9529_v53 }
 0xac2   :  { %13596 = vrcp.f32 %v9532_v59 }
 0xac5   :  { %v9538_v58 = vpop.xlane.xlu1 %9537  ;;  %v9535_v27 = vpop.xlane.xlu0 %9534 }
 0xac6   :  { %13598 = vrcp.f32 %v9538_v58  ;;  %v11068_v58 = vld [vmem:[%s16529_s3 + $0x30] sm:$0xff] }
 0xac7   :  { %v13593_v8 = vpop.eup %13592  ;;  %13600 = vrcp.f32 %v9535_v27  ;;  %v11069_v27 = vld [vmem:[%s16529_s3 + $0x38] sm:$0xff] }
 0xac8   :  { %v9588_v52 = vmul.f32 %v13593_v8, %v15759_v41  ;;  %v13338_v8 = vpack.c.bf16 %v11069_v27, %v11068_v58  ;;  %v16701_v58 = vld [vmem:[#allocation32_spill] sm:$0xff] }
 0xac9   :  { %v9544_v44 = vpop.xlane.xlu1 %9543  ;;  %v9541_v13 = vpop.xlane.xlu0 %9540 }
 0xaca   :  { %13602 = vrcp.f32 %v9544_v44  ;;  %13193 = vmatmul.mubr.msk.f32.vlgmr.msra.gmra.mrb[130].mxu1 %vm1539_vm3, %v9588_v52 }
 0xacb   :  { %v13595_v30 = vpop.eup %13594  ;;  %13604 = vrcp.f32 %v9541_v13  ;;  %13201 = vmatpush3.msra.mxu1 %v15736_v10  ;;  %13202 = vmatprep.mubr.msk.f32.mxu1 %vm13803_vm1, %v16575_v21 }
 0xacc   :  { %v13597_v34 = vpop.eup %13596  ;;  %13210 = vmatprep.subr.mxu1 %v16575_v21  ;;  %v9589_v14 = vmul.f32 %v13595_v30, %v15765_v18 }
 0xacd   :  { %v9550_v20 = vpop.xlane.xlu1 %9549  ;;  %v9547_v49 = vpop.xlane.xlu0 %9546  ;;  %v9590_v41 = vmul.f32 %v13597_v34, %v15767_v12 }
 0xace   :  { %13606 = vrcp.f32 %v9550_v20  ;;  %13198 = vmatmul.mubr.msk.f32.vlgmr.msra.gmra.mrb[126].mxu0 %vm1539_vm3, %v9589_v14 }
 0xacf   :  { %13608 = vrcp.f32 %v9547_v49  ;;  %13203 = vmatmul.mubr.msk.f32.vlgmr.msra.gmra.mrb[132].mxu1 %vm1539_vm3, %v9590_v41  ;;  %13206 = vmatpush3.msra.mxu0 %v15740_v55 }
 0xad0   :  { %v13599_v10 = vpop.eup %13598  ;;  %13211 = vmatpush3.msra.mxu1 %v15738_v4  ;;  %13207 = vmatprep.mubr.msk.f32.mxu0 %vm13803_vm1, %v16575_v21 }
 0xad1   :  { %v13601_v42 = vpop.eup %13600  ;;  %v9556_v18 = vpop.xlane.xlu1 %9555  ;;  %13212 = vmatprep.mubr.msk.f32.mxu1 %vm13803_vm1, %v16575_v21  ;;  %13215 = vmatprep.subr.mxu0 %v16575_v21  ;;  %v9592_v12 = vmul.f32 %v13599_v10, %v15775_v56 }
 0xad2   :  { %v9553_v40 = vpop.xlane.xlu0 %9552  ;;  %13610 = vrcp.f32 %v9556_v18  ;;  %13220 = vmatprep.subr.mxu1 %v16575_v21  ;;  %v9591_v55 = vmul.f32 %v13601_v42, %v15777_v35 }
 0xad3   :  { %13612 = vrcp.f32 %v9553_v40  ;;  %13213 = vmatmul.mubr.msk.f32.vlgmr.msra.gmra.mrb[134].mxu1 %vm1539_vm3, %v9592_v12 }
 0xad4   :  { %v13603_v4 = vpop.eup %13602  ;;  %13208 = vmatmul.mubr.msk.f32.vlgmr.msra.gmra.mrb[128].mxu0 %vm1539_vm3, %v9591_v55  ;;  %13221 = vmatpush3.msra.mxu1 %v15744_v63 }
 0xad5   :  { %v13605_v48 = vpop.eup %13604  ;;  %13216 = vmatpush3.msra.mxu0 %v15742_v3  ;;  %v9562_v19 = vpop.xlane.xlu1 %9561  ;;  %13217 = vmatprep.mubr.msk.f32.mxu0 %vm13803_vm1, %v16575_v21  ;;  %v9594_v56 = vmul.f32 %v13603_v4, %v15785_v1 }
 0xad6   :  { %v9559_v61 = vpop.xlane.xlu0 %9558  ;;  %13614 = vrcp.f32 %v9562_v19  ;;  %13222 = vmatprep.mubr.msk.f32.mxu1 %vm13803_vm1, %v16575_v21  ;;  %13225 = vmatprep.subr.mxu0 %v16575_v21  ;;  %v9593_v35 = vmul.f32 %v13605_v48, %v15787_v39 }
 0xad7   :  { %13616 = vrcp.f32 %v9559_v61  ;;  %13230 = vmatprep.subr.mxu1 %v16575_v21  ;;  %13223 = vmatmul.mubr.msk.f32.vlgmr.msra.gmra.mrb[136].mxu1 %vm1539_vm3, %v9594_v56 }
 0xad8   :  { %v13607_v3 = vpop.eup %13606  ;;  %13218 = vmatmul.mubr.msk.f32.vlgmr.msra.gmra.mrb[130].mxu0 %vm1539_vm3, %v9593_v35  ;;  %13231 = vmatpush3.msra.mxu1 %v15748_v22 }
 0xad9   :  { %v13609_v63 = vpop.eup %13608  ;;  %13226 = vmatpush3.msra.mxu0 %v15746_v16  ;;  %v9568_v1 = vpop.xlane.xlu1 %9567  ;;  %13227 = vmatprep.mubr.msk.f32.mxu0 %vm13803_vm1, %v16575_v21  ;;  %v9596_v39 = vmul.f32 %v13607_v3, %v15795_v36 }
 0xada   :  { %v9565_v17 = vpop.xlane.xlu0 %9564  ;;  %13618 = vrcp.f32 %v9568_v1  ;;  %13232 = vmatprep.mubr.msk.f32.mxu1 %vm13803_vm1, %v16575_v21  ;;  %13235 = vmatprep.subr.mxu0 %v16575_v21  ;;  %v9595_v31 = vmul.f32 %v13609_v63, %v15797_v11 }
 0xadb   :  { %13620 = vrcp.f32 %v9565_v17  ;;  %13240 = vmatprep.subr.mxu1 %v16575_v21  ;;  %13233 = vmatmul.mubr.msk.f32.vlgmr.msra.gmra.mrb[138].mxu1 %vm1539_vm3, %v9596_v39 }
 0xadc   :  { %v13611_v16 = vpop.eup %13610  ;;  %13228 = vmatmul.mubr.msk.f32.vlgmr.msra.gmra.mrb[132].mxu0 %vm1539_vm3, %v9595_v31  ;;  %13241 = vmatpush3.msra.mxu1 %v15878_v25 }
 0xadd   :  { %v13613_v22 = vpop.eup %13612  ;;  %13236 = vmatpush3.msra.mxu0 %v15750_v26  ;;  %13237 = vmatprep.mubr.msk.f32.mxu0 %vm13803_vm1, %v16575_v21  ;;  %v9598_v5 = vmul.f32 %v13611_v16, %v15804_v54  ;;  %v10745_v23 = vpop.permute.xlu1 %10744 }
 0xade   :  { %v9571_v36 = vpop.xlane.xlu0 %9570  ;;  %13242 = vmatprep.mubr.msk.f32.mxu1 %vm13803_vm1, %v16575_v21  ;;  %13245 = vmatprep.subr.mxu0 %v16575_v21  ;;  %v9597_v11 = vmul.f32 %v13613_v22, %v15806_v51 }
 0xadf   :  { %13622 = vrcp.f32 %v9571_v36  ;;  %13250 = vmatprep.subr.mxu1 %v16575_v21  ;;  %13243 = vmatmul.mubr.msk.f32.vlgmr.msra.gmra.mrb[140].mxu1 %vm1539_vm3, %v9598_v5  ;;  %v16694_v36 = vld [vmem:[#allocation41_spill] sm:$0xff] }
 0xae0   :  { %v13615_v37 = vpop.eup %13614  ;;  %13238 = vmatmul.mubr.msk.f32.vlgmr.msra.gmra.mrb[134].mxu0 %vm1539_vm3, %v9597_v11  ;;  %13251 = vmatpush3.msra.mxu1 %v15882_v60  ;;  %v11067_v60 = vld [vmem:[%s16529_s3 + $0x28] sm:$0xff]  ;;  %v16695_v11 = vld [vmem:[#allocation40_spill] sm:$0xff] }
 0xae1   :  { %v13617_v26 = vpop.eup %13616  ;;  %13246 = vmatpush3.msra.mxu0 %v15876_v47  ;;  %13247 = vmatprep.mubr.msk.f32.mxu0 %vm13803_vm1, %v16575_v21  ;;  %v9600_v2 = vmul.f32 %v13615_v37, %v15812_v46  ;;  %v11064_v47 = vld [vmem:[%s16529_s3 + $0x10] sm:$0xff]  ;;  %v16696_v37 = vld [vmem:[#allocation43_spill] sm:$0xff] }
 0xae2   :  { %v10669_v54 = vpop.permute.xlu0 %10668  ;;  %13252 = vmatprep.mubr.msk.f32.mxu1 %vm13803_vm1, %v16575_v21  ;;  %13255 = vmatprep.subr.mxu0 %v16575_v21  ;;  %v9599_v51 = vmul.f32 %v13617_v26, %v15814_v24  ;;  %v16697_v26 = vld [vmem:[#allocation15_spill] sm:$0xff] }
 0xae3   :  { %13260 = vmatprep.subr.mxu1 %v16575_v21  ;;  %13253 = vmatmul.mubr.msk.f32.vlgmr.msra.gmra.mrb[142].mxu1 %vm1539_vm3, %v9600_v2 }
 0xae4   :  { %v13619_v28 = vpop.eup %13618  ;;  %13248 = vmatmul.mubr.msk.f32.vlgmr.msra.gmra.mrb[136].mxu0 %vm1539_vm3, %v9599_v51  ;;  %13261 = vmatpush3.msra.mxu1 %v10669_v54 }
 0xae5   :  { %v13621_v0 = vpop.eup %13620  ;;  %13256 = vmatpush3.msra.mxu0 %v15880_v6  ;;  %13257 = vmatprep.mubr.msk.f32.mxu0 %vm13803_vm1, %v16575_v21  ;;  %v9602_v46 = vmul.f32 %v13619_v28, %v15820_v33  ;;  %v11062_v33 = vld [vmem:[%s16529_s3] sm:$0xff] }
 0xae6   :  { %13262 = vmatprep.mubr.msk.f32.mxu1 %vm13803_vm1, %v16575_v21  ;;  %13265 = vmatprep.subr.mxu0 %v16575_v21  ;;  %v9601_v24 = vmul.f32 %v13621_v0, %v15822_v29  ;;  %v11063_v29 = vld [vmem:[%s16529_s3 + $0x8] sm:$0xff]  ;;  %v11066_v6 = vld [vmem:[%s16529_s3 + $0x20] sm:$0xff] }
 0xae7   :  { %13263 = vmatmul.mubr.msk.f32.vlgmr.msra.gmra.mrb[144].mxu1 %vm1539_vm3, %v9602_v46  ;;  %v13326_v25 = vpack.c.bf16 %v11063_v29, %v11062_v33  ;;  %v13334_v45 = vpack.c.bf16 %v11067_v60, %v11066_v6 }
 0xae8   :  { %13258 = vmatmul.mubr.msk.f32.vlgmr.msra.gmra.mrb[138].mxu0 %vm1539_vm3, %v9601_v24 }
 0xae9   :  { %v13623_v15 = vpop.eup %13622  ;;  %13266 = vmatpush3.msra.mxu0 %v10745_v23  ;;  %13267 = vmatprep.mubr.msk.f32.mxu0 %vm13803_vm1, %v16575_v21  ;;  %v11065_v21 = vld [vmem:[%s16529_s3 + $0x18] sm:$0xff] }
 0xaea   :  { %v9603_v9 = vmul.f32 %v13623_v15, %v15828_v38  ;;  %v13330_v38 = vpack.c.bf16 %v11065_v21, %v11064_v47  ;;  %13342 = vmatprep.subr.bf16.mxu1 %v13326_v25  ;;  %13327 = vmatprep.subr.bf16.mxu0 %v13326_v25 }
 0xaeb   :  { %13346 = vmatpush3.bf16.msra.mxu1 %v13326_v25 }
 0xaec   :  { %13268 = vmatmul.mubr.msk.f32.vlgmr.msra.gmra.mrb[140].mxu0 %vm1539_vm3, %v9603_v9  ;;  %13343 = vmatprep.subr.bf16.mxu1 %v13330_v38 }
 0xaed   :  { %13329 = vmatpush3.bf16.msra.mxu0 %v13326_v25 }
 0xaee   :  { %13331 = vmatprep.subr.bf16.mxu0 %v13330_v38 }
 0xaef   :  { %13347 = vmatpush3.bf16.msra.mxu1 %v13330_v38 }
 0xaf0   :  { %13344 = vmatprep.subr.bf16.mxu1 %v13334_v45 }
 0xaf1   :  { %13333 = vmatpush3.bf16.msra.mxu0 %v13330_v38  ;;  %v16700_v38 = vld [vmem:[#allocation30_spill] sm:$0xff] }
 0xaf2   :  { %13335 = vmatprep.subr.bf16.mxu0 %v13334_v45 }
 0xaf3   :  { %13348 = vmatpush3.bf16.msra.mxu1 %v13334_v45 }
 0xaf4   :  { %13345 = vmatprep.subr.bf16.mxu1 %v13338_v8 }
 0xaf5   :  { %13337 = vmatpush3.bf16.msra.mxu0 %v13334_v45 }
 0xaf6   :  { %13339 = vmatprep.subr.bf16.mxu0 %v13338_v8 }
 0xaf7   :  { %13349 = vmatpush3.bf16.msra.mxu1 %v13338_v8 }
 0xaf9   :  { %13341 = vmatpush3.bf16.msra.mxu0 %v13338_v8  ;;  %v16702_v8 = vld [vmem:[#allocation31_spill] sm:$0xff] }
 0xb9d   :  { %v9676_v53 = vpop.f32.mrb[130].mxu1 }
 0xb9e   :  { %v13194_v59 = vpop.f32.mrb[131].mxu1 }
 0xba1   :  { %v9752_v52 = vpop.f32.mrb[126].mxu0 }
 0xba2   :  { %v9828_v44 = vpop.f32.mrb[132].mxu1  ;;  %v13199_v13 = vpop.f32.mrb[127].mxu0 }
 0xba3   :  { %v13204_v30 = vpop.f32.mrb[133].mxu1 }
 0xba6   :  { %v9980_v34 = vpop.f32.mrb[134].mxu1 }
 0xba7   :  { %v9904_v14 = vpop.f32.mrb[128].mxu0  ;;  %v13214_v20 = vpop.f32.mrb[135].mxu1 }
 0xba8   :  { %v13209_v49 = vpop.f32.mrb[129].mxu0 }
 0xba9   :  { %v16703_v49 = vld [vmem:[#allocation34_spill] sm:$0xff] }
 0xbaa   :  { %v10132_v41 = vpop.f32.mrb[136].mxu1 }
 0xbab   :  { %v10056_v10 = vpop.f32.mrb[130].mxu0  ;;  %v13224_v42 = vpop.f32.mrb[137].mxu1  ;;  %10976 = vrot.lane.b32.xlu0 %v10132_v41, %s13805_s2 }
 0xbac   :  { %v13219_v18 = vpop.f32.mrb[131].mxu0 }
 0xbae   :  { %v10284_v40 = vpop.f32.mrb[138].mxu1 }
 0xbaf   :  { %v10208_v12 = vpop.f32.mrb[132].mxu0  ;;  %v13234_v55 = vpop.f32.mrb[139].mxu1  ;;  %10980 = vrot.lane.b32.xlu0 %v10284_v40, %s13805_s2 }
 0xbb0   :  { %10978 = vrot.lane.b32.xlu1 %v10208_v12, %s13805_s2  ;;  %v13229_v4 = vpop.f32.mrb[133].mxu0 }
 0xbb2   :  { %v10436_v48 = vpop.f32.mrb[140].mxu1 }
 0xbb3   :  { %v10360_v19 = vpop.f32.mrb[134].mxu0  ;;  %10984 = vrot.lane.b32.xlu0 %v10436_v48, %s13805_s2  ;;  %v13244_v61 = vpop.f32.mrb[141].mxu1 }
 0xbb4   :  { %10982 = vrot.lane.b32.xlu1 %v10360_v19, %s13805_s2  ;;  %v13239_v56 = vpop.f32.mrb[135].mxu0  ;;  %v16705_v19 = vld [vmem:[#allocation36_spill] sm:$0xff] }
 0xbb5   :  { %v16706_v56 = vld [vmem:[#allocation35_spill] sm:$0xff] }
 0xbb6   :  { %v10588_v35 = vpop.f32.mrb[142].mxu1 }
 0xbb7   :  { %v10512_v3 = vpop.f32.mrb[136].mxu0  ;;  %10988 = vrot.lane.b32.xlu0 %v10588_v35, %s13805_s2  ;;  %v13254_v63 = vpop.f32.mrb[143].mxu1 }
 0xbb8   :  { %10986 = vrot.lane.b32.xlu1 %v10512_v3, %s13805_s2  ;;  %v13249_v1 = vpop.f32.mrb[137].mxu0 }
 0xbba   :  { %v10740_v17 = vpop.f32.mrb[144].mxu1 }
 0xbbb   :  { %v10664_v39 = vpop.f32.mrb[138].mxu0  ;;  %10992 = vrot.lane.b32.xlu0 %v10740_v17, %s13805_s2  ;;  %v13264_v31 = vpop.f32.mrb[145].mxu1 }
 0xbbc   :  { %10990 = vrot.lane.b32.xlu1 %v10664_v39, %s13805_s2  ;;  %v13259_v16 = vpop.f32.mrb[139].mxu0 }
 0xbbd   :  { %v16707_v16 = vld [vmem:[#allocation38_spill] sm:$0xff] }
 0xbbf   :  { %v10816_v22 = vpop.f32.mrb[140].mxu0  ;;  %10836 = vrot.lane.b32.xlu0 %v16694_v36, %s13801_s21  ;;  %v16708_v36 = vld [vmem:[#allocation37_spill] sm:$0xff] }
 0xbc0   :  { %10994 = vrot.lane.b32.xlu1 %v10816_v22, %s13805_s2  ;;  %v13269_v5 = vpop.f32.mrb[141].mxu0 }
 0xbc3   :  { %10900 = vrot.lane.b32.xlu0 %v15632_v7, %s13807_s27  ;;  %v16698_v7 = vld [vmem:[#allocation42_spill] sm:$0xff] }
 0xbc4   :  { %10838 = vrot.lane.b32.xlu1 %v16695_v11, %s13801_s21 }
 0xbc7   :  { %10964 = vrot.lane.b32.xlu0 %v9676_v53, %s13805_s2 }
 0xbc8   :  { %10902 = vrot.lane.b32.xlu1 %v15634_v43, %s13807_s27  ;;  %v16699_v43 = vld [vmem:[#allocation45_spill] sm:$0xff] }
 0xbcb   :  { %10840 = vrot.lane.b32.xlu0 %v16696_v37, %s13801_s21 }
 0xbcc   :  { %10966 = vrot.lane.b32.xlu1 %v9752_v52, %s13805_s2 }
 0xbcf   :  { %10904 = vrot.lane.b32.xlu0 %v15636_v50, %s13807_s27  ;;  %v10849_v50 = vpop.permute.xlu0 %10848 }
 0xbd0   :  { %10842 = vrot.lane.b32.xlu1 %v16697_v26, %s13801_s21  ;;  %v11018_v6 = vsel %vm309_vm2, %v16700_v38, %v10849_v50 }
 0xbd3   :  { %10968 = vrot.lane.b32.xlu0 %v9828_v44, %s13805_s2  ;;  %v10913_v54 = vpop.permute.xlu0 %10912 }
 0xbd4   :  { %10906 = vrot.lane.b32.xlu1 %v15640_v32, %s13807_s27  ;;  %v10851_v32 = vpop.permute.xlu1 %10850  ;;  %v11035_v60 = vsel %vm11028_vm5, %v11018_v6, %v10913_v54 }
 0xbd5   :  { %v11019_v52 = vsel %vm309_vm2, %v16702_v8, %v10851_v32  ;;  %v16709_v32 = vld [vmem:[#allocation39_spill] sm:$0xff] }
 0xbd7   :  { %10844 = vrot.lane.b32.xlu0 %v16698_v7, %s13801_s21  ;;  %v10853_v51 = vpop.permute.xlu0 %10852 }
 0xbd8   :  { %10970 = vrot.lane.b32.xlu1 %v9904_v14, %s13805_s2  ;;  %v10915_v2 = vpop.permute.xlu1 %10914  ;;  %v11020_v27 = vsel %vm309_vm2, %v16701_v58, %v10853_v51 }
 0xbd9   :  { %v11036_v30 = vsel %vm11028_vm5, %v11019_v52, %v10915_v2 }
 0xbdb   :  { %10908 = vrot.lane.b32.xlu0 %v15638_v62, %s13807_s27  ;;  %v10917_v0 = vpop.permute.xlu0 %10916 }
 0xbdc   :  { %10846 = vrot.lane.b32.xlu1 %v16699_v43, %s13801_s21  ;;  %v10855_v28 = vpop.permute.xlu1 %10854  ;;  %v11037_v44 = vsel %vm11028_vm5, %v11020_v27, %v10917_v0 }
 0xbdf   :  { %10972 = vrot.lane.b32.xlu0 %v9980_v34, %s13805_s2  ;;  %v10857_v24 = vpop.permute.xlu0 %10856 }
 0xbe0   :  { %10910 = vrot.lane.b32.xlu1 %v15644_v57, %s13807_s27  ;;  %v10919_v46 = vpop.permute.xlu1 %10918  ;;  %v11022_v41 = vsel %vm309_vm2, %v16703_v49, %v10857_v24 }
 0xbe3   :  { %v10921_v15 = vpop.permute.xlu0 %10920 }
 0xbe4   :  { %10974 = vrot.lane.b32.xlu1 %v10056_v10, %s13805_s2  ;;  %v10859_v62 = vpop.permute.xlu1 %10858  ;;  %v16704_v10 = vld [vmem:[#allocation33_spill] sm:$0xff]  ;;  %v11039_v18 = vsel %vm11028_vm5, %v11022_v41, %v10921_v15 }
 0xbe5   :  { %v11021_v42 = vsel %vm309_vm2, %v16704_v10, %v10855_v28  ;;  %v11023_v35 = vsel %vm309_vm2, %v16706_v56, %v10859_v62  ;;  %v16710_v62 = vld [vmem:[#allocation24_spill] sm:$0xff] }
 0xbe6   :  { %v11038_v12 = vsel %vm11028_vm5, %v11021_v42, %v10919_v46 }
 0xbe7   :  { %v10861_v9 = vpop.permute.xlu0 %10860 }
 0xbe8   :  { %v10923_v23 = vpop.permute.xlu1 %10922  ;;  %v11024_v61 = vsel %vm309_vm2, %v16705_v19, %v10861_v9 }
 0xbe9   :  { %v11040_v1 = vsel %vm11028_vm5, %v11023_v35, %v10923_v23  ;;  %v16715_v35 = vld [vmem:[#allocation29_spill] sm:$0xff] }
 0xbeb   :  { %v10925_v29 = vpop.permute.xlu0 %10924 }
 0xbec   :  { %v10863_v33 = vpop.permute.xlu1 %10862  ;;  %v11041_v3 = vsel %vm11028_vm5, %v11024_v61, %v10925_v29 }
 0xbed   :  { %v11025_v5 = vsel %vm309_vm2, %v16708_v36, %v10863_v33  ;;  %v16167_v36 = vld [vmem:[%s16530_s4] ss:$0 sm:$0xff] }
 0xbef   :  { %v10865_v25 = vpop.permute.xlu0 %10864 }
 0xbf0   :  { %v10927_v47 = vpop.permute.xlu1 %10926  ;;  %v11026_v22 = vsel %vm309_vm2, %v16707_v16, %v10865_v25 }
 0xbf1   :  { %v11042_v26 = vsel %vm11028_vm5, %v11025_v5, %v10927_v47  ;;  %v16711_v47 = vld [vmem:[#allocation26_spill] sm:$0xff] }
 0xbf3   :  { %v10929_v21 = vpop.permute.xlu0 %10928 }
 0xbf4   :  { %v10867_v57 = vpop.permute.xlu1 %10866  ;;  %v11043_v11 = vsel %vm11028_vm5, %v11026_v22, %v10929_v21 }
 0xbf5   :  { %v11027_v54 = vsel %vm309_vm2, %v16709_v32, %v10867_v57 }
 0xbf8   :  { %v10931_v53 = vpop.permute.xlu1 %10930 }
 0xbf9   :  { %v11044_v51 = vsel %vm11028_vm5, %v11027_v54, %v10931_v53  ;;  %v16712_v53 = vld [vmem:[#allocation25_spill] sm:$0xff] }
 0xc1d   :  { %v10977_v45 = vpop.permute.xlu0 %10976 }
 0xc1e   :  { %v16036_v59 = vsel %vm11045_vm4, %v11035_v60, %v10977_v45 }
 0xc1f   :  { %13295 = vmatprep.mubr.msk.f32.mxu1 %vm96_vm0, %v16036_v59 }
 0xc21   :  { %v10981_v13 = vpop.permute.xlu0 %10980 }
 0xc22   :  { %v10979_v34 = vpop.permute.xlu1 %10978  ;;  %v16047_v14 = vsel %vm11045_vm4, %v11037_v44, %v10981_v13  ;;  %v16713_v13 = vld [vmem:[#allocation27_spill] sm:$0xff] }
 0xc23   :  { %v16050_v20 = vsel %vm11045_vm4, %v11036_v30, %v10979_v34 }
 0xc24   :  { %13296 = vmatmul.mubr.msk.f32.vlgmr.msra.gmra.mrb[146].mxu1 %vm96_vm0, %v16050_v20 }
 0xc25   :  { %13298 = vmatprep.mubr.msk.f32.mxu1 %vm96_vm0, %v16047_v14  ;;  %v10985_v40 = vpop.permute.xlu0 %10984 }
 0xc26   :  { %v10983_v55 = vpop.permute.xlu1 %10982  ;;  %v16063_v4 = vsel %vm11045_vm4, %v11039_v18, %v10985_v40  ;;  %v16714_v40 = vld [vmem:[#allocation28_spill] sm:$0xff] }
 0xc27   :  { %v16066_v48 = vsel %vm11045_vm4, %v11038_v12, %v10983_v55 }
 0xc28   :  { %13299 = vmatmul.mubr.msk.f32.gmra.mrb[148].mxu1 %vm96_vm0, %v16066_v48 }
 0xc29   :  { %13301 = vmatprep.mubr.msk.f32.mxu1 %vm96_vm0, %v16063_v4  ;;  %v10989_v63 = vpop.permute.xlu0 %10988 }
 0xc2a   :  { %v10987_v17 = vpop.permute.xlu1 %10986  ;;  %v16079_v39 = vsel %vm11045_vm4, %v11041_v3, %v10989_v63 }
 0xc2b   :  { %v16082_v31 = vsel %vm11045_vm4, %v11040_v1, %v10987_v17 }
 0xc2c   :  { %13302 = vmatmul.mubr.msk.f32.gmra.mrb[150].mxu1 %vm96_vm0, %v16082_v31 }
 0xc2d   :  { %13304 = vmatprep.mubr.msk.f32.mxu1 %vm96_vm0, %v16079_v39  ;;  %v10993_v37 = vpop.permute.xlu0 %10992 }
 0xc2e   :  { %v10991_v7 = vpop.permute.xlu1 %10990  ;;  %v16095_v43 = vsel %vm11045_vm4, %v11043_v11, %v10993_v37 }
 0xc2f   :  { %v16098_v50 = vsel %vm11045_vm4, %v11042_v26, %v10991_v7 }
 0xc30   :  { %13305 = vmatmul.mubr.msk.f32.gmra.mrb[152].mxu1 %vm96_vm0, %v16098_v50 }
 0xc31   :  { %13307 = vmatprep.mubr.msk.f32.mxu1 %vm96_vm0, %v16095_v43  ;;  %v10837_v2 = vpop.permute.xlu0 %10836 }
 0xc32   :  { %v10995_v28 = vpop.permute.xlu1 %10994  ;;  %v11012_v15 = vsel %vm309_vm2, %v16710_v62, %v10837_v2 }
 0xc33   :  { %v16108_v0 = vsel %vm11045_vm4, %v11044_v51, %v10995_v28 }
 0xc34   :  { %13308 = vmatmul.mubr.msk.f32.gmra.mrb[154].mxu1 %vm96_vm0, %v16108_v0 }
 0xc35   :  { %v10901_v46 = vpop.permute.xlu0 %10900 }
 0xc36   :  { %v10839_v24 = vpop.permute.xlu1 %10838  ;;  %v11029_v23 = vsel %vm11028_vm5, %v11012_v15, %v10901_v46 }
 0xc37   :  { %v11013_v25 = vsel %vm309_vm2, %v16711_v47, %v10839_v24 }
 0xc39   :  { %v10965_v9 = vpop.permute.xlu0 %10964 }
 0xc3a   :  { %v10903_v33 = vpop.permute.xlu1 %10902  ;;  %v16116_v29 = vsel %vm11045_vm4, %v11029_v23, %v10965_v9 }
 0xc3b   :  { %13286 = vmatprep.mubr.msk.f32.mxu0 %vm96_vm0, %v16116_v29  ;;  %v11030_v21 = vsel %vm11028_vm5, %v11013_v25, %v10903_v33  ;;  %v16179_v33 = vld [vmem:[%s16531_s5] ss:$0 sm:$0xff]  ;;  %s13811_s5 = smov [#allocation7]  }
 0xc3c   :  { %s12114_s23 = sshll.u32 %s13811_s5, 4  ;;  %s12115_s23 = int_to_ptr.vmem [resolvable:$true] %s12114_s23 }
 0xc3d   :  { %v10841_v57 = vpop.permute.xlu0 %10840  ;;  %s13768_s1 = scalar_lea.vmem %s12115_s23, 128  ;;  %p13773_p3 = scmp.lt.s32.totalorder %s12115_s23, %s12115_s23 }
 0xc3e   :  { %v10967_v38 = vpop.permute.xlu1 %10966  ;;  %v11014_v58 = vsel %vm309_vm2, %v16712_v53, %v10841_v57  ;;  %p13769_p2 = scmp.ne.s32.totalorder %s12115_s23, %s13768_s1  ;;  %p13774_p4 = scmp.lt.s32.totalorder %s13768_s1, %s13768_s1 }
 0xc3f   :  { %v16124_v6 = vsel %vm11045_vm4, %v11030_v21, %v10967_v38 }
 0xc40   :  { %13287 = vmatmul.mubr.msk.f32.vlgmr.msra.gmra.mrb[142].mxu0 %vm96_vm0, %v16124_v6  ;;  %p13775_p5 = por %p13774_p4, %p13773_p3 }
 0xc41   :  { %v10905_v60 = vpop.permute.xlu0 %10904 }
 0xc42   :  { %v10843_v45 = vpop.permute.xlu1 %10842  ;;  %v11031_v27 = vsel %vm11028_vm5, %v11014_v58, %v10905_v60  ;;  %p13776_p6 = pnand %p13775_p5, %p13769_p2 }
 0xc43   :  { %v11015_v30 = vsel %vm309_vm2, %v16713_v13, %v10843_v45 }
 0xc45   :  { %v10969_v8 = vpop.permute.xlu0 %10968 }
 0xc46   :  { %v10907_v52 = vpop.permute.xlu1 %10906  ;;  %v16132_v44 = vsel %vm11045_vm4, %v11031_v27, %v10969_v8 }
 0xc47   :  { %13289 = vmatprep.mubr.msk.f32.mxu0 %vm96_vm0, %v16132_v44  ;;  %v11032_v49 = vsel %vm11028_vm5, %v11015_v30, %v10907_v52 }
 0xc49   :  { %v10845_v34 = vpop.permute.xlu0 %10844 }
 0xc4a   :  { %v10971_v41 = vpop.permute.xlu1 %10970  ;;  %v11016_v12 = vsel %vm309_vm2, %v16714_v40, %v10845_v34 }
 0xc4b   :  { %v16140_v10 = vsel %vm11045_vm4, %v11032_v49, %v10971_v41 }
 0xc4c   :  { %13290 = vmatmul.mubr.msk.f32.gmra.mrb[144].mxu0 %vm96_vm0, %v16140_v10 }
 0xc4d   :  { %v10909_v42 = vpop.permute.xlu0 %10908 }
 0xc4e   :  { %v10847_v18 = vpop.permute.xlu1 %10846  ;;  %v11033_v55 = vsel %vm11028_vm5, %v11016_v12, %v10909_v42 }
 0xc4f   :  { %v11017_v3 = vsel %vm309_vm2, %v16715_v35, %v10847_v18 }
 0xc51   :  { %v10973_v19 = vpop.permute.xlu0 %10972 }
 0xc52   :  { %v10911_v61 = vpop.permute.xlu1 %10910  ;;  %v16148_v56 = vsel %vm11045_vm4, %v11033_v55, %v10973_v19 }
 0xc53   :  { %13292 = vmatprep.mubr.msk.f32.mxu0 %vm96_vm0, %v16148_v56  ;;  %v11034_v63 = vsel %vm11028_vm5, %v11017_v3, %v10911_v61 }
 0xc56   :  { %v10975_v1 = vpop.permute.xlu1 %10974 }
 0xc57   :  { %v16156_v17 = vsel %vm11045_vm4, %v11034_v63, %v10975_v1 }
 0xc58   :  { %13293 = vmatmul.mubr.msk.f32.gmra.mrb[146].mxu0 %vm96_vm0, %v16156_v17 }
 0xcf7   :  { %v16160_v16 = vpop.f32.mrb[146].mxu1 }
 0xcf8   :  { %v16162_v22 = vpop.f32.mrb[147].mxu1 }
 0xcfb   :  { %v13300_v5 = vpop.f32.mrb[148].mxu1 }
 0xcfc   :  { %v11237_v11 = vadd.f32 %v13300_v5, %v16167_v36  ;;  %v11231_v37 = vpop.f32.mrb[149].mxu1 }
 0xcfd   :  { %v11232_v26 = vadd.f32 %v16167_v36, %v11231_v37 }
 0xcfe   :  { %13624 = vtanh.f32 %v11237_v11 }
 0xcff   :  { %13626 = vtanh.f32 %v11232_v26  ;;  %v13303_v7 = vpop.f32.mrb[150].mxu1 }
 0xd00   :  { %v11247_v32 = vadd.f32 %v13303_v7, %v16167_v36  ;;  %v11241_v54 = vpop.f32.mrb[151].mxu1 }
 0xd01   :  { %v11242_v2 = vadd.f32 %v16167_v36, %v11241_v54 }
 0xd02   :  { %13628 = vtanh.f32 %v11247_v32 }
 0xd03   :  { %13630 = vtanh.f32 %v11242_v2  ;;  %v13306_v51 = vpop.f32.mrb[152].mxu1 }
 0xd04   :  { %v11257_v28 = vadd.f32 %v13306_v51, %v16167_v36  ;;  %v11251_v46 = vpop.f32.mrb[153].mxu1 }
 0xd05   :  { %v11252_v24 = vadd.f32 %v16167_v36, %v11251_v46  ;;  %v11227_v46 = vadd.f32 %v16160_v16, %v16167_v36 }
 0xd06   :  { %13632 = vtanh.f32 %v11257_v28 }
 0xd07   :  { %13634 = vtanh.f32 %v11252_v24  ;;  %v13309_v62 = vpop.f32.mrb[154].mxu1  ;;  %v11222_v24 = vadd.f32 %v16167_v36, %v16162_v22 }
 0xd08   :  { %v13625_v15 = vpop.eup %13624  ;;  %v11267_v23 = vadd.f32 %v13309_v62, %v16167_v36  ;;  %v11261_v9 = vpop.f32.mrb[155].mxu1 }
 0xd09   :  { %v13627_v47 = vpop.eup %13626  ;;  %v11262_v25 = vadd.f32 %v16167_v36, %v11261_v9  ;;  %v11302_v57 = vmul.f32 %v13625_v15, %v16179_v33 }
 0xd0a   :  { %13636 = vtanh.f32 %v11267_v23  ;;  %v11301_v21 = vmul.f32 %v13627_v47, %v16179_v33 }
 0xd0b   :  { %13638 = vtanh.f32 %v11262_v25  ;;  %v11336_v38 = vsel %vm11028_vm5, %v11302_v57, 0.0 }
 0xd0c   :  { %v13629_v60 = vpop.eup %13628  ;;  %11337 = vadd.xlane.f32.xlu1 %v11336_v38  ;;  %v11333_v45 = vsel %vm11028_vm5, %v11301_v21, 0.0 }
 0xd0d   :  { %v13631_v53 = vpop.eup %13630  ;;  %11334 = vadd.xlane.f32.xlu0 %v11333_v45  ;;  %v11304_v58 = vmul.f32 %v13629_v60, %v16179_v33 }
 0xd0e   :  { %v11303_v52 = vmul.f32 %v13631_v53, %v16179_v33 }
 0xd0f   :  { %v11342_v27 = vsel %vm11028_vm5, %v11304_v58, 0.0 }
 0xd10   :  { %v13633_v8 = vpop.eup %13632  ;;  %v11339_v18 = vsel %vm11028_vm5, %v11303_v52, 0.0 }
 0xd11   :  { %v13635_v13 = vpop.eup %13634  ;;  %11343 = vadd.xlane.f32.xlu0 %v11342_v27  ;;  %v11306_v12 = vmul.f32 %v13633_v8, %v16179_v33 }
 0xd12   :  { %v11305_v30 = vmul.f32 %v13635_v13, %v16179_v33 }
 0xd13   :  { %v13288_v34 = vpop.f32.mrb[142].mxu0  ;;  %v11348_v35 = vsel %vm11028_vm5, %v11306_v12, 0.0 }
 0xd14   :  { %v13637_v49 = vpop.eup %13636  ;;  %v11197_v41 = vadd.f32 %v13288_v34, %v16167_v36  ;;  %v11191_v42 = vpop.f32.mrb[143].mxu0  ;;  %v11345_v40 = vsel %vm11028_vm5, %v11305_v30, 0.0 }
 0xd15   :  { %v13639_v55 = vpop.eup %13638  ;;  %v11192_v19 = vadd.f32 %v16167_v36, %v11191_v42  ;;  %11340 = vadd.xlane.f32.xlu0 %v11339_v18  ;;  %11346 = vadd.xlane.f32.xlu1 %v11345_v40  ;;  %v11308_v63 = vmul.f32 %v13637_v49, %v16179_v33  ;;  %v16716_v49 = vlaneseq  ;;  %v16717_v18 = vld [vmem:[#allocation11_spill] sm:$0xff] }
 0xd16   :  { %13640 = vtanh.f32 %v11197_v41  ;;  %v11307_v61 = vmul.f32 %v13639_v55, %v16179_v33 }
 0xd17   :  { %13642 = vtanh.f32 %v11192_v19  ;;  %v11354_v1 = vsel %vm11028_vm5, %v11308_v63, 0.0  ;;  %v11374_v41 = vand.u32 127, %v16716_v49 }
 0xd18   :  { %v11351_v3 = vsel %vm11028_vm5, %v11307_v61, 0.0 }
 0xd19   :  { %11349 = vadd.xlane.f32.xlu0 %v11348_v35  ;;  %11352 = vadd.xlane.f32.xlu1 %v11351_v3  ;;  %v16228_v40 = vsub.s32 %v11374_v41, %v16717_v18 }
 0xd1d   :  { %11355 = vadd.xlane.f32.xlu0 %v11354_v1 }
 0xd1f   :  { %v13291_v5 = vpop.f32.mrb[144].mxu0 }
 0xd20   :  { %v13641_v11 = vpop.eup %13640  ;;  %v11207_v37 = vadd.f32 %v13291_v5, %v16167_v36  ;;  %v11201_v26 = vpop.f32.mrb[145].mxu0 }
 0xd21   :  { %v13643_v7 = vpop.eup %13642  ;;  %v11202_v32 = vadd.f32 %v16167_v36, %v11201_v26  ;;  %v11294_v54 = vmul.f32 %v13641_v11, %v16179_v33 }
 0xd22   :  { %13644 = vtanh.f32 %v11207_v37  ;;  %v11293_v2 = vmul.f32 %v13643_v7, %v16179_v33 }
 0xd23   :  { %13646 = vtanh.f32 %v11202_v32  ;;  %v11312_v51 = vsel %vm11028_vm5, %v11294_v54, 0.0 }
 0xd24   :  { %11313 = vadd.xlane.f32.xlu0 %v11312_v51  ;;  %v11309_v28 = vsel %vm11028_vm5, %v11293_v2, 0.0  ;;  %13648 = vtanh.f32 %v11227_v46 }
 0xd25   :  { %11310 = vadd.xlane.f32.xlu1 %v11309_v28  ;;  %13650 = vtanh.f32 %v11222_v24 }
 0xd2b   :  { %v13294_v62 = vpop.f32.mrb[146].mxu0 }
 0xd2c   :  { %v13645_v15 = vpop.eup %13644  ;;  %v11217_v23 = vadd.f32 %v13294_v62, %v16167_v36  ;;  %v11211_v9 = vpop.f32.mrb[147].mxu0 }
 0xd2d   :  { %v13647_v47 = vpop.eup %13646  ;;  %v11212_v25 = vadd.f32 %v16167_v36, %v11211_v9  ;;  %v11296_v57 = vmul.f32 %v13645_v15, %v16179_v33 }
 0xd2e   :  { %13652 = vtanh.f32 %v11217_v23  ;;  %v11295_v21 = vmul.f32 %v13647_v47, %v16179_v33  ;;  %v13649_v38 = vpop.eup %13648 }
 0xd2f   :  { %13654 = vtanh.f32 %v11212_v25  ;;  %v11318_v16 = vsel %vm11028_vm5, %v11296_v57, 0.0  ;;  %v13651_v60 = vpop.eup %13650  ;;  %v11300_v8 = vmul.f32 %v13649_v38, %v16179_v33 }
 0xd30   :  { %11319 = vadd.xlane.f32.xlu0 %v11318_v16  ;;  %v11315_v22 = vsel %vm11028_vm5, %v11295_v21, 0.0  ;;  %v11299_v13 = vmul.f32 %v13651_v60, %v16179_v33 }
 0xd31   :  { %11316 = vadd.xlane.f32.xlu1 %v11315_v22  ;;  %v11330_v30 = vsel %vm11028_vm5, %v11300_v8, 0.0 }
 0xd32   :  { %v11327_v34 = vsel %vm11028_vm5, %v11299_v13, 0.0 }
 0xd38   :  { %v13653_v45 = vpop.eup %13652 }
 0xd39   :  { %v13655_v53 = vpop.eup %13654  ;;  %v11298_v58 = vmul.f32 %v13653_v45, %v16179_v33 }
 0xd3a   :  { %v11297_v36 = vmul.f32 %v13655_v53, %v16179_v33 }
 0xd3b   :  { %v11324_v27 = vsel %vm11028_vm5, %v11298_v58, 0.0 }
 0xd3c   :  { %11325 = vadd.xlane.f32.xlu0 %v11324_v27  ;;  %v11321_v52 = vsel %vm11028_vm5, %v11297_v36, 0.0  ;;  %v13810_v36 = vmov 0  }
 0xd3d   :  { %11322 = vadd.xlane.f32.xlu1 %v11321_v52  ;;  %13367 = vset.pattern.permute.xlu0 %v13810_v36 }
 0xd3e   :  { %13366 = vset.pattern.permute.xlu1 %v13810_v36  ;;  %v16331_v36 = vsub.s32 7, %v16717_v18 }
 0xd40   :  { %11331 = vadd.xlane.f32.xlu0 %v11330_v30 }
 0xd41   :  { %11328 = vadd.xlane.f32.xlu1 %v11327_v34 }
 0xd99   :  { %v16230_v12 = vpop.xlane.xlu1 %11337 }
 0xd9a   :  { %v16225_v42 = vpop.xlane.xlu0 %11334  ;;  %v11414_v33 = vrot.slane %v16230_v12, %v16228_v40 }
 0xd9b   :  { %v11410_v19 = vrot.slane %v16225_v42, %v16228_v40 }
 0xd9d   :  { %v11453_v63 = vsel %vm11439_vm6, %v11414_v33, %v11410_v19 }
 0xd9e   :  { %v16232_v55 = vpop.xlane.xlu0 %11343 }
 0xd9f   :  { %v11422_v1 = vrot.slane %v16232_v55, %v16228_v40 }
 0xda2   :  { %v16238_v61 = vpop.xlane.xlu1 %11346  ;;  %v11341_v35 = vpop.xlane.xlu0 %11340 }
 0xda3   :  { %v11418_v3 = vrot.slane %v11341_v35, %v16228_v40  ;;  %v11426_v5 = vrot.slane %v16238_v61, %v16228_v40 }
 0xda5   :  { %v11454_v11 = vsel %vm11441_vm7, %v11418_v3, %v11453_v63  ;;  %v16306_v63 = vsub.s32 2, %v16717_v18 }
 0xda6   :  { %v11455_v37 = vsel %vm11443_vm8, %v11422_v1, %v11454_v11  ;;  %v16248_v26 = vpop.xlane.xlu1 %11352  ;;  %v16250_v7 = vpop.xlane.xlu0 %11349  ;;  %v16309_v1 = vsub.s32 3, %v16717_v18  ;;  %v16718_v11 = vld [vmem:[#allocation12_spill] sm:$0xff] }
 0xda7   :  { %v11456_v32 = vsel %vm11445_vm9, %v11426_v5, %v11455_v37  ;;  %v11430_v54 = vrot.slane %v16250_v7, %v16228_v40  ;;  %v11434_v2 = vrot.slane %v16248_v26, %v16228_v40 }
 0xda9   :  { %v11457_v51 = vsel %vm11447_vm10, %v11430_v54, %v11456_v32  ;;  %v16719_v32 = vld [vmem:[#allocation13_spill] sm:$0xff] }
 0xdaa   :  { %v16258_v28 = vpop.xlane.xlu0 %11355  ;;  %v11458_v24 = vsel %vm11449_vm11, %v11434_v2, %v11457_v51  ;;  %v16315_v51 = vsub.s32 4, %v16717_v18 }
 0xdab   :  { %v11438_v46 = vrot.slane %v16258_v28, %v16228_v40 }
 0xdad   :  { %v11459_v62 = vsel %vm11451_vm12, %v11438_v46, %v11458_v24 }
 0xdae   :  { %v11465_v15 = vsel %vm1539_vm3, %v11459_v62, -inf }
 0xdaf   :  { %11466 = vmax.xlane.f32.xlu1 %v11465_v15 }
 0xdb1   :  { %v16267_v9 = vpop.xlane.xlu0 %11313 }
 0xdb2   :  { %v16265_v23 = vpop.xlane.xlu1 %11310  ;;  %v11382_v25 = vrot.slane %v16267_v9, %v16228_v40 }
 0xdb3   :  { %v11378_v57 = vrot.slane %v16265_v23, %v16228_v40 }
 0xdb5   :  { %v11440_v22 = vsel %vm11439_vm6, %v11382_v25, %v11378_v57 }
 0xdbd   :  { %v16275_v21 = vpop.xlane.xlu0 %11319 }
 0xdbe   :  { %v16269_v47 = vpop.xlane.xlu1 %11316  ;;  %v11390_v45 = vrot.slane %v16275_v21, %v16228_v40 }
 0xdbf   :  { %v11386_v16 = vrot.slane %v16269_v47, %v16228_v40 }
 0xdc1   :  { %v11442_v38 = vsel %vm11441_vm7, %v11386_v16, %v11440_v22  ;;  %v16321_v16 = vsub.s32 5, %v16717_v18 }
 0xdc2   :  { %v11444_v27 = vsel %vm11443_vm8, %v11390_v45, %v11442_v38 }
 0xdc9   :  { %v16281_v60 = vpop.xlane.xlu0 %11325 }
 0xdca   :  { %v16285_v53 = vpop.xlane.xlu1 %11322  ;;  %v11398_v13 = vrot.slane %v16281_v60, %v16228_v40 }
 0xdcb   :  { %v11394_v58 = vrot.slane %v16285_v53, %v16228_v40 }
 0xdcd   :  { %v11446_v8 = vsel %vm11445_vm9, %v11394_v58, %v11444_v27  ;;  %v16291_v52 = vpop.xlane.xlu0 %11331  ;;  %v16326_v58 = vsub.s32 6, %v16717_v18 }
 0xdce   :  { %v16295_v30 = vpop.xlane.xlu1 %11328  ;;  %v11406_v49 = vrot.slane %v16291_v52, %v16228_v40  ;;  %v11448_v41 = vsel %vm11447_vm10, %v11398_v13, %v11446_v8 }
 0xdcf   :  { %v11402_v34 = vrot.slane %v16295_v30, %v16228_v40 }
 0xdd1   :  { %v11450_v33 = vsel %vm11449_vm11, %v11402_v34, %v11448_v41 }
 0xdd2   :  { %v11452_v19 = vsel %vm11451_vm12, %v11406_v49, %v11450_v33 }
 0xdd3   :  { %v11462_v3 = vsel %vm1539_vm3, %v11452_v19, -inf }
 0xdd4   :  { %11463 = vmax.xlane.f32.xlu0 %v11462_v3 }
 0xe3c   :  { %v11467_v5 = vpop.xlane.xlu1 %11466 }
 0xe3d   :  { %v11505_v37 = vrot.slane %v11467_v5, %v16718_v11  ;;  %v11509_v54 = vrot.slane %v11467_v5, %v16719_v32  ;;  %v11513_v2 = vrot.slane %v11467_v5, %v16306_v63  ;;  %v11517_v46 = vrot.slane %v11467_v5, %v16309_v1 }
 0xe3e   :  { %v11521_v22 = vrot.slane %v11467_v5, %v16315_v51  ;;  %v11529_v27 = vrot.slane %v11467_v5, %v16326_v58  ;;  %v11533_v49 = vrot.slane %v11467_v5, %v16331_v36 }
 0xe3f   :  { %v11558_v24 = vsub.f32 %v16225_v42, %v11505_v37  ;;  %v11559_v62 = vsub.f32 %v16230_v12, %v11509_v54  ;;  %v11560_v15 = vsub.f32 %v11341_v35, %v11513_v2  ;;  %v11561_v38 = vsub.f32 %v16232_v55, %v11517_v46 }
 0xe40   :  { %v11525_v42 = vrot.slane %v11467_v5, %v16321_v16  ;;  %v11562_v12 = vsub.f32 %v16238_v61, %v11521_v22  ;;  %v11564_v61 = vsub.f32 %v16248_v26, %v11529_v27 }
 0xe41   :  { %v11582_v25 = vmul.f32 1.442695, %v11558_v24  ;;  %v11584_v57 = vmul.f32 1.442695, %v11559_v62  ;;  %v11586_v45 = vmul.f32 1.442695, %v11560_v15 }
 0xe42   :  { %v11588_v35 = vmul.f32 1.442695, %v11561_v38  ;;  %v11563_v8 = vsub.f32 %v16250_v7, %v11525_v42  ;;  %v11590_v55 = vmul.f32 1.442695, %v11562_v12  ;;  %v11565_v7 = vsub.f32 %v16258_v28, %v11533_v49 }
 0xe43   :  { %13656 = vpow2.f32 %v11582_v25  ;;  %v11594_v33 = vmul.f32 1.442695, %v11564_v61 }
 0xe44   :  { %13658 = vpow2.f32 %v11584_v57  ;;  %v11592_v41 = vmul.f32 1.442695, %v11563_v8  ;;  %v11596_v3 = vmul.f32 1.442695, %v11565_v7 }
 0xe45   :  { %13660 = vpow2.f32 %v11586_v45 }
 0xe46   :  { %13662 = vpow2.f32 %v11588_v35 }
 0xe47   :  { %13664 = vpow2.f32 %v11590_v55 }
 0xe48   :  { %13666 = vpow2.f32 %v11592_v41 }
 0xe49   :  { %13668 = vpow2.f32 %v11594_v33 }
 0xe4a   :  { %13670 = vpow2.f32 %v11596_v3 }
 0xe4d   :  { %v16335_v13 = vpop.eup %13656 }
 0xe4e   :  { %v16337_v34 = vpop.eup %13658  ;;  %11639 = vperm.xlu1 %13366, %v16335_v13  }
 0xe4f   :  { %11642 = vperm.xlu0 %13367, %v16337_v34   ;;  %v16343_v18 = vpop.eup %13660 }
 0xe50   :  { %v16347_v19 = vpop.eup %13662 }
 0xe51   :  { %v16350_v5 = vpop.eup %13664 }
 0xe52   :  { %11645 = vperm.xlu1 %13366, %v16343_v18   ;;  %v16353_v26 = vpop.eup %13666 }
 0xe53   :  { %v16356_v37 = vpop.eup %13668 }
 0xe54   :  { %v16367_v22 = vpop.eup %13670 }
 0xe56   :  { %11648 = vperm.xlu1 %13366, %v16347_v19  }
 0xe5a   :  { %11651 = vperm.xlu1 %13366, %v16350_v5  }
 0xe5e   :  { %11654 = vperm.xlu1 %13366, %v16353_v26  }
 0xe61   :  { %v11464_v28 = vpop.xlane.xlu0 %11463 }
 0xe62   :  { %v11473_v54 = vrot.slane %v11464_v28, %v16718_v11  ;;  %v11477_v2 = vrot.slane %v11464_v28, %v16719_v32  ;;  %v11481_v46 = vrot.slane %v11464_v28, %v16306_v63  ;;  %11657 = vperm.xlu1 %13366, %v16356_v37   ;;  %v11489_v24 = vrot.slane %v11464_v28, %v16315_v51 }
 0xe63   :  { %v11485_v62 = vrot.slane %v11464_v28, %v16309_v1  ;;  %v11497_v38 = vrot.slane %v11464_v28, %v16326_v58  ;;  %v11493_v35 = vrot.slane %v11464_v28, %v16321_v16  ;;  %v11501_v8 = vrot.slane %v11464_v28, %v16331_v36 }
 0xe64   :  { %v11550_v15 = vsub.f32 %v16265_v23, %v11473_v54  ;;  %v11551_v25 = vsub.f32 %v16267_v9, %v11477_v2  ;;  %v11552_v57 = vsub.f32 %v16269_v47, %v11481_v46  ;;  %v11554_v45 = vsub.f32 %v16285_v53, %v11489_v24 }
 0xe65   :  { %v11553_v27 = vsub.f32 %v16275_v21, %v11485_v62  ;;  %v11556_v9 = vsub.f32 %v16295_v30, %v11497_v38  ;;  %v11555_v55 = vsub.f32 %v16281_v60, %v11493_v35  ;;  %v11557_v61 = vsub.f32 %v16291_v52, %v11501_v8 }
 0xe66   :  { %v11566_v42 = vmul.f32 1.442695, %v11550_v15  ;;  %v11570_v12 = vmul.f32 1.442695, %v11552_v57  ;;  %11660 = vperm.xlu1 %13366, %v16367_v22   ;;  %v11568_v23 = vmul.f32 1.442695, %v11551_v25 }
 0xe67   :  { %v11574_v47 = vmul.f32 1.442695, %v11554_v45  ;;  %v11572_v53 = vmul.f32 1.442695, %v11553_v27  ;;  %v11578_v49 = vmul.f32 1.442695, %v11556_v9 }
 0xe68   :  { %13672 = vpow2.f32 %v11566_v42  ;;  %v11576_v41 = vmul.f32 1.442695, %v11555_v55  ;;  %v11580_v30 = vmul.f32 1.442695, %v11557_v61 }
 0xe69   :  { %13674 = vpow2.f32 %v11570_v12 }
 0xe6a   :  { %13676 = vpow2.f32 %v11568_v23 }
 0xe6b   :  { %13678 = vpow2.f32 %v11574_v47 }
 0xe6c   :  { %13680 = vpow2.f32 %v11572_v53 }
 0xe6d   :  { %13682 = vpow2.f32 %v11578_v49 }
 0xe6e   :  { %13684 = vpow2.f32 %v11576_v41 }
 0xe6f   :  { %13686 = vpow2.f32 %v11580_v30 }
 0xe72   :  { %v16378_v7 = vpop.eup %13672 }
 0xe73   :  { %11615 = vperm.xlu1 %13366, %v16378_v7   ;;  %v16381_v21 = vpop.eup %13674 }
 0xe74   :  { %11621 = vperm.xlu0 %13367, %v16381_v21   ;;  %v16384_v60 = vpop.eup %13676 }
 0xe75   :  { %v16387_v33 = vpop.eup %13678 }
 0xe76   :  { %v16390_v52 = vpop.eup %13680 }
 0xe77   :  { %11618 = vperm.xlu1 %13366, %v16384_v60   ;;  %v16393_v3 = vpop.eup %13682 }
 0xe78   :  { %11627 = vperm.xlu0 %13367, %v16387_v33   ;;  %v16396_v28 = vpop.eup %13684 }
 0xe79   :  { %v16399_v54 = vpop.eup %13686 }
 0xe7b   :  { %11624 = vperm.xlu1 %13366, %v16390_v52  }
 0xe7c   :  { %11633 = vperm.xlu0 %13367, %v16393_v3  }
 0xe7f   :  { %11630 = vperm.xlu1 %13366, %v16396_v28  }
 0xe83   :  { %11636 = vperm.xlu1 %13366, %v16399_v54  }
 0xecd   :  { %v11640_v2 = vpop.permute.xlu1 %11639 }
 0xece   :  { %v11643_v15 = vpop.permute.xlu0 %11642  ;;  %v11697_v57 = vrot.slane %v11640_v2, %v16228_v40 }
 0xecf   :  { %v11701_v38 = vrot.slane %v11643_v15, %v16228_v40 }
 0xed1   :  { %v11646_v46 = vpop.permute.xlu1 %11645  ;;  %v11733_v27 = vsel %vm11439_vm6, %v11701_v38, %v11697_v57 }
 0xed2   :  { %v11705_v45 = vrot.slane %v11646_v46, %v16228_v40 }
 0xed4   :  { %v11734_v9 = vsel %vm11441_vm7, %v11705_v45, %v11733_v27 }
 0xed5   :  { %v11649_v24 = vpop.permute.xlu1 %11648 }
 0xed6   :  { %v11709_v42 = vrot.slane %v11649_v24, %v16228_v40 }
 0xed8   :  { %v11735_v8 = vsel %vm11443_vm8, %v11709_v42, %v11734_v9 }
 0xed9   :  { %v11652_v62 = vpop.permute.xlu1 %11651 }
 0xeda   :  { %v11713_v12 = vrot.slane %v11652_v62, %v16228_v40 }
 0xedc   :  { %v11736_v55 = vsel %vm11445_vm9, %v11713_v12, %v11735_v8 }
 0xedd   :  { %v11655_v25 = vpop.permute.xlu1 %11654 }
 0xede   :  { %v11717_v23 = vrot.slane %v11655_v25, %v16228_v40 }
 0xee0   :  { %v11737_v49 = vsel %vm11447_vm10, %v11717_v23, %v11736_v55 }
 0xee1   :  { %v11658_v35 = vpop.permute.xlu1 %11657 }
 0xee2   :  { %v11721_v47 = vrot.slane %v11658_v35, %v16228_v40 }
 0xee4   :  { %v11738_v41 = vsel %vm11449_vm11, %v11721_v47, %v11737_v49 }
 0xee5   :  { %v11661_v53 = vpop.permute.xlu1 %11660 }
 0xee6   :  { %v11725_v61 = vrot.slane %v11661_v53, %v16228_v40 }
 0xee8   :  { %v11739_v30 = vsel %vm11451_vm12, %v11725_v61, %v11738_v41 }
 0xee9   :  { %v11745_v2 = vsel %vm1539_vm3, %v11739_v30, 0.0 }
 0xeea   :  { %11746 = vadd.xlane.f32.xlu0 %v11745_v2 }
 0xef2   :  { %v11616_v46 = vpop.permute.xlu1 %11615 }
 0xef3   :  { %v11622_v24 = vpop.permute.xlu0 %11621  ;;  %v11665_v15 = vrot.slane %v11616_v46, %v16228_v40 }
 0xef4   :  { %v11673_v45 = vrot.slane %v11622_v24, %v16228_v40 }
 0xef6   :  { %v11619_v62 = vpop.permute.xlu1 %11618 }
 0xef7   :  { %v11669_v25 = vrot.slane %v11619_v62, %v16228_v40  ;;  %v11628_v38 = vpop.permute.xlu0 %11627 }
 0xef8   :  { %v11681_v23 = vrot.slane %v11628_v38, %v16228_v40 }
 0xef9   :  { %v11726_v57 = vsel %vm11439_vm6, %v11669_v25, %v11665_v15 }
 0xefa   :  { %v11625_v42 = vpop.permute.xlu1 %11624  ;;  %v11727_v35 = vsel %vm11441_vm7, %v11673_v45, %v11726_v57 }
 0xefb   :  { %v11677_v12 = vrot.slane %v11625_v42, %v16228_v40  ;;  %v11634_v47 = vpop.permute.xlu0 %11633 }
 0xefc   :  { %v11689_v49 = vrot.slane %v11634_v47, %v16228_v40 }
 0xefd   :  { %v11728_v27 = vsel %vm11443_vm8, %v11677_v12, %v11727_v35 }
 0xefe   :  { %v11631_v9 = vpop.permute.xlu1 %11630  ;;  %v11729_v55 = vsel %vm11445_vm9, %v11681_v23, %v11728_v27 }
 0xeff   :  { %v11685_v8 = vrot.slane %v11631_v9, %v16228_v40 }
 0xf01   :  { %v11730_v53 = vsel %vm11447_vm10, %v11685_v8, %v11729_v55 }
 0xf02   :  { %v11637_v61 = vpop.permute.xlu1 %11636  ;;  %v11731_v30 = vsel %vm11449_vm11, %v11689_v49, %v11730_v53 }
 0xf03   :  { %v11693_v41 = vrot.slane %v11637_v61, %v16228_v40 }
 0xf05   :  { %v11732_v2 = vsel %vm11451_vm12, %v11693_v41, %v11731_v30 }
 0xf06   :  { %v11742_v46 = vsel %vm1539_vm3, %v11732_v2, 0.0 }
 0xf07   :  { %11743 = vadd.xlane.f32.xlu1 %v11742_v46 }
 0xf77   :  { %v11747_v24 = vpop.xlane.xlu0 %11746 }
 0xf78   :  { %13688 = vrcp.f32 %v11747_v24 }
 0xf82   :  { %v13689_v62 = vpop.eup %13688 }
 0xf83   :  { %v11791_v15 = vrot.slane %v13689_v62, %v16719_v32  ;;  %v11787_v25 = vrot.slane %v13689_v62, %v16718_v11  ;;  %v11799_v40 = vrot.slane %v13689_v62, %v16309_v1  ;;  %v11795_v45 = vrot.slane %v13689_v62, %v16306_v63 }
 0xf84   :  { %v11807_v35 = vrot.slane %v13689_v62, %v16321_v16  ;;  %v11803_v27 = vrot.slane %v13689_v62, %v16315_v51  ;;  %v11815_v23 = vrot.slane %v13689_v62, %v16331_v36  ;;  %v11811_v9 = vrot.slane %v13689_v62, %v16326_v58 }
 0xf85   :  { %v11841_v57 = vmul.f32 %v16337_v34, %v11791_v15  ;;  %v11840_v38 = vmul.f32 %v16335_v13, %v11787_v25  ;;  %v11843_v42 = vmul.f32 %v16347_v19, %v11799_v40  ;;  %v11842_v12 = vmul.f32 %v16343_v18, %v11795_v45 }
 0xf86   :  { %v11845_v34 = vmul.f32 %v16353_v26, %v11807_v35  ;;  %v11844_v13 = vmul.f32 %v16350_v5, %v11803_v27  ;;  %v11847_v19 = vmul.f32 %v16367_v22, %v11815_v23  ;;  %v11846_v18 = vmul.f32 %v16356_v37, %v11811_v9 }
 0xf87   :  { %11895 = vperm.xlu1 %13366, %v11841_v57   ;;  %11890 = vperm.xlu0 %13367, %v11840_v38  }
 0xf8b   :  { %11905 = vperm.xlu1 %13366, %v11843_v42   ;;  %11900 = vperm.xlu0 %13367, %v11842_v12  }
 0xf8f   :  { %11915 = vperm.xlu1 %13366, %v11845_v34   ;;  %11910 = vperm.xlu0 %13367, %v11844_v13  }
 0xf93   :  { %11925 = vperm.xlu1 %13366, %v11847_v19   ;;  %11920 = vperm.xlu0 %13367, %v11846_v18  }
 0xf94   :  { %v11744_v47 = vpop.xlane.xlu1 %11743 }
 0xf95   :  { %13690 = vrcp.f32 %v11744_v47 }
 0xf9f   :  { %v13691_v8 = vpop.eup %13690 }
 0xfa0   :  { %v11759_v55 = vrot.slane %v13691_v8, %v16719_v32  ;;  %v11755_v26 = vrot.slane %v13691_v8, %v16718_v11  ;;  %v11767_v49 = vrot.slane %v13691_v8, %v16309_v1  ;;  %v11763_v61 = vrot.slane %v13691_v8, %v16306_v63 }
 0xfa1   :  { %v11775_v41 = vrot.slane %v13691_v8, %v16321_v16  ;;  %v11771_v32 = vrot.slane %v13691_v8, %v16315_v51  ;;  %v11783_v1 = vrot.slane %v13691_v8, %v16331_v36  ;;  %v11779_v63 = vrot.slane %v13691_v8, %v16326_v58 }
 0xfa2   :  { %v11833_v5 = vmul.f32 %v16384_v60, %v11759_v55  ;;  %v11832_v53 = vmul.f32 %v16378_v7, %v11755_v26  ;;  %v11835_v37 = vmul.f32 %v16390_v52, %v11767_v49  ;;  %v11834_v22 = vmul.f32 %v16381_v21, %v11763_v61 }
 0xfa3   :  { %v11837_v11 = vmul.f32 %v16396_v28, %v11775_v41  ;;  %v11836_v7 = vmul.f32 %v16387_v33, %v11771_v32  ;;  %v11839_v60 = vmul.f32 %v16399_v54, %v11783_v1  ;;  %v11838_v21 = vmul.f32 %v16393_v3, %v11779_v63 }
 0xfa4   :  { %11855 = vperm.xlu1 %13366, %v11833_v5   ;;  %11850 = vperm.xlu0 %13367, %v11832_v53  }
 0xfa8   :  { %11865 = vperm.xlu1 %13366, %v11835_v37   ;;  %11860 = vperm.xlu0 %13367, %v11834_v22  }
 0xfac   :  { %11875 = vperm.xlu1 %13366, %v11837_v11   ;;  %11870 = vperm.xlu0 %13367, %v11836_v7  }
 0xfb0   :  { %11885 = vperm.xlu1 %13366, %v11839_v60   ;;  %11880 = vperm.xlu0 %13367, %v11838_v21  }
0x1006   :  { %v11896_v16 = vpop.permute.xlu1 %11895  ;;  %v11891_v51 = vpop.permute.xlu0 %11890 }
0x1007   :  { %v11937_v52 = vmul.f32 %v11896_v16, %v16066_v48  ;;  %v11936_v28 = vmul.f32 %v11891_v51, %v16047_v14 }
0x1009   :  { %v12007_v33 = vsel %vm96_vm0, %v11937_v52, 0.0  ;;  %v12000_v36 = vsel %vm96_vm0, %v11936_v28, 0.0 }
0x100a   :  { %v12008_v30 = vrot.slane %v12007_v33, 4  ;;  %v12001_v58 = vrot.slane %v12000_v36, 4  ;;  %v11906_v2 = vpop.permute.xlu1 %11905  ;;  %v11901_v46 = vpop.permute.xlu0 %11900 }
0x100b   :  { %v11939_v54 = vmul.f32 %v11906_v2, %v16082_v31  ;;  %v11938_v3 = vmul.f32 %v11901_v46, %v16063_v4 }
0x100c   :  { %v12009_v24 = vadd.f32 %v12008_v30, %v12007_v33  ;;  %v12002_v62 = vadd.f32 %v12001_v58, %v12000_v36 }
0x100d   :  { %v12021_v15 = vsel %vm96_vm0, %v11939_v54, 0.0  ;;  %v12014_v48 = vsel %vm96_vm0, %v11938_v3, 0.0 }
0x100e   :  { %v12010_v25 = vrot.slane %v12009_v24, 2  ;;  %v12003_v14 = vrot.slane %v12002_v62, 2  ;;  %v12022_v57 = vrot.slane %v12021_v15, 4  ;;  %v12015_v38 = vrot.slane %v12014_v48, 4  ;;  %v11916_v40 = vpop.permute.xlu1 %11915  ;;  %v11911_v45 = vpop.permute.xlu0 %11910 }
0x100f   :  { %v11941_v42 = vmul.f32 %v11916_v40, %v16098_v50  ;;  %v11940_v12 = vmul.f32 %v11911_v45, %v16079_v39 }
0x1010   :  { %v12011_v35 = vadd.f32 %v12010_v25, %v12009_v24  ;;  %v12004_v31 = vadd.f32 %v12003_v14, %v12002_v62  ;;  %v12023_v27 = vadd.f32 %v12022_v57, %v12021_v15  ;;  %v12016_v4 = vadd.f32 %v12015_v38, %v12014_v48 }
0x1011   :  { %v12035_v34 = vsel %vm96_vm0, %v11941_v42, 0.0  ;;  %v12028_v13 = vsel %vm96_vm0, %v11940_v12, 0.0 }
0x1012   :  { %v12012_v23 = vrot.slane %v12011_v35, 1  ;;  %v12005_v9 = vrot.slane %v12004_v31, 1  ;;  %v12024_v19 = vrot.slane %v12023_v27, 2  ;;  %v12017_v18 = vrot.slane %v12016_v4, 2  ;;  %v11926_v47 = vpop.permute.xlu1 %11925  ;;  %v11921_v8 = vpop.permute.xlu0 %11920 }
0x1013   :  { %v12036_v55 = vrot.slane %v12035_v34, 4  ;;  %v12029_v26 = vrot.slane %v12028_v13, 4  ;;  %v11943_v50 = vmul.f32 %v11926_v47, %v16108_v0  ;;  %v11942_v39 = vmul.f32 %v11921_v8, %v16095_v43 }
0x1014   :  { %v12013_v5 = vadd.f32 %v12012_v23, %v12011_v35  ;;  %v12025_v53 = vadd.f32 %v12024_v19, %v12023_v27  ;;  %v12018_v49 = vadd.f32 %v12017_v18, %v12016_v4  ;;  %v12006_v32 = vadd.f32 %v12005_v9, %v12004_v31 }
0x1015   :  { %v12037_v61 = vadd.f32 %v12036_v55, %v12035_v34  ;;  %v12030_v37 = vadd.f32 %v12029_v26, %v12028_v13  ;;  %v12049_v22 = vsel %vm96_vm0, %v11943_v50, 0.0  ;;  %v12042_v41 = vsel %vm96_vm0, %v11942_v39, 0.0 }
0x1016   :  { %v12026_v11 = vrot.slane %v12025_v53, 1  ;;  %v12019_v7 = vrot.slane %v12018_v49, 1  ;;  %v12050_v1 = vrot.slane %v12049_v22, 4  ;;  %v12043_v21 = vrot.slane %v12042_v41, 4 }
0x1017   :  { %v12038_v63 = vrot.slane %v12037_v61, 2  ;;  %v12031_v60 = vrot.slane %v12030_v37, 2  ;;  %13692 = vtanh.f32 %v12013_v5 }
0x1018   :  { %v12020_v16 = vadd.f32 %v12019_v7, %v12018_v49  ;;  %v12051_v0 = vadd.f32 %v12050_v1, %v12049_v22  ;;  %v12044_v52 = vadd.f32 %v12043_v21, %v12042_v41  ;;  %13694 = vtanh.f32 %v12006_v32 }
0x1019   :  { %v12039_v43 = vadd.f32 %v12038_v63, %v12037_v61  ;;  %v12032_v51 = vadd.f32 %v12031_v60, %v12030_v37  ;;  %v12027_v28 = vadd.f32 %v12026_v11, %v12025_v53 }
0x101a   :  { %v12052_v33 = vrot.slane %v12051_v0, 2  ;;  %13696 = vtanh.f32 %v12020_v16  ;;  %v12045_v58 = vrot.slane %v12044_v52, 2 }
0x101b   :  { %v12040_v36 = vrot.slane %v12039_v43, 1  ;;  %v12033_v30 = vrot.slane %v12032_v51, 1  ;;  %13698 = vtanh.f32 %v12027_v28 }
0x101c   :  { %v12053_v2 = vadd.f32 %v12052_v33, %v12051_v0  ;;  %v12046_v54 = vadd.f32 %v12045_v58, %v12044_v52 }
0x101d   :  { %v12034_v46 = vadd.f32 %v12033_v30, %v12032_v51  ;;  %v12041_v3 = vadd.f32 %v12040_v36, %v12039_v43 }
0x101e   :  { %v12054_v24 = vrot.slane %v12053_v2, 1  ;;  %v12047_v62 = vrot.slane %v12046_v54, 1 }
0x101f   :  { %13700 = vtanh.f32 %v12034_v46 }
0x1020   :  { %v12055_v15 = vadd.f32 %v12054_v24, %v12053_v2  ;;  %v12048_v48 = vadd.f32 %v12047_v62, %v12046_v54  ;;  %13702 = vtanh.f32 %v12041_v3 }
0x1021   :  { %v13693_v25 = vpop.eup %13692 }
0x1022   :  { %13704 = vtanh.f32 %v12048_v48  ;;  %v13695_v14 = vpop.eup %13694 }
0x1023   :  { %13706 = vtanh.f32 %v12055_v15  ;;  %v12096_v38 = vsel %vm11439_vm6, %v13693_v25, %v13695_v14  ;;  %v11851_v9 = vpop.permute.xlu0 %11850  ;;  %v11856_v19 = vpop.permute.xlu1 %11855 }
0x1024   :  { %v13697_v57 = vpop.eup %13696  ;;  %v11929_v8 = vmul.f32 %v11856_v19, %v16124_v6  ;;  %v11928_v55 = vmul.f32 %v11851_v9, %v16116_v29 }
0x1025   :  { %v13699_v40 = vpop.eup %13698  ;;  %v12097_v45 = vsel %vm11441_vm7, %v13697_v57, %v12096_v38 }
0x1026   :  { %v12098_v12 = vsel %vm11443_vm8, %v13699_v40, %v12097_v45  ;;  %v11951_v39 = vsel %vm96_vm0, %v11929_v8, 0.0  ;;  %v11944_v53 = vsel %vm96_vm0, %v11928_v55, 0.0 }
0x1027   :  { %v11861_v18 = vpop.permute.xlu0 %11860  ;;  %v11866_v47 = vpop.permute.xlu1 %11865  ;;  %v11952_v22 = vrot.slane %v11951_v39, 4  ;;  %v11945_v32 = vrot.slane %v11944_v53, 4 }
0x1028   :  { %v11930_v50 = vmul.f32 %v11861_v18, %v16132_v44  ;;  %v11931_v49 = vmul.f32 %v11866_v47, %v16140_v10 }
0x1029   :  { %v13701_v42 = vpop.eup %13700  ;;  %v11953_v63 = vadd.f32 %v11952_v22, %v11951_v39  ;;  %v11946_v60 = vadd.f32 %v11945_v32, %v11944_v53 }
0x102a   :  { %v13703_v35 = vpop.eup %13702  ;;  %v12099_v31 = vsel %vm11445_vm9, %v13701_v42, %v12098_v12  ;;  %v11958_v61 = vsel %vm96_vm0, %v11930_v50, 0.0  ;;  %v11965_v6 = vsel %vm96_vm0, %v11931_v49, 0.0 }
0x102b   :  { %v12100_v34 = vsel %vm11447_vm10, %v13703_v35, %v12099_v31  ;;  %v11871_v26 = vpop.permute.xlu0 %11870  ;;  %v11876_v5 = vpop.permute.xlu1 %11875  ;;  %v11959_v29 = vrot.slane %v11958_v61, 4  ;;  %v11966_v10 = vrot.slane %v11965_v6, 4  ;;  %v11954_v51 = vrot.slane %v11953_v63, 2 }
0x102c   :  { %v13705_v27 = vpop.eup %13704  ;;  %v11932_v37 = vmul.f32 %v11871_v26, %v16148_v56  ;;  %v11933_v11 = vmul.f32 %v11876_v5, %v16156_v17  ;;  %v11947_v52 = vrot.slane %v11946_v60, 2 }
0x102d   :  { %v13707_v4 = vpop.eup %13706  ;;  %v12101_v13 = vsel %vm11449_vm11, %v13705_v27, %v12100_v34  ;;  %v11960_v21 = vadd.f32 %v11959_v29, %v11958_v61  ;;  %v11967_v28 = vadd.f32 %v11966_v10, %v11965_v6  ;;  %v11955_v58 = vadd.f32 %v11954_v51, %v11953_v63 }
0x102e   :  { %v12102_v23 = vsel %vm11451_vm12, %v13707_v4, %v12101_v13  ;;  %v11972_v44 = vsel %vm96_vm0, %v11932_v37, 0.0  ;;  %v11979_v16 = vsel %vm96_vm0, %v11933_v11, 0.0  ;;  %v11948_v2 = vadd.f32 %v11947_v52, %v11946_v60 }
0x102f   :  { %12103 = vrot.lane.b32.xlu0 %v12102_v23, %s13804_s25  ;;  %v11881_v41 = vpop.permute.xlu0 %11880  ;;  %v11886_v7 = vpop.permute.xlu1 %11885  ;;  %v11973_v56 = vrot.slane %v11972_v44, 4  ;;  %v11980_v17 = vrot.slane %v11979_v16, 4  ;;  %v11961_v33 = vrot.slane %v11960_v21, 2  ;;  %v11968_v46 = vrot.slane %v11967_v28, 2 }
0x1030   :  { %v11934_v1 = vmul.f32 %v11881_v41, %v16036_v59  ;;  %v11935_v0 = vmul.f32 %v11886_v7, %v16050_v20  ;;  %v11956_v20 = vrot.slane %v11955_v58, 1  ;;  %v11949_v48 = vrot.slane %v11948_v2, 1 }
0x1031   :  { %v11974_v36 = vadd.f32 %v11973_v56, %v11972_v44  ;;  %v11981_v54 = vadd.f32 %v11980_v17, %v11979_v16  ;;  %v11962_v24 = vadd.f32 %v11961_v33, %v11960_v21  ;;  %v11969_v25 = vadd.f32 %v11968_v46, %v11967_v28 }
0x1032   :  { %v11986_v43 = vsel %vm96_vm0, %v11934_v1, 0.0  ;;  %v11993_v30 = vsel %vm96_vm0, %v11935_v0, 0.0  ;;  %v11957_v42 = vadd.f32 %v11956_v20, %v11955_v58  ;;  %v11950_v12 = vadd.f32 %v11949_v48, %v11948_v2 }
0x1033   :  { %v11987_v59 = vrot.slane %v11986_v43, 4  ;;  %v11994_v3 = vrot.slane %v11993_v30, 4  ;;  %v11975_v62 = vrot.slane %v11974_v36, 2  ;;  %v11982_v14 = vrot.slane %v11981_v54, 2 }
0x1034   :  { %v11963_v38 = vrot.slane %v11962_v24, 1  ;;  %v11970_v35 = vrot.slane %v11969_v25, 1  ;;  %13708 = vtanh.f32 %v11957_v42 }
0x1035   :  { %v11988_v15 = vadd.f32 %v11987_v59, %v11986_v43  ;;  %v11995_v57 = vadd.f32 %v11994_v3, %v11993_v30  ;;  %v11976_v40 = vadd.f32 %v11975_v62, %v11974_v36  ;;  %v11983_v31 = vadd.f32 %v11982_v14, %v11981_v54 }
0x1036   :  { %v11964_v4 = vadd.f32 %v11963_v38, %v11962_v24  ;;  %13710 = vtanh.f32 %v11950_v12  ;;  %v11971_v23 = vadd.f32 %v11970_v35, %v11969_v25 }
0x1037   :  { %v11989_v45 = vrot.slane %v11988_v15, 2  ;;  %v11996_v27 = vrot.slane %v11995_v57, 2  ;;  %v11977_v34 = vrot.slane %v11976_v40, 1  ;;  %v11984_v9 = vrot.slane %v11983_v31, 1 }
0x1038   :  { %13712 = vtanh.f32 %v11964_v4 }
0x1039   :  { %v11990_v13 = vadd.f32 %v11989_v45, %v11988_v15  ;;  %v11997_v19 = vadd.f32 %v11996_v27, %v11995_v57  ;;  %v11978_v18 = vadd.f32 %v11977_v34, %v11976_v40  ;;  %13714 = vtanh.f32 %v11971_v23 }
0x103a   :  { %v11985_v8 = vadd.f32 %v11984_v9, %v11983_v31 }
0x103b   :  { %v11991_v47 = vrot.slane %v11990_v13, 1  ;;  %v11998_v55 = vrot.slane %v11997_v19, 1  ;;  %13716 = vtanh.f32 %v11978_v18 }
0x103c   :  { %13718 = vtanh.f32 %v11985_v8 }
0x103d   :  { %v11992_v26 = vadd.f32 %v11991_v47, %v11990_v13  ;;  %v11999_v50 = vadd.f32 %v11998_v55, %v11997_v19 }
0x103e   :  { %v13709_v39 = vpop.eup %13708 }
0x103f   :  { %13720 = vtanh.f32 %v11992_v26 }
0x1040   :  { %v13711_v5 = vpop.eup %13710  ;;  %13722 = vtanh.f32 %v11999_v50 }
0x1041   :  { %v12080_v49 = vsel %vm11439_vm6, %v13709_v39, %v13711_v5 }
0x1042   :  { %v13713_v53 = vpop.eup %13712 }
0x1043   :  { %v13715_v61 = vpop.eup %13714  ;;  %v12081_v37 = vsel %vm11441_vm7, %v13713_v53, %v12080_v49 }
0x1044   :  { %v12082_v41 = vsel %vm11443_vm8, %v13715_v61, %v12081_v37 }
0x1045   :  { %v13717_v22 = vpop.eup %13716 }
0x1046   :  { %v13719_v32 = vpop.eup %13718  ;;  %v12083_v6 = vsel %vm11445_vm9, %v13717_v22, %v12082_v41 }
0x1047   :  { %v12084_v11 = vsel %vm11447_vm10, %v13719_v32, %v12083_v6 }
0x1049   :  { %v13721_v29 = vpop.eup %13720 }
0x104a   :  { %v13723_v44 = vpop.eup %13722  ;;  %v12085_v7 = vsel %vm11449_vm11, %v13721_v29, %v12084_v11 }
0x104b   :  { %v12086_v1 = vsel %vm11451_vm12, %v13723_v44, %v12085_v7 }
0x10a1   :  { %v12104_v63 = vpop.permute.xlu0 %12103 }
0x10a2   :  { %v12106_v60 = vsel %vm96_vm0, %v12086_v1, %v12104_v63 }
0x10a3   :  { %12107 = vst [vmem:[#allocation7] sm:$0xff] %v12106_v60 }
0x10a4   :  { %13779 = shalt.err (!%p13776_p6)
}
0x10a5   :  { %s13780_s2 = scalar_lea.hbm %s16532_s6, 128 }
0x10a6   :  { %p13781_p7 = scmp.ne.s32.totalorder %s16532_s6, %s13780_s2  ;;  %p13784_p8 = scmp.lt.u32.totalorder %s13780_s2, %s16532_s6 }
0x10a8   :  { %p13786_p9 = pnand %p13784_p8, %p13781_p7 }
0x10aa   :  { %13789 = shalt.err (!%p13786_p9)
}
0x10ab   :  { %12117 = dma.vmem_to_hbm [thread:$0]  %s12115_s23, 128, %s16532_s6, [#allocation4]  }
0x10ac   :  { %13794 = dma.done.wait [#allocation4], 128  }
0x10ad   :  { %13795 = vsyncadd [#allocation4], 4294967168 }
0x10ae   :  { %12121 = vsyncpa [#allocation3], 1 }
0x10af   :  { %12122 = vsyncpa [#allocation6], 1 }
0x10b0   :  { %12123 = vsyncpa [#allocation4], 1 }

</bundles_post_ra>
